<compile_context>
chip_gen: v5e
topology: v5e:2x2
jax: 0.10.0
libtpu: 0.0.40
codegen_flags: <defaults>
</compile_context>

<pallas_src>
import functools
import math

import jax
import jax.numpy as jnp
from jax.experimental import pallas as pl
from jax.experimental.pallas import tpu as pltpu


def _round_up(x: int, m: int) -> int:
    return (x + m - 1) // m * m


def _make_fused_gru_kernel(T: int, B: int, C_pad: int, H: int):
    """2-layer bidirectional GRU + time-mean, fully fused into one kernel body."""
    L1_BASE = 6 * C_pad      # first row of the layer-1 W_ih blocks in the bf16 slab
    BIAS_BASE = 12 * H       # first bias row in the f32 slab

    def kernel(x_ref, wih_ref, whhb_ref, mean_ref, hfin_ref, seqf_ref, seqb_ref):
        # x_ref    : (T*B, C_pad) bf16        flattened input, row = t*B + b (cols >= C_in are 0)
        # wih_ref  : (6*C_pad + 12*H, H) bf16 per-gate input-hidden weight blocks
        # whhb_ref : (12*H + 16, H) f32       per-gate hidden-hidden weights + bias rows
        # mean_ref : (B, 2H) f32              hfin_ref : (4, B, H) f32
        # seqf/seqb_ref : (T*B, H) f32 VMEM scratch -- layer-0 fwd / bwd outputs by time.

        def bias_row(chain, j):                       # (1, H) f32 (hoisted reads only)
            r = BIAS_BASE + chain * 4 + j
            return whhb_ref[r:r + 1, :]

        def whh(chain, gate):                         # (H, H) f32
            r = (chain * 3 + gate) * H
            return whhb_ref[r:r + H, :]

        def gi_layer0(x, d):
            """Hoisted x @ W_ih for layer-0 direction d: per-gate (T*B, H) f32, biases folded."""
            out = []
            for g in range(3):
                r = (d * 3 + g) * C_pad
                gi = jnp.dot(x, wih_ref[r:r + C_pad, :],
                             preferred_element_type=jnp.float32)
                out.append(gi + bias_row(d, g))
            return out

        def gi_layer1(seq_f, seq_b, d):
            """Hoisted layer-1 input projection: seq_f @ W_top + seq_b @ W_bot, biases folded."""
            chain = 2 + d
            out = []
            for g in range(3):
                rt = L1_BASE + (d * 6 + g * 2 + 0) * H
                rb = L1_BASE + (d * 6 + g * 2 + 1) * H
                gi = (jnp.dot(seq_f, wih_ref[rt:rt + H, :],
                              preferred_element_type=jnp.float32)
                      + jnp.dot(seq_b, wih_ref[rb:rb + H, :],
                                preferred_element_type=jnp.float32))
                out.append(gi + bias_row(chain, g))
            return out

        def run_chain(gi, chain, reverse, seq_out):
            gi_r, gi_z, gi_n = gi
            whh_r, whh_z, whh_n = whh(chain, 0), whh(chain, 1), whh(chain, 2)
            bhh_n = jnp.broadcast_to(bias_row(chain, 3), (B, H))   # hoisted broadcast
            h = jnp.zeros((B, H), jnp.float32)
            acc = jnp.zeros((B, H), jnp.float32)
            for i in range(T):                        # static full unroll (T is tiny)
                t = (T - 1 - i) if reverse else i
                lo = t * B
                g_r = gi_r[lo:lo + B, :]
                g_z = gi_z[lo:lo + B, :]
                g_n = gi_n[lo:lo + B, :]
                if i == 0:                            # h == 0 exactly: skip the three dots
                    r = jax.nn.sigmoid(g_r)
                    z = jax.nn.sigmoid(g_z)
                    n = jnp.tanh(g_n + r * bhh_n)
                    h = n - z * n
                else:
                    gh_r = jnp.dot(h, whh_r, preferred_element_type=jnp.float32)
                    gh_z = jnp.dot(h, whh_z, preferred_element_type=jnp.float32)
                    gh_n = jnp.dot(h, whh_n, preferred_element_type=jnp.float32) + bhh_n
                    r = jax.nn.sigmoid(g_r + gh_r)
                    z = jax.nn.sigmoid(g_z + gh_z)
                    n = jnp.tanh(g_n + r * gh_n)
                    h = n + z * (h - n)
                if seq_out is not None:
                    seq_out[lo:lo + B, :] = h
                acc = acc + h
            return h, acc * (1.0 / T)

        # ---- layer 0: both directions; per-step outputs go into VMEM scratch ----
        x = x_ref[...]
        h0f, _ = run_chain(gi_layer0(x, 0), chain=0, reverse=False, seq_out=seqf_ref)
        h0b, _ = run_chain(gi_layer0(x, 1), chain=1, reverse=True, seq_out=seqb_ref)

        # ---- layer 1: consumes scratch; only the mean + final states leave ------
        seq_f = seqf_ref[...].astype(jnp.bfloat16)
        seq_b = seqb_ref[...].astype(jnp.bfloat16)
        h1f, mean_f = run_chain(gi_layer1(seq_f, seq_b, 0), chain=2, reverse=False,
                                seq_out=None)
        h1b, mean_b = run_chain(gi_layer1(seq_f, seq_b, 1), chain=3, reverse=True,
                                seq_out=None)

        # PyTorch h_n layout: index = layer * num_directions + direction.
        hfin_ref[0] = h0f
        hfin_ref[1] = h0b
        hfin_ref[2] = h1f
        hfin_ref[3] = h1b
        # Two direct stores instead of a lane concat.
        mean_ref[:, 0:H] = mean_f
        mean_ref[:, H:2 * H] = mean_b

    return kernel


def init_gru_params(key, in_channel, hidden, num_layers=2):
    """PyTorch nn.GRU-style init: every tensor ~ U(-1/sqrt(H), 1/sqrt(H)).

    Returns raw per-chain parameters in PyTorch layout, ordered
    [l0_fwd, l0_bwd, l1_fwd, l1_bwd], each (w_ih (3H, D_in), w_hh (3H, H), b_ih (3H,), b_hh (3H,)).
    """
    k = 1.0 / math.sqrt(hidden)
    chains = []
    for layer in range(num_layers):
        d_in = in_channel if layer == 0 else 2 * hidden
        for _ in range(2):                            # forward, backward
            key, k1, k2, k3, k4 = jax.random.split(key, 5)
            w_ih = jax.random.uniform(k1, (3 * hidden, d_in), jnp.float32, -k, k)
            w_hh = jax.random.uniform(k2, (3 * hidden, hidden), jnp.float32, -k, k)
            b_ih = jax.random.uniform(k3, (3 * hidden,), jnp.float32, -k, k)
            b_hh = jax.random.uniform(k4, (3 * hidden,), jnp.float32, -k, k)
            chains.append((w_ih, w_hh, b_ih, b_hh))
    return chains


def pack_gru_params(raw_params, in_channel, hidden):
    """Pack the 16 PyTorch-layout tensors into two tile-aligned slabs (done once at init).

    bf16 slab (input-hidden weights, per gate, pre-transposed to (rows, H)):
        layer 0: 2 dirs x 3 gates, each (C_pad, H) with rows beyond C_in zeroed;
        layer 1: 2 dirs x 3 gates x 2 halves (fwd-input / bwd-input), each (H, H).
    f32 slab: 4 chains x 3 gates of (H, H) hidden-hidden weights, then 4 bias rows per chain:
        [b_ih_r + b_hh_r, b_ih_z + b_hh_z, b_ih_n, b_hh_n].
    """
    assert len(raw_params) == 4, "this fused kernel implements num_layers=2, bidirectional"
    H = hidden
    C_pad = max(16, _round_up(in_channel, 16))

    wih_blocks = []
    for d in range(2):                                # layer 0
        w_ih = raw_params[d][0]                       # (3H, C_in)
        for g in range(3):
            blk = w_ih[g * H:(g + 1) * H, :].T        # (C_in, H)
            wih_blocks.append(jnp.pad(blk, ((0, C_pad - in_channel), (0, 0))))
    for d in range(2):                                # layer 1
        w_ih = raw_params[2 + d][0]                   # (3H, 2H)
        for g in range(3):
            w_g = w_ih[g * H:(g + 1) * H, :].T        # (2H, H)
            wih_blocks.append(w_g[:H, :])             # multiplies layer-0 fwd output
            wih_blocks.append(w_g[H:, :])             # multiplies layer-0 bwd output
    wih_slab = jnp.concatenate(wih_blocks, axis=0).astype(jnp.bfloat16)

    whhb_blocks = []
    for c in range(4):
        w_hh = raw_params[c][1]                       # (3H, H)
        for g in range(3):
            whhb_blocks.append(w_hh[g * H:(g + 1) * H, :].T)     # (H, H)
    for c in range(4):
        _, _, b_ih, b_hh = raw_params[c]
        whhb_blocks.append((b_ih[0:H] + b_hh[0:H]).reshape(1, H))
        whhb_blocks.append((b_ih[H:2 * H] + b_hh[H:2 * H]).reshape(1, H))
        whhb_blocks.append(b_ih[2 * H:3 * H].reshape(1, H))
        whhb_blocks.append(b_hh[2 * H:3 * H].reshape(1, H))
    whhb_slab = jnp.concatenate(whhb_blocks, axis=0).astype(jnp.float32)
    return wih_slab, whhb_slab


@functools.partial(jax.jit, static_argnums=(3,))
def recurrent_block_forward(x_bct, wih_slab, whhb_slab, hidden):
    """Equivalent of RecurrentBlock.forward (dropout=0 -> inter-layer dropout is a no-op).

    Args:
        x_bct: [b, c_in, intervals]
    Returns:
        output:        [b, 2*hidden]                time-mean of the last layer's output
        hidden_output: [num_layers*2, b, hidden]    PyTorch h_n layout
    """
    B, C_in, T = x_bct.shape
    H = hidden
    C_pad = max(16, _round_up(C_in, 16))
    assert wih_slab.shape == (6 * C_pad + 12 * H, H), wih_slab.shape
    assert whhb_slab.shape == (12 * H + 16, H), whhb_slab.shape

    # Single fused prep op (transpose + reshape + pad + cast): (B, C_in, T) -> (T*B, C_pad) bf16.
    x_flat = jnp.transpose(x_bct, (2, 0, 1)).reshape(T * B, C_in)
    x_flat = jnp.pad(x_flat, ((0, 0), (0, C_pad - C_in))).astype(jnp.bfloat16)

    kernel = _make_fused_gru_kernel(T, B, C_pad, H)
    vmem = pl.BlockSpec(memory_space=pltpu.MemorySpace.VMEM)
    mean, hfin = pl.pallas_call(
        kernel,
        out_shape=(
            jax.ShapeDtypeStruct((B, 2 * H), jnp.float32),
            jax.ShapeDtypeStruct((4, B, H), jnp.float32),
        ),
        in_specs=[vmem, vmem, vmem],
        out_specs=(vmem, vmem),
        scratch_shapes=[pltpu.VMEM((T * B, H), jnp.float32),
                        pltpu.VMEM((T * B, H), jnp.float32)],
        # Total VMEM footprint is ~0.1 MiB -> fits the scoped default on v5e/v6e/v7x.
        # TODO(synk): if T/B/H are scaled up, move to a T-chunked grid with BlockSpec
        # pipelining, re-budget against v7x's 64 MiB VMEM via
        # pltpu.CompilerParams(vmem_limit_bytes=...), and keep the recurrence on one
        # TensorCore (it is dependency-bound; a cross-core split costs more than it saves).
    )(x_flat, wih_slab, whhb_slab)
    return mean, hfin


# ---------- pure-JAX reference (for in-script correctness check) ----------
def _ref_gru_direction(x_tbd, w_ih, w_hh, b_ih, b_hh, hidden, reverse):
    xs = x_tbd[::-1] if reverse else x_tbd
    B = x_tbd.shape[1]

    def step(h, x_t):
        gi = x_t @ w_ih.T + b_ih
        gh = h @ w_hh.T + b_hh
        r = jax.nn.sigmoid(gi[:, :hidden] + gh[:, :hidden])
        z = jax.nn.sigmoid(gi[:, hidden:2 * hidden] + gh[:, hidden:2 * hidden])
        n = jnp.tanh(gi[:, 2 * hidden:] + r * gh[:, 2 * hidden:])
        h_new = (1.0 - z) * n + z * h
        return h_new, h_new

    h_fin, outs = jax.lax.scan(step, jnp.zeros((B, hidden), jnp.float32), xs)
    if reverse:
        outs = outs[::-1]
    return outs, h_fin


def _ref_forward(x_bct, raw_params, hidden):
    x = jnp.transpose(x_bct, (2, 0, 1)).astype(jnp.float32)
    hiddens = []
    layer_in = x
    for layer in range(2):
        outs = []
        for d in range(2):
            w_ih, w_hh, b_ih, b_hh = raw_params[layer * 2 + d]
            o, hf = _ref_gru_direction(layer_in, w_ih, w_hh, b_ih, b_hh, hidden,
                                       reverse=(d == 1))
            outs.append(o)
            hiddens.append(hf)
        layer_in = jnp.concatenate(outs, axis=-1)
    return jnp.mean(layer_in, axis=0), jnp.stack(hiddens, axis=0)


if __name__ == "__main__":
    B, C_IN, T = 2, 4, 8          # [b, c_in, intervals]
    HIDDEN = 32                   # out_channel
    NUM_LAYERS = 2

    key = jax.random.PRNGKey(0)
    key_x, key_p = jax.random.split(key)
    x = jax.random.normal(key_x, (B, C_IN, T), dtype=jnp.float32)

    raw_params = init_gru_params(key_p, C_IN, HIDDEN, num_layers=NUM_LAYERS)
    wih_slab, whhb_slab = pack_gru_params(raw_params, C_IN, HIDDEN)

    output, hidden_output = recurrent_block_forward(x, wih_slab, whhb_slab, HIDDEN)
    output = jax.block_until_ready(output)
    hidden_output = jax.block_until_ready(hidden_output)

    assert output.shape == (B, 2 * HIDDEN), output.shape
    assert hidden_output.shape == (NUM_LAYERS * 2, B, HIDDEN), hidden_output.shape
    assert bool(jnp.all(jnp.isfinite(output)))
    assert bool(jnp.all(jnp.isfinite(hidden_output)))

    # Correctness vs. a pure-JAX GRU reference on the raw (unpacked) parameters.
    # The kernel's hoisted input projections run with bf16 operands (per the perf review)
    # and the reference runs at default TPU matmul precision, so a few-milli tolerance is
    # expected; any structural/indexing bug would produce errors orders of magnitude larger.
    ref_out, ref_hid = _ref_forward(x, raw_params, HIDDEN)
    assert jnp.allclose(output, ref_out, atol=5e-3, rtol=5e-3), \
        float(jnp.max(jnp.abs(output - ref_out)))
    assert jnp.allclose(hidden_output, ref_hid, atol=5e-3, rtol=5e-3), \
        float(jnp.max(jnp.abs(hidden_output - ref_hid)))

    print("KERNEL_OK")
</pallas_src>

<mosaic_0001>
module attributes {stable_mosaic.version = 11 : i64} {
  func.func @kernel(%arg0: memref<16x16xbf16, #tpu.memory_space<vmem>>, %arg1: memref<480x32xbf16, #tpu.memory_space<vmem>>, %arg2: memref<400x32xf32, #tpu.memory_space<vmem>>, %arg3: memref<2x64xf32, #tpu.memory_space<vmem>>, %arg4: memref<4x2x32xf32, #tpu.memory_space<vmem>>, %arg5: memref<16x32xf32, #tpu.memory_space<vmem>>, %arg6: memref<16x32xf32, #tpu.memory_space<vmem>>) attributes {dimension_semantics = [], scalar_prefetch = 0 : i64, scratch_operands = 2 : i64, tpu.core_type = #tpu.core_type<tc>} {
    %c0 = arith.constant 0 : index
    %c0_0 = arith.constant 0 : index
    %0 = vector.load %arg0[%c0, %c0_0] : memref<16x16xbf16, #tpu.memory_space<vmem>>, vector<16x16xbf16>
    %c0_1 = arith.constant 0 : index
    %c0_2 = arith.constant 0 : index
    %1 = vector.load %arg1[%c0_1, %c0_2] : memref<480x32xbf16, #tpu.memory_space<vmem>>, vector<16x32xbf16>
    %cst = arith.constant dense<0.000000e+00> : vector<16x32xf32>
    %2 = tpu.matmul %0, %1, %cst {dimension_numbers = #tpu.dot_dimension_numbers<[1], [0], [0], [1], [0, 0, 1, 1], [], []>} : vector<16x16xbf16>, vector<16x32xbf16>, vector<16x32xf32> -> vector<16x32xf32>
    %c384 = arith.constant 384 : index
    %c0_3 = arith.constant 0 : index
    %3 = vector.load %arg2[%c384, %c0_3] : memref<400x32xf32, #tpu.memory_space<vmem>>, vector<1x32xf32>
    %4 = vector.broadcast %3 : vector<1x32xf32> to vector<16x32xf32>
    %5 = arith.addf %2, %4 : vector<16x32xf32>
    %c16 = arith.constant 16 : index
    %c0_4 = arith.constant 0 : index
    %6 = vector.load %arg1[%c16, %c0_4] : memref<480x32xbf16, #tpu.memory_space<vmem>>, vector<16x32xbf16>
    %cst_5 = arith.constant dense<0.000000e+00> : vector<16x32xf32>
    %7 = tpu.matmul %0, %6, %cst_5 {dimension_numbers = #tpu.dot_dimension_numbers<[1], [0], [0], [1], [0, 0, 1, 1], [], []>} : vector<16x16xbf16>, vector<16x32xbf16>, vector<16x32xf32> -> vector<16x32xf32>
    %c385 = arith.constant 385 : index
    %c0_6 = arith.constant 0 : index
    %8 = vector.load %arg2[%c385, %c0_6] : memref<400x32xf32, #tpu.memory_space<vmem>>, vector<1x32xf32>
    %9 = vector.broadcast %8 : vector<1x32xf32> to vector<16x32xf32>
    %10 = arith.addf %7, %9 : vector<16x32xf32>
    %c32 = arith.constant 32 : index
    %c0_7 = arith.constant 0 : index
    %11 = vector.load %arg1[%c32, %c0_7] : memref<480x32xbf16, #tpu.memory_space<vmem>>, vector<16x32xbf16>
    %cst_8 = arith.constant dense<0.000000e+00> : vector<16x32xf32>
    %12 = tpu.matmul %0, %11, %cst_8 {dimension_numbers = #tpu.dot_dimension_numbers<[1], [0], [0], [1], [0, 0, 1, 1], [], []>} : vector<16x16xbf16>, vector<16x32xbf16>, vector<16x32xf32> -> vector<16x32xf32>
    %c386 = arith.constant 386 : index
    %c0_9 = arith.constant 0 : index
    %13 = vector.load %arg2[%c386, %c0_9] : memref<400x32xf32, #tpu.memory_space<vmem>>, vector<1x32xf32>
    %14 = vector.broadcast %13 : vector<1x32xf32> to vector<16x32xf32>
    %15 = arith.addf %12, %14 : vector<16x32xf32>
    %c0_10 = arith.constant 0 : index
    %c0_11 = arith.constant 0 : index
    %16 = vector.load %arg2[%c0_10, %c0_11] : memref<400x32xf32, #tpu.memory_space<vmem>>, vector<32x32xf32>
    %c32_12 = arith.constant 32 : index
    %c0_13 = arith.constant 0 : index
    %17 = vector.load %arg2[%c32_12, %c0_13] : memref<400x32xf32, #tpu.memory_space<vmem>>, vector<32x32xf32>
    %c64 = arith.constant 64 : index
    %c0_14 = arith.constant 0 : index
    %18 = vector.load %arg2[%c64, %c0_14] : memref<400x32xf32, #tpu.memory_space<vmem>>, vector<32x32xf32>
    %c387 = arith.constant 387 : index
    %c0_15 = arith.constant 0 : index
    %19 = vector.load %arg2[%c387, %c0_15] : memref<400x32xf32, #tpu.memory_space<vmem>>, vector<1x32xf32>
    %20 = vector.shape_cast %19 : vector<1x32xf32> to vector<1x32xf32>
    %21 = vector.broadcast %20 : vector<1x32xf32> to vector<2x32xf32>
    %22 = vector.extract_strided_slice %5 {offsets = [0, 0], sizes = [2, 32], strides = [1, 1]} : vector<16x32xf32> to vector<2x32xf32>
    %23 = vector.extract_strided_slice %10 {offsets = [0, 0], sizes = [2, 32], strides = [1, 1]} : vector<16x32xf32> to vector<2x32xf32>
    %24 = vector.extract_strided_slice %15 {offsets = [0, 0], sizes = [2, 32], strides = [1, 1]} : vector<16x32xf32> to vector<2x32xf32>
    %25 = arith.negf %22 : vector<2x32xf32>
    %26 = math.exp %25 : vector<2x32xf32>
    %cst_16 = arith.constant 1.000000e+00 : f32
    %27 = vector.broadcast %cst_16 : f32 to vector<2x32xf32>
    %28 = arith.addf %27, %26 : vector<2x32xf32>
    %29 = arith.divf %27, %28 : vector<2x32xf32>
    %30 = arith.negf %23 : vector<2x32xf32>
    %31 = math.exp %30 : vector<2x32xf32>
    %cst_17 = arith.constant 1.000000e+00 : f32
    %32 = vector.broadcast %cst_17 : f32 to vector<2x32xf32>
    %33 = arith.addf %32, %31 : vector<2x32xf32>
    %34 = arith.divf %32, %33 : vector<2x32xf32>
    %35 = arith.mulf %29, %21 : vector<2x32xf32>
    %36 = arith.addf %24, %35 : vector<2x32xf32>
    %37 = math.tanh %36 : vector<2x32xf32>
    %38 = arith.mulf %34, %37 : vector<2x32xf32>
    %39 = arith.subf %37, %38 : vector<2x32xf32>
    %c0_18 = arith.constant 0 : index
    %c0_19 = arith.constant 0 : index
    %40 = vector.load %arg5[%c0_18, %c0_19] : memref<16x32xf32, #tpu.memory_space<vmem>>, vector<2x32xf32>
    tpu.vector_store %arg5[%c0_18, %c0_19], %39 {strides = array<i32>} : memref<16x32xf32, #tpu.memory_space<vmem>>, vector<2x32xf32>,
    %41 = vector.extract_strided_slice %5 {offsets = [2, 0], sizes = [2, 32], strides = [1, 1]} : vector<16x32xf32> to vector<2x32xf32>
    %42 = vector.extract_strided_slice %10 {offsets = [2, 0], sizes = [2, 32], strides = [1, 1]} : vector<16x32xf32> to vector<2x32xf32>
    %43 = vector.extract_strided_slice %15 {offsets = [2, 0], sizes = [2, 32], strides = [1, 1]} : vector<16x32xf32> to vector<2x32xf32>
    %cst_20 = arith.constant dense<0.000000e+00> : vector<2x32xf32>
    %44 = tpu.matmul %39, %16, %cst_20 {dimension_numbers = #tpu.dot_dimension_numbers<[1], [0], [0], [1], [0, 0, 1, 1], [], []>} : vector<2x32xf32>, vector<32x32xf32>, vector<2x32xf32> -> vector<2x32xf32>
    %cst_21 = arith.constant dense<0.000000e+00> : vector<2x32xf32>
    %45 = tpu.matmul %39, %17, %cst_21 {dimension_numbers = #tpu.dot_dimension_numbers<[1], [0], [0], [1], [0, 0, 1, 1], [], []>} : vector<2x32xf32>, vector<32x32xf32>, vector<2x32xf32> -> vector<2x32xf32>
    %cst_22 = arith.constant dense<0.000000e+00> : vector<2x32xf32>
    %46 = tpu.matmul %39, %18, %cst_22 {dimension_numbers = #tpu.dot_dimension_numbers<[1], [0], [0], [1], [0, 0, 1, 1], [], []>} : vector<2x32xf32>, vector<32x32xf32>, vector<2x32xf32> -> vector<2x32xf32>
    %47 = arith.addf %46, %21 : vector<2x32xf32>
    %48 = arith.addf %41, %44 : vector<2x32xf32>
    %49 = arith.negf %48 : vector<2x32xf32>
    %50 = math.exp %49 : vector<2x32xf32>
    %cst_23 = arith.constant 1.000000e+00 : f32
    %51 = vector.broadcast %cst_23 : f32 to vector<2x32xf32>
    %52 = arith.addf %51, %50 : vector<2x32xf32>
    %53 = arith.divf %51, %52 : vector<2x32xf32>
    %54 = arith.addf %42, %45 : vector<2x32xf32>
    %55 = arith.negf %54 : vector<2x32xf32>
    %56 = math.exp %55 : vector<2x32xf32>
    %cst_24 = arith.constant 1.000000e+00 : f32
    %57 = vector.broadcast %cst_24 : f32 to vector<2x32xf32>
    %58 = arith.addf %57, %56 : vector<2x32xf32>
    %59 = arith.divf %57, %58 : vector<2x32xf32>
    %60 = arith.mulf %53, %47 : vector<2x32xf32>
    %61 = arith.addf %43, %60 : vector<2x32xf32>
    %62 = math.tanh %61 : vector<2x32xf32>
    %63 = arith.subf %39, %62 : vector<2x32xf32>
    %64 = arith.mulf %59, %63 : vector<2x32xf32>
    %65 = arith.addf %62, %64 : vector<2x32xf32>
    %c2 = arith.constant 2 : index
    %c0_25 = arith.constant 0 : index
    %66 = vector.load %arg5[%c2, %c0_25] : memref<16x32xf32, #tpu.memory_space<vmem>>, vector<2x32xf32>
    tpu.vector_store %arg5[%c2, %c0_25], %65 {strides = array<i32>} : memref<16x32xf32, #tpu.memory_space<vmem>>, vector<2x32xf32>,
    %67 = vector.extract_strided_slice %5 {offsets = [4, 0], sizes = [2, 32], strides = [1, 1]} : vector<16x32xf32> to vector<2x32xf32>
    %68 = vector.extract_strided_slice %10 {offsets = [4, 0], sizes = [2, 32], strides = [1, 1]} : vector<16x32xf32> to vector<2x32xf32>
    %69 = vector.extract_strided_slice %15 {offsets = [4, 0], sizes = [2, 32], strides = [1, 1]} : vector<16x32xf32> to vector<2x32xf32>
    %cst_26 = arith.constant dense<0.000000e+00> : vector<2x32xf32>
    %70 = tpu.matmul %65, %16, %cst_26 {dimension_numbers = #tpu.dot_dimension_numbers<[1], [0], [0], [1], [0, 0, 1, 1], [], []>} : vector<2x32xf32>, vector<32x32xf32>, vector<2x32xf32> -> vector<2x32xf32>
    %cst_27 = arith.constant dense<0.000000e+00> : vector<2x32xf32>
    %71 = tpu.matmul %65, %17, %cst_27 {dimension_numbers = #tpu.dot_dimension_numbers<[1], [0], [0], [1], [0, 0, 1, 1], [], []>} : vector<2x32xf32>, vector<32x32xf32>, vector<2x32xf32> -> vector<2x32xf32>
    %cst_28 = arith.constant dense<0.000000e+00> : vector<2x32xf32>
    %72 = tpu.matmul %65, %18, %cst_28 {dimension_numbers = #tpu.dot_dimension_numbers<[1], [0], [0], [1], [0, 0, 1, 1], [], []>} : vector<2x32xf32>, vector<32x32xf32>, vector<2x32xf32> -> vector<2x32xf32>
    %73 = arith.addf %72, %21 : vector<2x32xf32>
    %74 = arith.addf %67, %70 : vector<2x32xf32>
    %75 = arith.negf %74 : vector<2x32xf32>
    %76 = math.exp %75 : vector<2x32xf32>
    %cst_29 = arith.constant 1.000000e+00 : f32
    %77 = vector.broadcast %cst_29 : f32 to vector<2x32xf32>
    %78 = arith.addf %77, %76 : vector<2x32xf32>
    %79 = arith.divf %77, %78 : vector<2x32xf32>
    %80 = arith.addf %68, %71 : vector<2x32xf32>
    %81 = arith.negf %80 : vector<2x32xf32>
    %82 = math.exp %81 : vector<2x32xf32>
    %cst_30 = arith.constant 1.000000e+00 : f32
    %83 = vector.broadcast %cst_30 : f32 to vector<2x32xf32>
    %84 = arith.addf %83, %82 : vector<2x32xf32>
    %85 = arith.divf %83, %84 : vector<2x32xf32>
    %86 = arith.mulf %79, %73 : vector<2x32xf32>
    %87 = arith.addf %69, %86 : vector<2x32xf32>
    %88 = math.tanh %87 : vector<2x32xf32>
    %89 = arith.subf %65, %88 : vector<2x32xf32>
    %90 = arith.mulf %85, %89 : vector<2x32xf32>
    %91 = arith.addf %88, %90 : vector<2x32xf32>
    %c4 = arith.constant 4 : index
    %c0_31 = arith.constant 0 : index
    %92 = vector.load %arg5[%c4, %c0_31] : memref<16x32xf32, #tpu.memory_space<vmem>>, vector<2x32xf32>
    tpu.vector_store %arg5[%c4, %c0_31], %91 {strides = array<i32>} : memref<16x32xf32, #tpu.memory_space<vmem>>, vector<2x32xf32>,
    %93 = vector.extract_strided_slice %5 {offsets = [6, 0], sizes = [2, 32], strides = [1, 1]} : vector<16x32xf32> to vector<2x32xf32>
    %94 = vector.extract_strided_slice %10 {offsets = [6, 0], sizes = [2, 32], strides = [1, 1]} : vector<16x32xf32> to vector<2x32xf32>
    %95 = vector.extract_strided_slice %15 {offsets = [6, 0], sizes = [2, 32], strides = [1, 1]} : vector<16x32xf32> to vector<2x32xf32>
    %cst_32 = arith.constant dense<0.000000e+00> : vector<2x32xf32>
    %96 = tpu.matmul %91, %16, %cst_32 {dimension_numbers = #tpu.dot_dimension_numbers<[1], [0], [0], [1], [0, 0, 1, 1], [], []>} : vector<2x32xf32>, vector<32x32xf32>, vector<2x32xf32> -> vector<2x32xf32>
    %cst_33 = arith.constant dense<0.000000e+00> : vector<2x32xf32>
    %97 = tpu.matmul %91, %17, %cst_33 {dimension_numbers = #tpu.dot_dimension_numbers<[1], [0], [0], [1], [0, 0, 1, 1], [], []>} : vector<2x32xf32>, vector<32x32xf32>, vector<2x32xf32> -> vector<2x32xf32>
    %cst_34 = arith.constant dense<0.000000e+00> : vector<2x32xf32>
    %98 = tpu.matmul %91, %18, %cst_34 {dimension_numbers = #tpu.dot_dimension_numbers<[1], [0], [0], [1], [0, 0, 1, 1], [], []>} : vector<2x32xf32>, vector<32x32xf32>, vector<2x32xf32> -> vector<2x32xf32>
    %99 = arith.addf %98, %21 : vector<2x32xf32>
    %100 = arith.addf %93, %96 : vector<2x32xf32>
    %101 = arith.negf %100 : vector<2x32xf32>
    %102 = math.exp %101 : vector<2x32xf32>
    %cst_35 = arith.constant 1.000000e+00 : f32
    %103 = vector.broadcast %cst_35 : f32 to vector<2x32xf32>
    %104 = arith.addf %103, %102 : vector<2x32xf32>
    %105 = arith.divf %103, %104 : vector<2x32xf32>
    %106 = arith.addf %94, %97 : vector<2x32xf32>
    %107 = arith.negf %106 : vector<2x32xf32>
    %108 = math.exp %107 : vector<2x32xf32>
    %cst_36 = arith.constant 1.000000e+00 : f32
    %109 = vector.broadcast %cst_36 : f32 to vector<2x32xf32>
    %110 = arith.addf %109, %108 : vector<2x32xf32>
    %111 = arith.divf %109, %110 : vector<2x32xf32>
    %112 = arith.mulf %105, %99 : vector<2x32xf32>
    %113 = arith.addf %95, %112 : vector<2x32xf32>
    %114 = math.tanh %113 : vector<2x32xf32>
    %115 = arith.subf %91, %114 : vector<2x32xf32>
    %116 = arith.mulf %111, %115 : vector<2x32xf32>
    %117 = arith.addf %114, %116 : vector<2x32xf32>
    %c6 = arith.constant 6 : index
    %c0_37 = arith.constant 0 : index
    %118 = vector.load %arg5[%c6, %c0_37] : memref<16x32xf32, #tpu.memory_space<vmem>>, vector<2x32xf32>
    tpu.vector_store %arg5[%c6, %c0_37], %117 {strides = array<i32>} : memref<16x32xf32, #tpu.memory_space<vmem>>, vector<2x32xf32>,
    %119 = vector.extract_strided_slice %5 {offsets = [8, 0], sizes = [2, 32], strides = [1, 1]} : vector<16x32xf32> to vector<2x32xf32>
    %120 = vector.extract_strided_slice %10 {offsets = [8, 0], sizes = [2, 32], strides = [1, 1]} : vector<16x32xf32> to vector<2x32xf32>
    %121 = vector.extract_strided_slice %15 {offsets = [8, 0], sizes = [2, 32], strides = [1, 1]} : vector<16x32xf32> to vector<2x32xf32>
    %cst_38 = arith.constant dense<0.000000e+00> : vector<2x32xf32>
    %122 = tpu.matmul %117, %16, %cst_38 {dimension_numbers = #tpu.dot_dimension_numbers<[1], [0], [0], [1], [0, 0, 1, 1], [], []>} : vector<2x32xf32>, vector<32x32xf32>, vector<2x32xf32> -> vector<2x32xf32>
    %cst_39 = arith.constant dense<0.000000e+00> : vector<2x32xf32>
    %123 = tpu.matmul %117, %17, %cst_39 {dimension_numbers = #tpu.dot_dimension_numbers<[1], [0], [0], [1], [0, 0, 1, 1], [], []>} : vector<2x32xf32>, vector<32x32xf32>, vector<2x32xf32> -> vector<2x32xf32>
    %cst_40 = arith.constant dense<0.000000e+00> : vector<2x32xf32>
    %124 = tpu.matmul %117, %18, %cst_40 {dimension_numbers = #tpu.dot_dimension_numbers<[1], [0], [0], [1], [0, 0, 1, 1], [], []>} : vector<2x32xf32>, vector<32x32xf32>, vector<2x32xf32> -> vector<2x32xf32>
    %125 = arith.addf %124, %21 : vector<2x32xf32>
    %126 = arith.addf %119, %122 : vector<2x32xf32>
    %127 = arith.negf %126 : vector<2x32xf32>
    %128 = math.exp %127 : vector<2x32xf32>
    %cst_41 = arith.constant 1.000000e+00 : f32
    %129 = vector.broadcast %cst_41 : f32 to vector<2x32xf32>
    %130 = arith.addf %129, %128 : vector<2x32xf32>
    %131 = arith.divf %129, %130 : vector<2x32xf32>
    %132 = arith.addf %120, %123 : vector<2x32xf32>
    %133 = arith.negf %132 : vector<2x32xf32>
    %134 = math.exp %133 : vector<2x32xf32>
    %cst_42 = arith.constant 1.000000e+00 : f32
    %135 = vector.broadcast %cst_42 : f32 to vector<2x32xf32>
    %136 = arith.addf %135, %134 : vector<2x32xf32>
    %137 = arith.divf %135, %136 : vector<2x32xf32>
    %138 = arith.mulf %131, %125 : vector<2x32xf32>
    %139 = arith.addf %121, %138 : vector<2x32xf32>
    %140 = math.tanh %139 : vector<2x32xf32>
    %141 = arith.subf %117, %140 : vector<2x32xf32>
    %142 = arith.mulf %137, %141 : vector<2x32xf32>
    %143 = arith.addf %140, %142 : vector<2x32xf32>
    %c8 = arith.constant 8 : index
    %c0_43 = arith.constant 0 : index
    %144 = vector.load %arg5[%c8, %c0_43] : memref<16x32xf32, #tpu.memory_space<vmem>>, vector<2x32xf32>
    tpu.vector_store %arg5[%c8, %c0_43], %143 {strides = array<i32>} : memref<16x32xf32, #tpu.memory_space<vmem>>, vector<2x32xf32>,
    %145 = vector.extract_strided_slice %5 {offsets = [10, 0], sizes = [2, 32], strides = [1, 1]} : vector<16x32xf32> to vector<2x32xf32>
    %146 = vector.extract_strided_slice %10 {offsets = [10, 0], sizes = [2, 32], strides = [1, 1]} : vector<16x32xf32> to vector<2x32xf32>
    %147 = vector.extract_strided_slice %15 {offsets = [10, 0], sizes = [2, 32], strides = [1, 1]} : vector<16x32xf32> to vector<2x32xf32>
    %cst_44 = arith.constant dense<0.000000e+00> : vector<2x32xf32>
    %148 = tpu.matmul %143, %16, %cst_44 {dimension_numbers = #tpu.dot_dimension_numbers<[1], [0], [0], [1], [0, 0, 1, 1], [], []>} : vector<2x32xf32>, vector<32x32xf32>, vector<2x32xf32> -> vector<2x32xf32>
    %cst_45 = arith.constant dense<0.000000e+00> : vector<2x32xf32>
    %149 = tpu.matmul %143, %17, %cst_45 {dimension_numbers = #tpu.dot_dimension_numbers<[1], [0], [0], [1], [0, 0, 1, 1], [], []>} : vector<2x32xf32>, vector<32x32xf32>, vector<2x32xf32> -> vector<2x32xf32>
    %cst_46 = arith.constant dense<0.000000e+00> : vector<2x32xf32>
    %150 = tpu.matmul %143, %18, %cst_46 {dimension_numbers = #tpu.dot_dimension_numbers<[1], [0], [0], [1], [0, 0, 1, 1], [], []>} : vector<2x32xf32>, vector<32x32xf32>, vector<2x32xf32> -> vector<2x32xf32>
    %151 = arith.addf %150, %21 : vector<2x32xf32>
    %152 = arith.addf %145, %148 : vector<2x32xf32>
    %153 = arith.negf %152 : vector<2x32xf32>
    %154 = math.exp %153 : vector<2x32xf32>
    %cst_47 = arith.constant 1.000000e+00 : f32
    %155 = vector.broadcast %cst_47 : f32 to vector<2x32xf32>
    %156 = arith.addf %155, %154 : vector<2x32xf32>
    %157 = arith.divf %155, %156 : vector<2x32xf32>
    %158 = arith.addf %146, %149 : vector<2x32xf32>
    %159 = arith.negf %158 : vector<2x32xf32>
    %160 = math.exp %159 : vector<2x32xf32>
    %cst_48 = arith.constant 1.000000e+00 : f32
    %161 = vector.broadcast %cst_48 : f32 to vector<2x32xf32>
    %162 = arith.addf %161, %160 : vector<2x32xf32>
    %163 = arith.divf %161, %162 : vector<2x32xf32>
    %164 = arith.mulf %157, %151 : vector<2x32xf32>
    %165 = arith.addf %147, %164 : vector<2x32xf32>
    %166 = math.tanh %165 : vector<2x32xf32>
    %167 = arith.subf %143, %166 : vector<2x32xf32>
    %168 = arith.mulf %163, %167 : vector<2x32xf32>
    %169 = arith.addf %166, %168 : vector<2x32xf32>
    %c10 = arith.constant 10 : index
    %c0_49 = arith.constant 0 : index
    %170 = vector.load %arg5[%c10, %c0_49] : memref<16x32xf32, #tpu.memory_space<vmem>>, vector<2x32xf32>
    tpu.vector_store %arg5[%c10, %c0_49], %169 {strides = array<i32>} : memref<16x32xf32, #tpu.memory_space<vmem>>, vector<2x32xf32>,
    %171 = vector.extract_strided_slice %5 {offsets = [12, 0], sizes = [2, 32], strides = [1, 1]} : vector<16x32xf32> to vector<2x32xf32>
    %172 = vector.extract_strided_slice %10 {offsets = [12, 0], sizes = [2, 32], strides = [1, 1]} : vector<16x32xf32> to vector<2x32xf32>
    %173 = vector.extract_strided_slice %15 {offsets = [12, 0], sizes = [2, 32], strides = [1, 1]} : vector<16x32xf32> to vector<2x32xf32>
    %cst_50 = arith.constant dense<0.000000e+00> : vector<2x32xf32>
    %174 = tpu.matmul %169, %16, %cst_50 {dimension_numbers = #tpu.dot_dimension_numbers<[1], [0], [0], [1], [0, 0, 1, 1], [], []>} : vector<2x32xf32>, vector<32x32xf32>, vector<2x32xf32> -> vector<2x32xf32>
    %cst_51 = arith.constant dense<0.000000e+00> : vector<2x32xf32>
    %175 = tpu.matmul %169, %17, %cst_51 {dimension_numbers = #tpu.dot_dimension_numbers<[1], [0], [0], [1], [0, 0, 1, 1], [], []>} : vector<2x32xf32>, vector<32x32xf32>, vector<2x32xf32> -> vector<2x32xf32>
    %cst_52 = arith.constant dense<0.000000e+00> : vector<2x32xf32>
    %176 = tpu.matmul %169, %18, %cst_52 {dimension_numbers = #tpu.dot_dimension_numbers<[1], [0], [0], [1], [0, 0, 1, 1], [], []>} : vector<2x32xf32>, vector<32x32xf32>, vector<2x32xf32> -> vector<2x32xf32>
    %177 = arith.addf %176, %21 : vector<2x32xf32>
    %178 = arith.addf %171, %174 : vector<2x32xf32>
    %179 = arith.negf %178 : vector<2x32xf32>
    %180 = math.exp %179 : vector<2x32xf32>
    %cst_53 = arith.constant 1.000000e+00 : f32
    %181 = vector.broadcast %cst_53 : f32 to vector<2x32xf32>
    %182 = arith.addf %181, %180 : vector<2x32xf32>
    %183 = arith.divf %181, %182 : vector<2x32xf32>
    %184 = arith.addf %172, %175 : vector<2x32xf32>
    %185 = arith.negf %184 : vector<2x32xf32>
    %186 = math.exp %185 : vector<2x32xf32>
    %cst_54 = arith.constant 1.000000e+00 : f32
    %187 = vector.broadcast %cst_54 : f32 to vector<2x32xf32>
    %188 = arith.addf %187, %186 : vector<2x32xf32>
    %189 = arith.divf %187, %188 : vector<2x32xf32>
    %190 = arith.mulf %183, %177 : vector<2x32xf32>
    %191 = arith.addf %173, %190 : vector<2x32xf32>
    %192 = math.tanh %191 : vector<2x32xf32>
    %193 = arith.subf %169, %192 : vector<2x32xf32>
    %194 = arith.mulf %189, %193 : vector<2x32xf32>
    %195 = arith.addf %192, %194 : vector<2x32xf32>
    %c12 = arith.constant 12 : index
    %c0_55 = arith.constant 0 : index
    %196 = vector.load %arg5[%c12, %c0_55] : memref<16x32xf32, #tpu.memory_space<vmem>>, vector<2x32xf32>
    tpu.vector_store %arg5[%c12, %c0_55], %195 {strides = array<i32>} : memref<16x32xf32, #tpu.memory_space<vmem>>, vector<2x32xf32>,
    %197 = vector.extract_strided_slice %5 {offsets = [14, 0], sizes = [2, 32], strides = [1, 1]} : vector<16x32xf32> to vector<2x32xf32>
    %198 = vector.extract_strided_slice %10 {offsets = [14, 0], sizes = [2, 32], strides = [1, 1]} : vector<16x32xf32> to vector<2x32xf32>
    %199 = vector.extract_strided_slice %15 {offsets = [14, 0], sizes = [2, 32], strides = [1, 1]} : vector<16x32xf32> to vector<2x32xf32>
    %cst_56 = arith.constant dense<0.000000e+00> : vector<2x32xf32>
    %200 = tpu.matmul %195, %16, %cst_56 {dimension_numbers = #tpu.dot_dimension_numbers<[1], [0], [0], [1], [0, 0, 1, 1], [], []>} : vector<2x32xf32>, vector<32x32xf32>, vector<2x32xf32> -> vector<2x32xf32>
    %cst_57 = arith.constant dense<0.000000e+00> : vector<2x32xf32>
    %201 = tpu.matmul %195, %17, %cst_57 {dimension_numbers = #tpu.dot_dimension_numbers<[1], [0], [0], [1], [0, 0, 1, 1], [], []>} : vector<2x32xf32>, vector<32x32xf32>, vector<2x32xf32> -> vector<2x32xf32>
    %cst_58 = arith.constant dense<0.000000e+00> : vector<2x32xf32>
    %202 = tpu.matmul %195, %18, %cst_58 {dimension_numbers = #tpu.dot_dimension_numbers<[1], [0], [0], [1], [0, 0, 1, 1], [], []>} : vector<2x32xf32>, vector<32x32xf32>, vector<2x32xf32> -> vector<2x32xf32>
    %203 = arith.addf %202, %21 : vector<2x32xf32>
    %204 = arith.addf %197, %200 : vector<2x32xf32>
    %205 = arith.negf %204 : vector<2x32xf32>
    %206 = math.exp %205 : vector<2x32xf32>
    %cst_59 = arith.constant 1.000000e+00 : f32
    %207 = vector.broadcast %cst_59 : f32 to vector<2x32xf32>
    %208 = arith.addf %207, %206 : vector<2x32xf32>
    %209 = arith.divf %207, %208 : vector<2x32xf32>
    %210 = arith.addf %198, %201 : vector<2x32xf32>
    %211 = arith.negf %210 : vector<2x32xf32>
    %212 = math.exp %211 : vector<2x32xf32>
    %cst_60 = arith.constant 1.000000e+00 : f32
    %213 = vector.broadcast %cst_60 : f32 to vector<2x32xf32>
    %214 = arith.addf %213, %212 : vector<2x32xf32>
    %215 = arith.divf %213, %214 : vector<2x32xf32>
    %216 = arith.mulf %209, %203 : vector<2x32xf32>
    %217 = arith.addf %199, %216 : vector<2x32xf32>
    %218 = math.tanh %217 : vector<2x32xf32>
    %219 = arith.subf %195, %218 : vector<2x32xf32>
    %220 = arith.mulf %215, %219 : vector<2x32xf32>
    %221 = arith.addf %218, %220 : vector<2x32xf32>
    %c14 = arith.constant 14 : index
    %c0_61 = arith.constant 0 : index
    %222 = vector.load %arg5[%c14, %c0_61] : memref<16x32xf32, #tpu.memory_space<vmem>>, vector<2x32xf32>
    tpu.vector_store %arg5[%c14, %c0_61], %221 {strides = array<i32>} : memref<16x32xf32, #tpu.memory_space<vmem>>, vector<2x32xf32>,
    %c48 = arith.constant 48 : index
    %c0_62 = arith.constant 0 : index
    %223 = vector.load %arg1[%c48, %c0_62] : memref<480x32xbf16, #tpu.memory_space<vmem>>, vector<16x32xbf16>
    %cst_63 = arith.constant dense<0.000000e+00> : vector<16x32xf32>
    %224 = tpu.matmul %0, %223, %cst_63 {dimension_numbers = #tpu.dot_dimension_numbers<[1], [0], [0], [1], [0, 0, 1, 1], [], []>} : vector<16x16xbf16>, vector<16x32xbf16>, vector<16x32xf32> -> vector<16x32xf32>
    %c388 = arith.constant 388 : index
    %c0_64 = arith.constant 0 : index
    %225 = vector.load %arg2[%c388, %c0_64] : memref<400x32xf32, #tpu.memory_space<vmem>>, vector<1x32xf32>
    %226 = vector.broadcast %225 : vector<1x32xf32> to vector<16x32xf32>
    %227 = arith.addf %224, %226 : vector<16x32xf32>
    %c64_65 = arith.constant 64 : index
    %c0_66 = arith.constant 0 : index
    %228 = vector.load %arg1[%c64_65, %c0_66] : memref<480x32xbf16, #tpu.memory_space<vmem>>, vector<16x32xbf16>
    %cst_67 = arith.constant dense<0.000000e+00> : vector<16x32xf32>
    %229 = tpu.matmul %0, %228, %cst_67 {dimension_numbers = #tpu.dot_dimension_numbers<[1], [0], [0], [1], [0, 0, 1, 1], [], []>} : vector<16x16xbf16>, vector<16x32xbf16>, vector<16x32xf32> -> vector<16x32xf32>
    %c389 = arith.constant 389 : index
    %c0_68 = arith.constant 0 : index
    %230 = vector.load %arg2[%c389, %c0_68] : memref<400x32xf32, #tpu.memory_space<vmem>>, vector<1x32xf32>
    %231 = vector.broadcast %230 : vector<1x32xf32> to vector<16x32xf32>
    %232 = arith.addf %229, %231 : vector<16x32xf32>
    %c80 = arith.constant 80 : index
    %c0_69 = arith.constant 0 : index
    %233 = vector.load %arg1[%c80, %c0_69] : memref<480x32xbf16, #tpu.memory_space<vmem>>, vector<16x32xbf16>
    %cst_70 = arith.constant dense<0.000000e+00> : vector<16x32xf32>
    %234 = tpu.matmul %0, %233, %cst_70 {dimension_numbers = #tpu.dot_dimension_numbers<[1], [0], [0], [1], [0, 0, 1, 1], [], []>} : vector<16x16xbf16>, vector<16x32xbf16>, vector<16x32xf32> -> vector<16x32xf32>
    %c390 = arith.constant 390 : index
    %c0_71 = arith.constant 0 : index
    %235 = vector.load %arg2[%c390, %c0_71] : memref<400x32xf32, #tpu.memory_space<vmem>>, vector<1x32xf32>
    %236 = vector.broadcast %235 : vector<1x32xf32> to vector<16x32xf32>
    %237 = arith.addf %234, %236 : vector<16x32xf32>
    %c96 = arith.constant 96 : index
    %c0_72 = arith.constant 0 : index
    %238 = vector.load %arg2[%c96, %c0_72] : memref<400x32xf32, #tpu.memory_space<vmem>>, vector<32x32xf32>
    %c128 = arith.constant 128 : index
    %c0_73 = arith.constant 0 : index
    %239 = vector.load %arg2[%c128, %c0_73] : memref<400x32xf32, #tpu.memory_space<vmem>>, vector<32x32xf32>
    %c160 = arith.constant 160 : index
    %c0_74 = arith.constant 0 : index
    %240 = vector.load %arg2[%c160, %c0_74] : memref<400x32xf32, #tpu.memory_space<vmem>>, vector<32x32xf32>
    %c391 = arith.constant 391 : index
    %c0_75 = arith.constant 0 : index
    %241 = vector.load %arg2[%c391, %c0_75] : memref<400x32xf32, #tpu.memory_space<vmem>>, vector<1x32xf32>
    %242 = vector.shape_cast %241 : vector<1x32xf32> to vector<1x32xf32>
    %243 = vector.broadcast %242 : vector<1x32xf32> to vector<2x32xf32>
    %244 = vector.extract_strided_slice %227 {offsets = [14, 0], sizes = [2, 32], strides = [1, 1]} : vector<16x32xf32> to vector<2x32xf32>
    %245 = vector.extract_strided_slice %232 {offsets = [14, 0], sizes = [2, 32], strides = [1, 1]} : vector<16x32xf32> to vector<2x32xf32>
    %246 = vector.extract_strided_slice %237 {offsets = [14, 0], sizes = [2, 32], strides = [1, 1]} : vector<16x32xf32> to vector<2x32xf32>
    %247 = arith.negf %244 : vector<2x32xf32>
    %248 = math.exp %247 : vector<2x32xf32>
    %cst_76 = arith.constant 1.000000e+00 : f32
    %249 = vector.broadcast %cst_76 : f32 to vector<2x32xf32>
    %250 = arith.addf %249, %248 : vector<2x32xf32>
    %251 = arith.divf %249, %250 : vector<2x32xf32>
    %252 = arith.negf %245 : vector<2x32xf32>
    %253 = math.exp %252 : vector<2x32xf32>
    %cst_77 = arith.constant 1.000000e+00 : f32
    %254 = vector.broadcast %cst_77 : f32 to vector<2x32xf32>
    %255 = arith.addf %254, %253 : vector<2x32xf32>
    %256 = arith.divf %254, %255 : vector<2x32xf32>
    %257 = arith.mulf %251, %243 : vector<2x32xf32>
    %258 = arith.addf %246, %257 : vector<2x32xf32>
    %259 = math.tanh %258 : vector<2x32xf32>
    %260 = arith.mulf %256, %259 : vector<2x32xf32>
    %261 = arith.subf %259, %260 : vector<2x32xf32>
    %c14_78 = arith.constant 14 : index
    %c0_79 = arith.constant 0 : index
    %262 = vector.load %arg6[%c14_78, %c0_79] : memref<16x32xf32, #tpu.memory_space<vmem>>, vector<2x32xf32>
    tpu.vector_store %arg6[%c14_78, %c0_79], %261 {strides = array<i32>} : memref<16x32xf32, #tpu.memory_space<vmem>>, vector<2x32xf32>,
    %263 = vector.extract_strided_slice %227 {offsets = [12, 0], sizes = [2, 32], strides = [1, 1]} : vector<16x32xf32> to vector<2x32xf32>
    %264 = vector.extract_strided_slice %232 {offsets = [12, 0], sizes = [2, 32], strides = [1, 1]} : vector<16x32xf32> to vector<2x32xf32>
    %265 = vector.extract_strided_slice %237 {offsets = [12, 0], sizes = [2, 32], strides = [1, 1]} : vector<16x32xf32> to vector<2x32xf32>
    %cst_80 = arith.constant dense<0.000000e+00> : vector<2x32xf32>
    %266 = tpu.matmul %261, %238, %cst_80 {dimension_numbers = #tpu.dot_dimension_numbers<[1], [0], [0], [1], [0, 0, 1, 1], [], []>} : vector<2x32xf32>, vector<32x32xf32>, vector<2x32xf32> -> vector<2x32xf32>
    %cst_81 = arith.constant dense<0.000000e+00> : vector<2x32xf32>
    %267 = tpu.matmul %261, %239, %cst_81 {dimension_numbers = #tpu.dot_dimension_numbers<[1], [0], [0], [1], [0, 0, 1, 1], [], []>} : vector<2x32xf32>, vector<32x32xf32>, vector<2x32xf32> -> vector<2x32xf32>
    %cst_82 = arith.constant dense<0.000000e+00> : vector<2x32xf32>
    %268 = tpu.matmul %261, %240, %cst_82 {dimension_numbers = #tpu.dot_dimension_numbers<[1], [0], [0], [1], [0, 0, 1, 1], [], []>} : vector<2x32xf32>, vector<32x32xf32>, vector<2x32xf32> -> vector<2x32xf32>
    %269 = arith.addf %268, %243 : vector<2x32xf32>
    %270 = arith.addf %263, %266 : vector<2x32xf32>
    %271 = arith.negf %270 : vector<2x32xf32>
    %272 = math.exp %271 : vector<2x32xf32>
    %cst_83 = arith.constant 1.000000e+00 : f32
    %273 = vector.broadcast %cst_83 : f32 to vector<2x32xf32>
    %274 = arith.addf %273, %272 : vector<2x32xf32>
    %275 = arith.divf %273, %274 : vector<2x32xf32>
    %276 = arith.addf %264, %267 : vector<2x32xf32>
    %277 = arith.negf %276 : vector<2x32xf32>
    %278 = math.exp %277 : vector<2x32xf32>
    %cst_84 = arith.constant 1.000000e+00 : f32
    %279 = vector.broadcast %cst_84 : f32 to vector<2x32xf32>
    %280 = arith.addf %279, %278 : vector<2x32xf32>
    %281 = arith.divf %279, %280 : vector<2x32xf32>
    %282 = arith.mulf %275, %269 : vector<2x32xf32>
    %283 = arith.addf %265, %282 : vector<2x32xf32>
    %284 = math.tanh %283 : vector<2x32xf32>
    %285 = arith.subf %261, %284 : vector<2x32xf32>
    %286 = arith.mulf %281, %285 : vector<2x32xf32>
    %287 = arith.addf %284, %286 : vector<2x32xf32>
    %c12_85 = arith.constant 12 : index
    %c0_86 = arith.constant 0 : index
    %288 = vector.load %arg6[%c12_85, %c0_86] : memref<16x32xf32, #tpu.memory_space<vmem>>, vector<2x32xf32>
    tpu.vector_store %arg6[%c12_85, %c0_86], %287 {strides = array<i32>} : memref<16x32xf32, #tpu.memory_space<vmem>>, vector<2x32xf32>,
    %289 = vector.extract_strided_slice %227 {offsets = [10, 0], sizes = [2, 32], strides = [1, 1]} : vector<16x32xf32> to vector<2x32xf32>
    %290 = vector.extract_strided_slice %232 {offsets = [10, 0], sizes = [2, 32], strides = [1, 1]} : vector<16x32xf32> to vector<2x32xf32>
    %291 = vector.extract_strided_slice %237 {offsets = [10, 0], sizes = [2, 32], strides = [1, 1]} : vector<16x32xf32> to vector<2x32xf32>
    %cst_87 = arith.constant dense<0.000000e+00> : vector<2x32xf32>
    %292 = tpu.matmul %287, %238, %cst_87 {dimension_numbers = #tpu.dot_dimension_numbers<[1], [0], [0], [1], [0, 0, 1, 1], [], []>} : vector<2x32xf32>, vector<32x32xf32>, vector<2x32xf32> -> vector<2x32xf32>
    %cst_88 = arith.constant dense<0.000000e+00> : vector<2x32xf32>
    %293 = tpu.matmul %287, %239, %cst_88 {dimension_numbers = #tpu.dot_dimension_numbers<[1], [0], [0], [1], [0, 0, 1, 1], [], []>} : vector<2x32xf32>, vector<32x32xf32>, vector<2x32xf32> -> vector<2x32xf32>
    %cst_89 = arith.constant dense<0.000000e+00> : vector<2x32xf32>
    %294 = tpu.matmul %287, %240, %cst_89 {dimension_numbers = #tpu.dot_dimension_numbers<[1], [0], [0], [1], [0, 0, 1, 1], [], []>} : vector<2x32xf32>, vector<32x32xf32>, vector<2x32xf32> -> vector<2x32xf32>
    %295 = arith.addf %294, %243 : vector<2x32xf32>
    %296 = arith.addf %289, %292 : vector<2x32xf32>
    %297 = arith.negf %296 : vector<2x32xf32>
    %298 = math.exp %297 : vector<2x32xf32>
    %cst_90 = arith.constant 1.000000e+00 : f32
    %299 = vector.broadcast %cst_90 : f32 to vector<2x32xf32>
    %300 = arith.addf %299, %298 : vector<2x32xf32>
    %301 = arith.divf %299, %300 : vector<2x32xf32>
    %302 = arith.addf %290, %293 : vector<2x32xf32>
    %303 = arith.negf %302 : vector<2x32xf32>
    %304 = math.exp %303 : vector<2x32xf32>
    %cst_91 = arith.constant 1.000000e+00 : f32
    %305 = vector.broadcast %cst_91 : f32 to vector<2x32xf32>
    %306 = arith.addf %305, %304 : vector<2x32xf32>
    %307 = arith.divf %305, %306 : vector<2x32xf32>
    %308 = arith.mulf %301, %295 : vector<2x32xf32>
    %309 = arith.addf %291, %308 : vector<2x32xf32>
    %310 = math.tanh %309 : vector<2x32xf32>
    %311 = arith.subf %287, %310 : vector<2x32xf32>
    %312 = arith.mulf %307, %311 : vector<2x32xf32>
    %313 = arith.addf %310, %312 : vector<2x32xf32>
    %c10_92 = arith.constant 10 : index
    %c0_93 = arith.constant 0 : index
    %314 = vector.load %arg6[%c10_92, %c0_93] : memref<16x32xf32, #tpu.memory_space<vmem>>, vector<2x32xf32>
    tpu.vector_store %arg6[%c10_92, %c0_93], %313 {strides = array<i32>} : memref<16x32xf32, #tpu.memory_space<vmem>>, vector<2x32xf32>,
    %315 = vector.extract_strided_slice %227 {offsets = [8, 0], sizes = [2, 32], strides = [1, 1]} : vector<16x32xf32> to vector<2x32xf32>
    %316 = vector.extract_strided_slice %232 {offsets = [8, 0], sizes = [2, 32], strides = [1, 1]} : vector<16x32xf32> to vector<2x32xf32>
    %317 = vector.extract_strided_slice %237 {offsets = [8, 0], sizes = [2, 32], strides = [1, 1]} : vector<16x32xf32> to vector<2x32xf32>
    %cst_94 = arith.constant dense<0.000000e+00> : vector<2x32xf32>
    %318 = tpu.matmul %313, %238, %cst_94 {dimension_numbers = #tpu.dot_dimension_numbers<[1], [0], [0], [1], [0, 0, 1, 1], [], []>} : vector<2x32xf32>, vector<32x32xf32>, vector<2x32xf32> -> vector<2x32xf32>
    %cst_95 = arith.constant dense<0.000000e+00> : vector<2x32xf32>
    %319 = tpu.matmul %313, %239, %cst_95 {dimension_numbers = #tpu.dot_dimension_numbers<[1], [0], [0], [1], [0, 0, 1, 1], [], []>} : vector<2x32xf32>, vector<32x32xf32>, vector<2x32xf32> -> vector<2x32xf32>
    %cst_96 = arith.constant dense<0.000000e+00> : vector<2x32xf32>
    %320 = tpu.matmul %313, %240, %cst_96 {dimension_numbers = #tpu.dot_dimension_numbers<[1], [0], [0], [1], [0, 0, 1, 1], [], []>} : vector<2x32xf32>, vector<32x32xf32>, vector<2x32xf32> -> vector<2x32xf32>
    %321 = arith.addf %320, %243 : vector<2x32xf32>
    %322 = arith.addf %315, %318 : vector<2x32xf32>
    %323 = arith.negf %322 : vector<2x32xf32>
    %324 = math.exp %323 : vector<2x32xf32>
    %cst_97 = arith.constant 1.000000e+00 : f32
    %325 = vector.broadcast %cst_97 : f32 to vector<2x32xf32>
    %326 = arith.addf %325, %324 : vector<2x32xf32>
    %327 = arith.divf %325, %326 : vector<2x32xf32>
    %328 = arith.addf %316, %319 : vector<2x32xf32>
    %329 = arith.negf %328 : vector<2x32xf32>
    %330 = math.exp %329 : vector<2x32xf32>
    %cst_98 = arith.constant 1.000000e+00 : f32
    %331 = vector.broadcast %cst_98 : f32 to vector<2x32xf32>
    %332 = arith.addf %331, %330 : vector<2x32xf32>
    %333 = arith.divf %331, %332 : vector<2x32xf32>
    %334 = arith.mulf %327, %321 : vector<2x32xf32>
    %335 = arith.addf %317, %334 : vector<2x32xf32>
    %336 = math.tanh %335 : vector<2x32xf32>
    %337 = arith.subf %313, %336 : vector<2x32xf32>
    %338 = arith.mulf %333, %337 : vector<2x32xf32>
    %339 = arith.addf %336, %338 : vector<2x32xf32>
    %c8_99 = arith.constant 8 : index
    %c0_100 = arith.constant 0 : index
    %340 = vector.load %arg6[%c8_99, %c0_100] : memref<16x32xf32, #tpu.memory_space<vmem>>, vector<2x32xf32>
    tpu.vector_store %arg6[%c8_99, %c0_100], %339 {strides = array<i32>} : memref<16x32xf32, #tpu.memory_space<vmem>>, vector<2x32xf32>,
    %341 = vector.extract_strided_slice %227 {offsets = [6, 0], sizes = [2, 32], strides = [1, 1]} : vector<16x32xf32> to vector<2x32xf32>
    %342 = vector.extract_strided_slice %232 {offsets = [6, 0], sizes = [2, 32], strides = [1, 1]} : vector<16x32xf32> to vector<2x32xf32>
    %343 = vector.extract_strided_slice %237 {offsets = [6, 0], sizes = [2, 32], strides = [1, 1]} : vector<16x32xf32> to vector<2x32xf32>
    %cst_101 = arith.constant dense<0.000000e+00> : vector<2x32xf32>
    %344 = tpu.matmul %339, %238, %cst_101 {dimension_numbers = #tpu.dot_dimension_numbers<[1], [0], [0], [1], [0, 0, 1, 1], [], []>} : vector<2x32xf32>, vector<32x32xf32>, vector<2x32xf32> -> vector<2x32xf32>
    %cst_102 = arith.constant dense<0.000000e+00> : vector<2x32xf32>
    %345 = tpu.matmul %339, %239, %cst_102 {dimension_numbers = #tpu.dot_dimension_numbers<[1], [0], [0], [1], [0, 0, 1, 1], [], []>} : vector<2x32xf32>, vector<32x32xf32>, vector<2x32xf32> -> vector<2x32xf32>
    %cst_103 = arith.constant dense<0.000000e+00> : vector<2x32xf32>
    %346 = tpu.matmul %339, %240, %cst_103 {dimension_numbers = #tpu.dot_dimension_numbers<[1], [0], [0], [1], [0, 0, 1, 1], [], []>} : vector<2x32xf32>, vector<32x32xf32>, vector<2x32xf32> -> vector<2x32xf32>
    %347 = arith.addf %346, %243 : vector<2x32xf32>
    %348 = arith.addf %341, %344 : vector<2x32xf32>
    %349 = arith.negf %348 : vector<2x32xf32>
    %350 = math.exp %349 : vector<2x32xf32>
    %cst_104 = arith.constant 1.000000e+00 : f32
    %351 = vector.broadcast %cst_104 : f32 to vector<2x32xf32>
    %352 = arith.addf %351, %350 : vector<2x32xf32>
    %353 = arith.divf %351, %352 : vector<2x32xf32>
    %354 = arith.addf %342, %345 : vector<2x32xf32>
    %355 = arith.negf %354 : vector<2x32xf32>
    %356 = math.exp %355 : vector<2x32xf32>
    %cst_105 = arith.constant 1.000000e+00 : f32
    %357 = vector.broadcast %cst_105 : f32 to vector<2x32xf32>
    %358 = arith.addf %357, %356 : vector<2x32xf32>
    %359 = arith.divf %357, %358 : vector<2x32xf32>
    %360 = arith.mulf %353, %347 : vector<2x32xf32>
    %361 = arith.addf %343, %360 : vector<2x32xf32>
    %362 = math.tanh %361 : vector<2x32xf32>
    %363 = arith.subf %339, %362 : vector<2x32xf32>
    %364 = arith.mulf %359, %363 : vector<2x32xf32>
    %365 = arith.addf %362, %364 : vector<2x32xf32>
    %c6_106 = arith.constant 6 : index
    %c0_107 = arith.constant 0 : index
    %366 = vector.load %arg6[%c6_106, %c0_107] : memref<16x32xf32, #tpu.memory_space<vmem>>, vector<2x32xf32>
    tpu.vector_store %arg6[%c6_106, %c0_107], %365 {strides = array<i32>} : memref<16x32xf32, #tpu.memory_space<vmem>>, vector<2x32xf32>,
    %367 = vector.extract_strided_slice %227 {offsets = [4, 0], sizes = [2, 32], strides = [1, 1]} : vector<16x32xf32> to vector<2x32xf32>
    %368 = vector.extract_strided_slice %232 {offsets = [4, 0], sizes = [2, 32], strides = [1, 1]} : vector<16x32xf32> to vector<2x32xf32>
    %369 = vector.extract_strided_slice %237 {offsets = [4, 0], sizes = [2, 32], strides = [1, 1]} : vector<16x32xf32> to vector<2x32xf32>
    %cst_108 = arith.constant dense<0.000000e+00> : vector<2x32xf32>
    %370 = tpu.matmul %365, %238, %cst_108 {dimension_numbers = #tpu.dot_dimension_numbers<[1], [0], [0], [1], [0, 0, 1, 1], [], []>} : vector<2x32xf32>, vector<32x32xf32>, vector<2x32xf32> -> vector<2x32xf32>
    %cst_109 = arith.constant dense<0.000000e+00> : vector<2x32xf32>
    %371 = tpu.matmul %365, %239, %cst_109 {dimension_numbers = #tpu.dot_dimension_numbers<[1], [0], [0], [1], [0, 0, 1, 1], [], []>} : vector<2x32xf32>, vector<32x32xf32>, vector<2x32xf32> -> vector<2x32xf32>
    %cst_110 = arith.constant dense<0.000000e+00> : vector<2x32xf32>
    %372 = tpu.matmul %365, %240, %cst_110 {dimension_numbers = #tpu.dot_dimension_numbers<[1], [0], [0], [1], [0, 0, 1, 1], [], []>} : vector<2x32xf32>, vector<32x32xf32>, vector<2x32xf32> -> vector<2x32xf32>
    %373 = arith.addf %372, %243 : vector<2x32xf32>
    %374 = arith.addf %367, %370 : vector<2x32xf32>
    %375 = arith.negf %374 : vector<2x32xf32>
    %376 = math.exp %375 : vector<2x32xf32>
    %cst_111 = arith.constant 1.000000e+00 : f32
    %377 = vector.broadcast %cst_111 : f32 to vector<2x32xf32>
    %378 = arith.addf %377, %376 : vector<2x32xf32>
    %379 = arith.divf %377, %378 : vector<2x32xf32>
    %380 = arith.addf %368, %371 : vector<2x32xf32>
    %381 = arith.negf %380 : vector<2x32xf32>
    %382 = math.exp %381 : vector<2x32xf32>
    %cst_112 = arith.constant 1.000000e+00 : f32
    %383 = vector.broadcast %cst_112 : f32 to vector<2x32xf32>
    %384 = arith.addf %383, %382 : vector<2x32xf32>
    %385 = arith.divf %383, %384 : vector<2x32xf32>
    %386 = arith.mulf %379, %373 : vector<2x32xf32>
    %387 = arith.addf %369, %386 : vector<2x32xf32>
    %388 = math.tanh %387 : vector<2x32xf32>
    %389 = arith.subf %365, %388 : vector<2x32xf32>
    %390 = arith.mulf %385, %389 : vector<2x32xf32>
    %391 = arith.addf %388, %390 : vector<2x32xf32>
    %c4_113 = arith.constant 4 : index
    %c0_114 = arith.constant 0 : index
    %392 = vector.load %arg6[%c4_113, %c0_114] : memref<16x32xf32, #tpu.memory_space<vmem>>, vector<2x32xf32>
    tpu.vector_store %arg6[%c4_113, %c0_114], %391 {strides = array<i32>} : memref<16x32xf32, #tpu.memory_space<vmem>>, vector<2x32xf32>,
    %393 = vector.extract_strided_slice %227 {offsets = [2, 0], sizes = [2, 32], strides = [1, 1]} : vector<16x32xf32> to vector<2x32xf32>
    %394 = vector.extract_strided_slice %232 {offsets = [2, 0], sizes = [2, 32], strides = [1, 1]} : vector<16x32xf32> to vector<2x32xf32>
    %395 = vector.extract_strided_slice %237 {offsets = [2, 0], sizes = [2, 32], strides = [1, 1]} : vector<16x32xf32> to vector<2x32xf32>
    %cst_115 = arith.constant dense<0.000000e+00> : vector<2x32xf32>
    %396 = tpu.matmul %391, %238, %cst_115 {dimension_numbers = #tpu.dot_dimension_numbers<[1], [0], [0], [1], [0, 0, 1, 1], [], []>} : vector<2x32xf32>, vector<32x32xf32>, vector<2x32xf32> -> vector<2x32xf32>
    %cst_116 = arith.constant dense<0.000000e+00> : vector<2x32xf32>
    %397 = tpu.matmul %391, %239, %cst_116 {dimension_numbers = #tpu.dot_dimension_numbers<[1], [0], [0], [1], [0, 0, 1, 1], [], []>} : vector<2x32xf32>, vector<32x32xf32>, vector<2x32xf32> -> vector<2x32xf32>
    %cst_117 = arith.constant dense<0.000000e+00> : vector<2x32xf32>
    %398 = tpu.matmul %391, %240, %cst_117 {dimension_numbers = #tpu.dot_dimension_numbers<[1], [0], [0], [1], [0, 0, 1, 1], [], []>} : vector<2x32xf32>, vector<32x32xf32>, vector<2x32xf32> -> vector<2x32xf32>
    %399 = arith.addf %398, %243 : vector<2x32xf32>
    %400 = arith.addf %393, %396 : vector<2x32xf32>
    %401 = arith.negf %400 : vector<2x32xf32>
    %402 = math.exp %401 : vector<2x32xf32>
    %cst_118 = arith.constant 1.000000e+00 : f32
    %403 = vector.broadcast %cst_118 : f32 to vector<2x32xf32>
    %404 = arith.addf %403, %402 : vector<2x32xf32>
    %405 = arith.divf %403, %404 : vector<2x32xf32>
    %406 = arith.addf %394, %397 : vector<2x32xf32>
    %407 = arith.negf %406 : vector<2x32xf32>
    %408 = math.exp %407 : vector<2x32xf32>
    %cst_119 = arith.constant 1.000000e+00 : f32
    %409 = vector.broadcast %cst_119 : f32 to vector<2x32xf32>
    %410 = arith.addf %409, %408 : vector<2x32xf32>
    %411 = arith.divf %409, %410 : vector<2x32xf32>
    %412 = arith.mulf %405, %399 : vector<2x32xf32>
    %413 = arith.addf %395, %412 : vector<2x32xf32>
    %414 = math.tanh %413 : vector<2x32xf32>
    %415 = arith.subf %391, %414 : vector<2x32xf32>
    %416 = arith.mulf %411, %415 : vector<2x32xf32>
    %417 = arith.addf %414, %416 : vector<2x32xf32>
    %c2_120 = arith.constant 2 : index
    %c0_121 = arith.constant 0 : index
    %418 = vector.load %arg6[%c2_120, %c0_121] : memref<16x32xf32, #tpu.memory_space<vmem>>, vector<2x32xf32>
    tpu.vector_store %arg6[%c2_120, %c0_121], %417 {strides = array<i32>} : memref<16x32xf32, #tpu.memory_space<vmem>>, vector<2x32xf32>,
    %419 = vector.extract_strided_slice %227 {offsets = [0, 0], sizes = [2, 32], strides = [1, 1]} : vector<16x32xf32> to vector<2x32xf32>
    %420 = vector.extract_strided_slice %232 {offsets = [0, 0], sizes = [2, 32], strides = [1, 1]} : vector<16x32xf32> to vector<2x32xf32>
    %421 = vector.extract_strided_slice %237 {offsets = [0, 0], sizes = [2, 32], strides = [1, 1]} : vector<16x32xf32> to vector<2x32xf32>
    %cst_122 = arith.constant dense<0.000000e+00> : vector<2x32xf32>
    %422 = tpu.matmul %417, %238, %cst_122 {dimension_numbers = #tpu.dot_dimension_numbers<[1], [0], [0], [1], [0, 0, 1, 1], [], []>} : vector<2x32xf32>, vector<32x32xf32>, vector<2x32xf32> -> vector<2x32xf32>
    %cst_123 = arith.constant dense<0.000000e+00> : vector<2x32xf32>
    %423 = tpu.matmul %417, %239, %cst_123 {dimension_numbers = #tpu.dot_dimension_numbers<[1], [0], [0], [1], [0, 0, 1, 1], [], []>} : vector<2x32xf32>, vector<32x32xf32>, vector<2x32xf32> -> vector<2x32xf32>
    %cst_124 = arith.constant dense<0.000000e+00> : vector<2x32xf32>
    %424 = tpu.matmul %417, %240, %cst_124 {dimension_numbers = #tpu.dot_dimension_numbers<[1], [0], [0], [1], [0, 0, 1, 1], [], []>} : vector<2x32xf32>, vector<32x32xf32>, vector<2x32xf32> -> vector<2x32xf32>
    %425 = arith.addf %424, %243 : vector<2x32xf32>
    %426 = arith.addf %419, %422 : vector<2x32xf32>
    %427 = arith.negf %426 : vector<2x32xf32>
    %428 = math.exp %427 : vector<2x32xf32>
    %cst_125 = arith.constant 1.000000e+00 : f32
    %429 = vector.broadcast %cst_125 : f32 to vector<2x32xf32>
    %430 = arith.addf %429, %428 : vector<2x32xf32>
    %431 = arith.divf %429, %430 : vector<2x32xf32>
    %432 = arith.addf %420, %423 : vector<2x32xf32>
    %433 = arith.negf %432 : vector<2x32xf32>
    %434 = math.exp %433 : vector<2x32xf32>
    %cst_126 = arith.constant 1.000000e+00 : f32
    %435 = vector.broadcast %cst_126 : f32 to vector<2x32xf32>
    %436 = arith.addf %435, %434 : vector<2x32xf32>
    %437 = arith.divf %435, %436 : vector<2x32xf32>
    %438 = arith.mulf %431, %425 : vector<2x32xf32>
    %439 = arith.addf %421, %438 : vector<2x32xf32>
    %440 = math.tanh %439 : vector<2x32xf32>
    %441 = arith.subf %417, %440 : vector<2x32xf32>
    %442 = arith.mulf %437, %441 : vector<2x32xf32>
    %443 = arith.addf %440, %442 : vector<2x32xf32>
    %c0_127 = arith.constant 0 : index
    %c0_128 = arith.constant 0 : index
    %444 = vector.load %arg6[%c0_127, %c0_128] : memref<16x32xf32, #tpu.memory_space<vmem>>, vector<2x32xf32>
    tpu.vector_store %arg6[%c0_127, %c0_128], %443 {strides = array<i32>} : memref<16x32xf32, #tpu.memory_space<vmem>>, vector<2x32xf32>,
    %c0_129 = arith.constant 0 : index
    %c0_130 = arith.constant 0 : index
    %445 = vector.load %arg5[%c0_129, %c0_130] : memref<16x32xf32, #tpu.memory_space<vmem>>, vector<16x32xf32>
    %446 = arith.truncf %445 : vector<16x32xf32> to vector<16x32xbf16>
    %c0_131 = arith.constant 0 : index
    %c0_132 = arith.constant 0 : index
    %447 = vector.load %arg6[%c0_131, %c0_132] : memref<16x32xf32, #tpu.memory_space<vmem>>, vector<16x32xf32>
    %448 = arith.truncf %447 : vector<16x32xf32> to vector<16x32xbf16>
    %c96_133 = arith.constant 96 : index
    %c0_134 = arith.constant 0 : index
    %449 = vector.load %arg1[%c96_133, %c0_134] : memref<480x32xbf16, #tpu.memory_space<vmem>>, vector<32x32xbf16>
    %cst_135 = arith.constant dense<0.000000e+00> : vector<16x32xf32>
    %450 = tpu.matmul %446, %449, %cst_135 {dimension_numbers = #tpu.dot_dimension_numbers<[1], [0], [0], [1], [0, 0, 1, 1], [], []>} : vector<16x32xbf16>, vector<32x32xbf16>, vector<16x32xf32> -> vector<16x32xf32>
    %c128_136 = arith.constant 128 : index
    %c0_137 = arith.constant 0 : index
    %451 = vector.load %arg1[%c128_136, %c0_137] : memref<480x32xbf16, #tpu.memory_space<vmem>>, vector<32x32xbf16>
    %cst_138 = arith.constant dense<0.000000e+00> : vector<16x32xf32>
    %452 = tpu.matmul %448, %451, %cst_138 {dimension_numbers = #tpu.dot_dimension_numbers<[1], [0], [0], [1], [0, 0, 1, 1], [], []>} : vector<16x32xbf16>, vector<32x32xbf16>, vector<16x32xf32> -> vector<16x32xf32>
    %453 = arith.addf %450, %452 : vector<16x32xf32>
    %c392 = arith.constant 392 : index
    %c0_139 = arith.constant 0 : index
    %454 = vector.load %arg2[%c392, %c0_139] : memref<400x32xf32, #tpu.memory_space<vmem>>, vector<1x32xf32>
    %455 = vector.broadcast %454 : vector<1x32xf32> to vector<16x32xf32>
    %456 = arith.addf %453, %455 : vector<16x32xf32>
    %c160_140 = arith.constant 160 : index
    %c0_141 = arith.constant 0 : index
    %457 = vector.load %arg1[%c160_140, %c0_141] : memref<480x32xbf16, #tpu.memory_space<vmem>>, vector<32x32xbf16>
    %cst_142 = arith.constant dense<0.000000e+00> : vector<16x32xf32>
    %458 = tpu.matmul %446, %457, %cst_142 {dimension_numbers = #tpu.dot_dimension_numbers<[1], [0], [0], [1], [0, 0, 1, 1], [], []>} : vector<16x32xbf16>, vector<32x32xbf16>, vector<16x32xf32> -> vector<16x32xf32>
    %c192 = arith.constant 192 : index
    %c0_143 = arith.constant 0 : index
    %459 = vector.load %arg1[%c192, %c0_143] : memref<480x32xbf16, #tpu.memory_space<vmem>>, vector<32x32xbf16>
    %cst_144 = arith.constant dense<0.000000e+00> : vector<16x32xf32>
    %460 = tpu.matmul %448, %459, %cst_144 {dimension_numbers = #tpu.dot_dimension_numbers<[1], [0], [0], [1], [0, 0, 1, 1], [], []>} : vector<16x32xbf16>, vector<32x32xbf16>, vector<16x32xf32> -> vector<16x32xf32>
    %461 = arith.addf %458, %460 : vector<16x32xf32>
    %c393 = arith.constant 393 : index
    %c0_145 = arith.constant 0 : index
    %462 = vector.load %arg2[%c393, %c0_145] : memref<400x32xf32, #tpu.memory_space<vmem>>, vector<1x32xf32>
    %463 = vector.broadcast %462 : vector<1x32xf32> to vector<16x32xf32>
    %464 = arith.addf %461, %463 : vector<16x32xf32>
    %c224 = arith.constant 224 : index
    %c0_146 = arith.constant 0 : index
    %465 = vector.load %arg1[%c224, %c0_146] : memref<480x32xbf16, #tpu.memory_space<vmem>>, vector<32x32xbf16>
    %cst_147 = arith.constant dense<0.000000e+00> : vector<16x32xf32>
    %466 = tpu.matmul %446, %465, %cst_147 {dimension_numbers = #tpu.dot_dimension_numbers<[1], [0], [0], [1], [0, 0, 1, 1], [], []>} : vector<16x32xbf16>, vector<32x32xbf16>, vector<16x32xf32> -> vector<16x32xf32>
    %c256 = arith.constant 256 : index
    %c0_148 = arith.constant 0 : index
    %467 = vector.load %arg1[%c256, %c0_148] : memref<480x32xbf16, #tpu.memory_space<vmem>>, vector<32x32xbf16>
    %cst_149 = arith.constant dense<0.000000e+00> : vector<16x32xf32>
    %468 = tpu.matmul %448, %467, %cst_149 {dimension_numbers = #tpu.dot_dimension_numbers<[1], [0], [0], [1], [0, 0, 1, 1], [], []>} : vector<16x32xbf16>, vector<32x32xbf16>, vector<16x32xf32> -> vector<16x32xf32>
    %469 = arith.addf %466, %468 : vector<16x32xf32>
    %c394 = arith.constant 394 : index
    %c0_150 = arith.constant 0 : index
    %470 = vector.load %arg2[%c394, %c0_150] : memref<400x32xf32, #tpu.memory_space<vmem>>, vector<1x32xf32>
    %471 = vector.broadcast %470 : vector<1x32xf32> to vector<16x32xf32>
    %472 = arith.addf %469, %471 : vector<16x32xf32>
    %c192_151 = arith.constant 192 : index
    %c0_152 = arith.constant 0 : index
    %473 = vector.load %arg2[%c192_151, %c0_152] : memref<400x32xf32, #tpu.memory_space<vmem>>, vector<32x32xf32>
    %c224_153 = arith.constant 224 : index
    %c0_154 = arith.constant 0 : index
    %474 = vector.load %arg2[%c224_153, %c0_154] : memref<400x32xf32, #tpu.memory_space<vmem>>, vector<32x32xf32>
    %c256_155 = arith.constant 256 : index
    %c0_156 = arith.constant 0 : index
    %475 = vector.load %arg2[%c256_155, %c0_156] : memref<400x32xf32, #tpu.memory_space<vmem>>, vector<32x32xf32>
    %c395 = arith.constant 395 : index
    %c0_157 = arith.constant 0 : index
    %476 = vector.load %arg2[%c395, %c0_157] : memref<400x32xf32, #tpu.memory_space<vmem>>, vector<1x32xf32>
    %477 = vector.shape_cast %476 : vector<1x32xf32> to vector<1x32xf32>
    %478 = vector.broadcast %477 : vector<1x32xf32> to vector<2x32xf32>
    %cst_158 = arith.constant 0.000000e+00 : f32
    %479 = vector.broadcast %cst_158 : f32 to vector<2x32xf32>
    %480 = vector.extract_strided_slice %456 {offsets = [0, 0], sizes = [2, 32], strides = [1, 1]} : vector<16x32xf32> to vector<2x32xf32>
    %481 = vector.extract_strided_slice %464 {offsets = [0, 0], sizes = [2, 32], strides = [1, 1]} : vector<16x32xf32> to vector<2x32xf32>
    %482 = vector.extract_strided_slice %472 {offsets = [0, 0], sizes = [2, 32], strides = [1, 1]} : vector<16x32xf32> to vector<2x32xf32>
    %483 = arith.negf %480 : vector<2x32xf32>
    %484 = math.exp %483 : vector<2x32xf32>
    %cst_159 = arith.constant 1.000000e+00 : f32
    %485 = vector.broadcast %cst_159 : f32 to vector<2x32xf32>
    %486 = arith.addf %485, %484 : vector<2x32xf32>
    %487 = arith.divf %485, %486 : vector<2x32xf32>
    %488 = arith.negf %481 : vector<2x32xf32>
    %489 = math.exp %488 : vector<2x32xf32>
    %cst_160 = arith.constant 1.000000e+00 : f32
    %490 = vector.broadcast %cst_160 : f32 to vector<2x32xf32>
    %491 = arith.addf %490, %489 : vector<2x32xf32>
    %492 = arith.divf %490, %491 : vector<2x32xf32>
    %493 = arith.mulf %487, %478 : vector<2x32xf32>
    %494 = arith.addf %482, %493 : vector<2x32xf32>
    %495 = math.tanh %494 : vector<2x32xf32>
    %496 = arith.mulf %492, %495 : vector<2x32xf32>
    %497 = arith.subf %495, %496 : vector<2x32xf32>
    %498 = arith.addf %479, %497 : vector<2x32xf32>
    %499 = vector.extract_strided_slice %456 {offsets = [2, 0], sizes = [2, 32], strides = [1, 1]} : vector<16x32xf32> to vector<2x32xf32>
    %500 = vector.extract_strided_slice %464 {offsets = [2, 0], sizes = [2, 32], strides = [1, 1]} : vector<16x32xf32> to vector<2x32xf32>
    %501 = vector.extract_strided_slice %472 {offsets = [2, 0], sizes = [2, 32], strides = [1, 1]} : vector<16x32xf32> to vector<2x32xf32>
    %cst_161 = arith.constant dense<0.000000e+00> : vector<2x32xf32>
    %502 = tpu.matmul %497, %473, %cst_161 {dimension_numbers = #tpu.dot_dimension_numbers<[1], [0], [0], [1], [0, 0, 1, 1], [], []>} : vector<2x32xf32>, vector<32x32xf32>, vector<2x32xf32> -> vector<2x32xf32>
    %cst_162 = arith.constant dense<0.000000e+00> : vector<2x32xf32>
    %503 = tpu.matmul %497, %474, %cst_162 {dimension_numbers = #tpu.dot_dimension_numbers<[1], [0], [0], [1], [0, 0, 1, 1], [], []>} : vector<2x32xf32>, vector<32x32xf32>, vector<2x32xf32> -> vector<2x32xf32>
    %cst_163 = arith.constant dense<0.000000e+00> : vector<2x32xf32>
    %504 = tpu.matmul %497, %475, %cst_163 {dimension_numbers = #tpu.dot_dimension_numbers<[1], [0], [0], [1], [0, 0, 1, 1], [], []>} : vector<2x32xf32>, vector<32x32xf32>, vector<2x32xf32> -> vector<2x32xf32>
    %505 = arith.addf %504, %478 : vector<2x32xf32>
    %506 = arith.addf %499, %502 : vector<2x32xf32>
    %507 = arith.negf %506 : vector<2x32xf32>
    %508 = math.exp %507 : vector<2x32xf32>
    %cst_164 = arith.constant 1.000000e+00 : f32
    %509 = vector.broadcast %cst_164 : f32 to vector<2x32xf32>
    %510 = arith.addf %509, %508 : vector<2x32xf32>
    %511 = arith.divf %509, %510 : vector<2x32xf32>
    %512 = arith.addf %500, %503 : vector<2x32xf32>
    %513 = arith.negf %512 : vector<2x32xf32>
    %514 = math.exp %513 : vector<2x32xf32>
    %cst_165 = arith.constant 1.000000e+00 : f32
    %515 = vector.broadcast %cst_165 : f32 to vector<2x32xf32>
    %516 = arith.addf %515, %514 : vector<2x32xf32>
    %517 = arith.divf %515, %516 : vector<2x32xf32>
    %518 = arith.mulf %511, %505 : vector<2x32xf32>
    %519 = arith.addf %501, %518 : vector<2x32xf32>
    %520 = math.tanh %519 : vector<2x32xf32>
    %521 = arith.subf %497, %520 : vector<2x32xf32>
    %522 = arith.mulf %517, %521 : vector<2x32xf32>
    %523 = arith.addf %520, %522 : vector<2x32xf32>
    %524 = arith.addf %498, %523 : vector<2x32xf32>
    %525 = vector.extract_strided_slice %456 {offsets = [4, 0], sizes = [2, 32], strides = [1, 1]} : vector<16x32xf32> to vector<2x32xf32>
    %526 = vector.extract_strided_slice %464 {offsets = [4, 0], sizes = [2, 32], strides = [1, 1]} : vector<16x32xf32> to vector<2x32xf32>
    %527 = vector.extract_strided_slice %472 {offsets = [4, 0], sizes = [2, 32], strides = [1, 1]} : vector<16x32xf32> to vector<2x32xf32>
    %cst_166 = arith.constant dense<0.000000e+00> : vector<2x32xf32>
    %528 = tpu.matmul %523, %473, %cst_166 {dimension_numbers = #tpu.dot_dimension_numbers<[1], [0], [0], [1], [0, 0, 1, 1], [], []>} : vector<2x32xf32>, vector<32x32xf32>, vector<2x32xf32> -> vector<2x32xf32>
    %cst_167 = arith.constant dense<0.000000e+00> : vector<2x32xf32>
    %529 = tpu.matmul %523, %474, %cst_167 {dimension_numbers = #tpu.dot_dimension_numbers<[1], [0], [0], [1], [0, 0, 1, 1], [], []>} : vector<2x32xf32>, vector<32x32xf32>, vector<2x32xf32> -> vector<2x32xf32>
    %cst_168 = arith.constant dense<0.000000e+00> : vector<2x32xf32>
    %530 = tpu.matmul %523, %475, %cst_168 {dimension_numbers = #tpu.dot_dimension_numbers<[1], [0], [0], [1], [0, 0, 1, 1], [], []>} : vector<2x32xf32>, vector<32x32xf32>, vector<2x32xf32> -> vector<2x32xf32>
    %531 = arith.addf %530, %478 : vector<2x32xf32>
    %532 = arith.addf %525, %528 : vector<2x32xf32>
    %533 = arith.negf %532 : vector<2x32xf32>
    %534 = math.exp %533 : vector<2x32xf32>
    %cst_169 = arith.constant 1.000000e+00 : f32
    %535 = vector.broadcast %cst_169 : f32 to vector<2x32xf32>
    %536 = arith.addf %535, %534 : vector<2x32xf32>
    %537 = arith.divf %535, %536 : vector<2x32xf32>
    %538 = arith.addf %526, %529 : vector<2x32xf32>
    %539 = arith.negf %538 : vector<2x32xf32>
    %540 = math.exp %539 : vector<2x32xf32>
    %cst_170 = arith.constant 1.000000e+00 : f32
    %541 = vector.broadcast %cst_170 : f32 to vector<2x32xf32>
    %542 = arith.addf %541, %540 : vector<2x32xf32>
    %543 = arith.divf %541, %542 : vector<2x32xf32>
    %544 = arith.mulf %537, %531 : vector<2x32xf32>
    %545 = arith.addf %527, %544 : vector<2x32xf32>
    %546 = math.tanh %545 : vector<2x32xf32>
    %547 = arith.subf %523, %546 : vector<2x32xf32>
    %548 = arith.mulf %543, %547 : vector<2x32xf32>
    %549 = arith.addf %546, %548 : vector<2x32xf32>
    %550 = arith.addf %524, %549 : vector<2x32xf32>
    %551 = vector.extract_strided_slice %456 {offsets = [6, 0], sizes = [2, 32], strides = [1, 1]} : vector<16x32xf32> to vector<2x32xf32>
    %552 = vector.extract_strided_slice %464 {offsets = [6, 0], sizes = [2, 32], strides = [1, 1]} : vector<16x32xf32> to vector<2x32xf32>
    %553 = vector.extract_strided_slice %472 {offsets = [6, 0], sizes = [2, 32], strides = [1, 1]} : vector<16x32xf32> to vector<2x32xf32>
    %cst_171 = arith.constant dense<0.000000e+00> : vector<2x32xf32>
    %554 = tpu.matmul %549, %473, %cst_171 {dimension_numbers = #tpu.dot_dimension_numbers<[1], [0], [0], [1], [0, 0, 1, 1], [], []>} : vector<2x32xf32>, vector<32x32xf32>, vector<2x32xf32> -> vector<2x32xf32>
    %cst_172 = arith.constant dense<0.000000e+00> : vector<2x32xf32>
    %555 = tpu.matmul %549, %474, %cst_172 {dimension_numbers = #tpu.dot_dimension_numbers<[1], [0], [0], [1], [0, 0, 1, 1], [], []>} : vector<2x32xf32>, vector<32x32xf32>, vector<2x32xf32> -> vector<2x32xf32>
    %cst_173 = arith.constant dense<0.000000e+00> : vector<2x32xf32>
    %556 = tpu.matmul %549, %475, %cst_173 {dimension_numbers = #tpu.dot_dimension_numbers<[1], [0], [0], [1], [0, 0, 1, 1], [], []>} : vector<2x32xf32>, vector<32x32xf32>, vector<2x32xf32> -> vector<2x32xf32>
    %557 = arith.addf %556, %478 : vector<2x32xf32>
    %558 = arith.addf %551, %554 : vector<2x32xf32>
    %559 = arith.negf %558 : vector<2x32xf32>
    %560 = math.exp %559 : vector<2x32xf32>
    %cst_174 = arith.constant 1.000000e+00 : f32
    %561 = vector.broadcast %cst_174 : f32 to vector<2x32xf32>
    %562 = arith.addf %561, %560 : vector<2x32xf32>
    %563 = arith.divf %561, %562 : vector<2x32xf32>
    %564 = arith.addf %552, %555 : vector<2x32xf32>
    %565 = arith.negf %564 : vector<2x32xf32>
    %566 = math.exp %565 : vector<2x32xf32>
    %cst_175 = arith.constant 1.000000e+00 : f32
    %567 = vector.broadcast %cst_175 : f32 to vector<2x32xf32>
    %568 = arith.addf %567, %566 : vector<2x32xf32>
    %569 = arith.divf %567, %568 : vector<2x32xf32>
    %570 = arith.mulf %563, %557 : vector<2x32xf32>
    %571 = arith.addf %553, %570 : vector<2x32xf32>
    %572 = math.tanh %571 : vector<2x32xf32>
    %573 = arith.subf %549, %572 : vector<2x32xf32>
    %574 = arith.mulf %569, %573 : vector<2x32xf32>
    %575 = arith.addf %572, %574 : vector<2x32xf32>
    %576 = arith.addf %550, %575 : vector<2x32xf32>
    %577 = vector.extract_strided_slice %456 {offsets = [8, 0], sizes = [2, 32], strides = [1, 1]} : vector<16x32xf32> to vector<2x32xf32>
    %578 = vector.extract_strided_slice %464 {offsets = [8, 0], sizes = [2, 32], strides = [1, 1]} : vector<16x32xf32> to vector<2x32xf32>
    %579 = vector.extract_strided_slice %472 {offsets = [8, 0], sizes = [2, 32], strides = [1, 1]} : vector<16x32xf32> to vector<2x32xf32>
    %cst_176 = arith.constant dense<0.000000e+00> : vector<2x32xf32>
    %580 = tpu.matmul %575, %473, %cst_176 {dimension_numbers = #tpu.dot_dimension_numbers<[1], [0], [0], [1], [0, 0, 1, 1], [], []>} : vector<2x32xf32>, vector<32x32xf32>, vector<2x32xf32> -> vector<2x32xf32>
    %cst_177 = arith.constant dense<0.000000e+00> : vector<2x32xf32>
    %581 = tpu.matmul %575, %474, %cst_177 {dimension_numbers = #tpu.dot_dimension_numbers<[1], [0], [0], [1], [0, 0, 1, 1], [], []>} : vector<2x32xf32>, vector<32x32xf32>, vector<2x32xf32> -> vector<2x32xf32>
    %cst_178 = arith.constant dense<0.000000e+00> : vector<2x32xf32>
    %582 = tpu.matmul %575, %475, %cst_178 {dimension_numbers = #tpu.dot_dimension_numbers<[1], [0], [0], [1], [0, 0, 1, 1], [], []>} : vector<2x32xf32>, vector<32x32xf32>, vector<2x32xf32> -> vector<2x32xf32>
    %583 = arith.addf %582, %478 : vector<2x32xf32>
    %584 = arith.addf %577, %580 : vector<2x32xf32>
    %585 = arith.negf %584 : vector<2x32xf32>
    %586 = math.exp %585 : vector<2x32xf32>
    %cst_179 = arith.constant 1.000000e+00 : f32
    %587 = vector.broadcast %cst_179 : f32 to vector<2x32xf32>
    %588 = arith.addf %587, %586 : vector<2x32xf32>
    %589 = arith.divf %587, %588 : vector<2x32xf32>
    %590 = arith.addf %578, %581 : vector<2x32xf32>
    %591 = arith.negf %590 : vector<2x32xf32>
    %592 = math.exp %591 : vector<2x32xf32>
    %cst_180 = arith.constant 1.000000e+00 : f32
    %593 = vector.broadcast %cst_180 : f32 to vector<2x32xf32>
    %594 = arith.addf %593, %592 : vector<2x32xf32>
    %595 = arith.divf %593, %594 : vector<2x32xf32>
    %596 = arith.mulf %589, %583 : vector<2x32xf32>
    %597 = arith.addf %579, %596 : vector<2x32xf32>
    %598 = math.tanh %597 : vector<2x32xf32>
    %599 = arith.subf %575, %598 : vector<2x32xf32>
    %600 = arith.mulf %595, %599 : vector<2x32xf32>
    %601 = arith.addf %598, %600 : vector<2x32xf32>
    %602 = arith.addf %576, %601 : vector<2x32xf32>
    %603 = vector.extract_strided_slice %456 {offsets = [10, 0], sizes = [2, 32], strides = [1, 1]} : vector<16x32xf32> to vector<2x32xf32>
    %604 = vector.extract_strided_slice %464 {offsets = [10, 0], sizes = [2, 32], strides = [1, 1]} : vector<16x32xf32> to vector<2x32xf32>
    %605 = vector.extract_strided_slice %472 {offsets = [10, 0], sizes = [2, 32], strides = [1, 1]} : vector<16x32xf32> to vector<2x32xf32>
    %cst_181 = arith.constant dense<0.000000e+00> : vector<2x32xf32>
    %606 = tpu.matmul %601, %473, %cst_181 {dimension_numbers = #tpu.dot_dimension_numbers<[1], [0], [0], [1], [0, 0, 1, 1], [], []>} : vector<2x32xf32>, vector<32x32xf32>, vector<2x32xf32> -> vector<2x32xf32>
    %cst_182 = arith.constant dense<0.000000e+00> : vector<2x32xf32>
    %607 = tpu.matmul %601, %474, %cst_182 {dimension_numbers = #tpu.dot_dimension_numbers<[1], [0], [0], [1], [0, 0, 1, 1], [], []>} : vector<2x32xf32>, vector<32x32xf32>, vector<2x32xf32> -> vector<2x32xf32>
    %cst_183 = arith.constant dense<0.000000e+00> : vector<2x32xf32>
    %608 = tpu.matmul %601, %475, %cst_183 {dimension_numbers = #tpu.dot_dimension_numbers<[1], [0], [0], [1], [0, 0, 1, 1], [], []>} : vector<2x32xf32>, vector<32x32xf32>, vector<2x32xf32> -> vector<2x32xf32>
    %609 = arith.addf %608, %478 : vector<2x32xf32>
    %610 = arith.addf %603, %606 : vector<2x32xf32>
    %611 = arith.negf %610 : vector<2x32xf32>
    %612 = math.exp %611 : vector<2x32xf32>
    %cst_184 = arith.constant 1.000000e+00 : f32
    %613 = vector.broadcast %cst_184 : f32 to vector<2x32xf32>
    %614 = arith.addf %613, %612 : vector<2x32xf32>
    %615 = arith.divf %613, %614 : vector<2x32xf32>
    %616 = arith.addf %604, %607 : vector<2x32xf32>
    %617 = arith.negf %616 : vector<2x32xf32>
    %618 = math.exp %617 : vector<2x32xf32>
    %cst_185 = arith.constant 1.000000e+00 : f32
    %619 = vector.broadcast %cst_185 : f32 to vector<2x32xf32>
    %620 = arith.addf %619, %618 : vector<2x32xf32>
    %621 = arith.divf %619, %620 : vector<2x32xf32>
    %622 = arith.mulf %615, %609 : vector<2x32xf32>
    %623 = arith.addf %605, %622 : vector<2x32xf32>
    %624 = math.tanh %623 : vector<2x32xf32>
    %625 = arith.subf %601, %624 : vector<2x32xf32>
    %626 = arith.mulf %621, %625 : vector<2x32xf32>
    %627 = arith.addf %624, %626 : vector<2x32xf32>
    %628 = arith.addf %602, %627 : vector<2x32xf32>
    %629 = vector.extract_strided_slice %456 {offsets = [12, 0], sizes = [2, 32], strides = [1, 1]} : vector<16x32xf32> to vector<2x32xf32>
    %630 = vector.extract_strided_slice %464 {offsets = [12, 0], sizes = [2, 32], strides = [1, 1]} : vector<16x32xf32> to vector<2x32xf32>
    %631 = vector.extract_strided_slice %472 {offsets = [12, 0], sizes = [2, 32], strides = [1, 1]} : vector<16x32xf32> to vector<2x32xf32>
    %cst_186 = arith.constant dense<0.000000e+00> : vector<2x32xf32>
    %632 = tpu.matmul %627, %473, %cst_186 {dimension_numbers = #tpu.dot_dimension_numbers<[1], [0], [0], [1], [0, 0, 1, 1], [], []>} : vector<2x32xf32>, vector<32x32xf32>, vector<2x32xf32> -> vector<2x32xf32>
    %cst_187 = arith.constant dense<0.000000e+00> : vector<2x32xf32>
    %633 = tpu.matmul %627, %474, %cst_187 {dimension_numbers = #tpu.dot_dimension_numbers<[1], [0], [0], [1], [0, 0, 1, 1], [], []>} : vector<2x32xf32>, vector<32x32xf32>, vector<2x32xf32> -> vector<2x32xf32>
    %cst_188 = arith.constant dense<0.000000e+00> : vector<2x32xf32>
    %634 = tpu.matmul %627, %475, %cst_188 {dimension_numbers = #tpu.dot_dimension_numbers<[1], [0], [0], [1], [0, 0, 1, 1], [], []>} : vector<2x32xf32>, vector<32x32xf32>, vector<2x32xf32> -> vector<2x32xf32>
    %635 = arith.addf %634, %478 : vector<2x32xf32>
    %636 = arith.addf %629, %632 : vector<2x32xf32>
    %637 = arith.negf %636 : vector<2x32xf32>
    %638 = math.exp %637 : vector<2x32xf32>
    %cst_189 = arith.constant 1.000000e+00 : f32
    %639 = vector.broadcast %cst_189 : f32 to vector<2x32xf32>
    %640 = arith.addf %639, %638 : vector<2x32xf32>
    %641 = arith.divf %639, %640 : vector<2x32xf32>
    %642 = arith.addf %630, %633 : vector<2x32xf32>
    %643 = arith.negf %642 : vector<2x32xf32>
    %644 = math.exp %643 : vector<2x32xf32>
    %cst_190 = arith.constant 1.000000e+00 : f32
    %645 = vector.broadcast %cst_190 : f32 to vector<2x32xf32>
    %646 = arith.addf %645, %644 : vector<2x32xf32>
    %647 = arith.divf %645, %646 : vector<2x32xf32>
    %648 = arith.mulf %641, %635 : vector<2x32xf32>
    %649 = arith.addf %631, %648 : vector<2x32xf32>
    %650 = math.tanh %649 : vector<2x32xf32>
    %651 = arith.subf %627, %650 : vector<2x32xf32>
    %652 = arith.mulf %647, %651 : vector<2x32xf32>
    %653 = arith.addf %650, %652 : vector<2x32xf32>
    %654 = arith.addf %628, %653 : vector<2x32xf32>
    %655 = vector.extract_strided_slice %456 {offsets = [14, 0], sizes = [2, 32], strides = [1, 1]} : vector<16x32xf32> to vector<2x32xf32>
    %656 = vector.extract_strided_slice %464 {offsets = [14, 0], sizes = [2, 32], strides = [1, 1]} : vector<16x32xf32> to vector<2x32xf32>
    %657 = vector.extract_strided_slice %472 {offsets = [14, 0], sizes = [2, 32], strides = [1, 1]} : vector<16x32xf32> to vector<2x32xf32>
    %cst_191 = arith.constant dense<0.000000e+00> : vector<2x32xf32>
    %658 = tpu.matmul %653, %473, %cst_191 {dimension_numbers = #tpu.dot_dimension_numbers<[1], [0], [0], [1], [0, 0, 1, 1], [], []>} : vector<2x32xf32>, vector<32x32xf32>, vector<2x32xf32> -> vector<2x32xf32>
    %cst_192 = arith.constant dense<0.000000e+00> : vector<2x32xf32>
    %659 = tpu.matmul %653, %474, %cst_192 {dimension_numbers = #tpu.dot_dimension_numbers<[1], [0], [0], [1], [0, 0, 1, 1], [], []>} : vector<2x32xf32>, vector<32x32xf32>, vector<2x32xf32> -> vector<2x32xf32>
    %cst_193 = arith.constant dense<0.000000e+00> : vector<2x32xf32>
    %660 = tpu.matmul %653, %475, %cst_193 {dimension_numbers = #tpu.dot_dimension_numbers<[1], [0], [0], [1], [0, 0, 1, 1], [], []>} : vector<2x32xf32>, vector<32x32xf32>, vector<2x32xf32> -> vector<2x32xf32>
    %661 = arith.addf %660, %478 : vector<2x32xf32>
    %662 = arith.addf %655, %658 : vector<2x32xf32>
    %663 = arith.negf %662 : vector<2x32xf32>
    %664 = math.exp %663 : vector<2x32xf32>
    %cst_194 = arith.constant 1.000000e+00 : f32
    %665 = vector.broadcast %cst_194 : f32 to vector<2x32xf32>
    %666 = arith.addf %665, %664 : vector<2x32xf32>
    %667 = arith.divf %665, %666 : vector<2x32xf32>
    %668 = arith.addf %656, %659 : vector<2x32xf32>
    %669 = arith.negf %668 : vector<2x32xf32>
    %670 = math.exp %669 : vector<2x32xf32>
    %cst_195 = arith.constant 1.000000e+00 : f32
    %671 = vector.broadcast %cst_195 : f32 to vector<2x32xf32>
    %672 = arith.addf %671, %670 : vector<2x32xf32>
    %673 = arith.divf %671, %672 : vector<2x32xf32>
    %674 = arith.mulf %667, %661 : vector<2x32xf32>
    %675 = arith.addf %657, %674 : vector<2x32xf32>
    %676 = math.tanh %675 : vector<2x32xf32>
    %677 = arith.subf %653, %676 : vector<2x32xf32>
    %678 = arith.mulf %673, %677 : vector<2x32xf32>
    %679 = arith.addf %676, %678 : vector<2x32xf32>
    %680 = arith.addf %654, %679 : vector<2x32xf32>
    %cst_196 = arith.constant 1.250000e-01 : f32
    %681 = vector.broadcast %cst_196 : f32 to vector<2x32xf32>
    %682 = arith.mulf %680, %681 : vector<2x32xf32>
    %c288 = arith.constant 288 : index
    %c0_197 = arith.constant 0 : index
    %683 = vector.load %arg1[%c288, %c0_197] : memref<480x32xbf16, #tpu.memory_space<vmem>>, vector<32x32xbf16>
    %cst_198 = arith.constant dense<0.000000e+00> : vector<16x32xf32>
    %684 = tpu.matmul %446, %683, %cst_198 {dimension_numbers = #tpu.dot_dimension_numbers<[1], [0], [0], [1], [0, 0, 1, 1], [], []>} : vector<16x32xbf16>, vector<32x32xbf16>, vector<16x32xf32> -> vector<16x32xf32>
    %c320 = arith.constant 320 : index
    %c0_199 = arith.constant 0 : index
    %685 = vector.load %arg1[%c320, %c0_199] : memref<480x32xbf16, #tpu.memory_space<vmem>>, vector<32x32xbf16>
    %cst_200 = arith.constant dense<0.000000e+00> : vector<16x32xf32>
    %686 = tpu.matmul %448, %685, %cst_200 {dimension_numbers = #tpu.dot_dimension_numbers<[1], [0], [0], [1], [0, 0, 1, 1], [], []>} : vector<16x32xbf16>, vector<32x32xbf16>, vector<16x32xf32> -> vector<16x32xf32>
    %687 = arith.addf %684, %686 : vector<16x32xf32>
    %c396 = arith.constant 396 : index
    %c0_201 = arith.constant 0 : index
    %688 = vector.load %arg2[%c396, %c0_201] : memref<400x32xf32, #tpu.memory_space<vmem>>, vector<1x32xf32>
    %689 = vector.broadcast %688 : vector<1x32xf32> to vector<16x32xf32>
    %690 = arith.addf %687, %689 : vector<16x32xf32>
    %c352 = arith.constant 352 : index
    %c0_202 = arith.constant 0 : index
    %691 = vector.load %arg1[%c352, %c0_202] : memref<480x32xbf16, #tpu.memory_space<vmem>>, vector<32x32xbf16>
    %cst_203 = arith.constant dense<0.000000e+00> : vector<16x32xf32>
    %692 = tpu.matmul %446, %691, %cst_203 {dimension_numbers = #tpu.dot_dimension_numbers<[1], [0], [0], [1], [0, 0, 1, 1], [], []>} : vector<16x32xbf16>, vector<32x32xbf16>, vector<16x32xf32> -> vector<16x32xf32>
    %c384_204 = arith.constant 384 : index
    %c0_205 = arith.constant 0 : index
    %693 = vector.load %arg1[%c384_204, %c0_205] : memref<480x32xbf16, #tpu.memory_space<vmem>>, vector<32x32xbf16>
    %cst_206 = arith.constant dense<0.000000e+00> : vector<16x32xf32>
    %694 = tpu.matmul %448, %693, %cst_206 {dimension_numbers = #tpu.dot_dimension_numbers<[1], [0], [0], [1], [0, 0, 1, 1], [], []>} : vector<16x32xbf16>, vector<32x32xbf16>, vector<16x32xf32> -> vector<16x32xf32>
    %695 = arith.addf %692, %694 : vector<16x32xf32>
    %c397 = arith.constant 397 : index
    %c0_207 = arith.constant 0 : index
    %696 = vector.load %arg2[%c397, %c0_207] : memref<400x32xf32, #tpu.memory_space<vmem>>, vector<1x32xf32>
    %697 = vector.broadcast %696 : vector<1x32xf32> to vector<16x32xf32>
    %698 = arith.addf %695, %697 : vector<16x32xf32>
    %c416 = arith.constant 416 : index
    %c0_208 = arith.constant 0 : index
    %699 = vector.load %arg1[%c416, %c0_208] : memref<480x32xbf16, #tpu.memory_space<vmem>>, vector<32x32xbf16>
    %cst_209 = arith.constant dense<0.000000e+00> : vector<16x32xf32>
    %700 = tpu.matmul %446, %699, %cst_209 {dimension_numbers = #tpu.dot_dimension_numbers<[1], [0], [0], [1], [0, 0, 1, 1], [], []>} : vector<16x32xbf16>, vector<32x32xbf16>, vector<16x32xf32> -> vector<16x32xf32>
    %c448 = arith.constant 448 : index
    %c0_210 = arith.constant 0 : index
    %701 = vector.load %arg1[%c448, %c0_210] : memref<480x32xbf16, #tpu.memory_space<vmem>>, vector<32x32xbf16>
    %cst_211 = arith.constant dense<0.000000e+00> : vector<16x32xf32>
    %702 = tpu.matmul %448, %701, %cst_211 {dimension_numbers = #tpu.dot_dimension_numbers<[1], [0], [0], [1], [0, 0, 1, 1], [], []>} : vector<16x32xbf16>, vector<32x32xbf16>, vector<16x32xf32> -> vector<16x32xf32>
    %703 = arith.addf %700, %702 : vector<16x32xf32>
    %c398 = arith.constant 398 : index
    %c0_212 = arith.constant 0 : index
    %704 = vector.load %arg2[%c398, %c0_212] : memref<400x32xf32, #tpu.memory_space<vmem>>, vector<1x32xf32>
    %705 = vector.broadcast %704 : vector<1x32xf32> to vector<16x32xf32>
    %706 = arith.addf %703, %705 : vector<16x32xf32>
    %c288_213 = arith.constant 288 : index
    %c0_214 = arith.constant 0 : index
    %707 = vector.load %arg2[%c288_213, %c0_214] : memref<400x32xf32, #tpu.memory_space<vmem>>, vector<32x32xf32>
    %c320_215 = arith.constant 320 : index
    %c0_216 = arith.constant 0 : index
    %708 = vector.load %arg2[%c320_215, %c0_216] : memref<400x32xf32, #tpu.memory_space<vmem>>, vector<32x32xf32>
    %c352_217 = arith.constant 352 : index
    %c0_218 = arith.constant 0 : index
    %709 = vector.load %arg2[%c352_217, %c0_218] : memref<400x32xf32, #tpu.memory_space<vmem>>, vector<32x32xf32>
    %c399 = arith.constant 399 : index
    %c0_219 = arith.constant 0 : index
    %710 = vector.load %arg2[%c399, %c0_219] : memref<400x32xf32, #tpu.memory_space<vmem>>, vector<1x32xf32>
    %711 = vector.shape_cast %710 : vector<1x32xf32> to vector<1x32xf32>
    %712 = vector.broadcast %711 : vector<1x32xf32> to vector<2x32xf32>
    %cst_220 = arith.constant 0.000000e+00 : f32
    %713 = vector.broadcast %cst_220 : f32 to vector<2x32xf32>
    %714 = vector.extract_strided_slice %690 {offsets = [14, 0], sizes = [2, 32], strides = [1, 1]} : vector<16x32xf32> to vector<2x32xf32>
    %715 = vector.extract_strided_slice %698 {offsets = [14, 0], sizes = [2, 32], strides = [1, 1]} : vector<16x32xf32> to vector<2x32xf32>
    %716 = vector.extract_strided_slice %706 {offsets = [14, 0], sizes = [2, 32], strides = [1, 1]} : vector<16x32xf32> to vector<2x32xf32>
    %717 = arith.negf %714 : vector<2x32xf32>
    %718 = math.exp %717 : vector<2x32xf32>
    %cst_221 = arith.constant 1.000000e+00 : f32
    %719 = vector.broadcast %cst_221 : f32 to vector<2x32xf32>
    %720 = arith.addf %719, %718 : vector<2x32xf32>
    %721 = arith.divf %719, %720 : vector<2x32xf32>
    %722 = arith.negf %715 : vector<2x32xf32>
    %723 = math.exp %722 : vector<2x32xf32>
    %cst_222 = arith.constant 1.000000e+00 : f32
    %724 = vector.broadcast %cst_222 : f32 to vector<2x32xf32>
    %725 = arith.addf %724, %723 : vector<2x32xf32>
    %726 = arith.divf %724, %725 : vector<2x32xf32>
    %727 = arith.mulf %721, %712 : vector<2x32xf32>
    %728 = arith.addf %716, %727 : vector<2x32xf32>
    %729 = math.tanh %728 : vector<2x32xf32>
    %730 = arith.mulf %726, %729 : vector<2x32xf32>
    %731 = arith.subf %729, %730 : vector<2x32xf32>
    %732 = arith.addf %713, %731 : vector<2x32xf32>
    %733 = vector.extract_strided_slice %690 {offsets = [12, 0], sizes = [2, 32], strides = [1, 1]} : vector<16x32xf32> to vector<2x32xf32>
    %734 = vector.extract_strided_slice %698 {offsets = [12, 0], sizes = [2, 32], strides = [1, 1]} : vector<16x32xf32> to vector<2x32xf32>
    %735 = vector.extract_strided_slice %706 {offsets = [12, 0], sizes = [2, 32], strides = [1, 1]} : vector<16x32xf32> to vector<2x32xf32>
    %cst_223 = arith.constant dense<0.000000e+00> : vector<2x32xf32>
    %736 = tpu.matmul %731, %707, %cst_223 {dimension_numbers = #tpu.dot_dimension_numbers<[1], [0], [0], [1], [0, 0, 1, 1], [], []>} : vector<2x32xf32>, vector<32x32xf32>, vector<2x32xf32> -> vector<2x32xf32>
    %cst_224 = arith.constant dense<0.000000e+00> : vector<2x32xf32>
    %737 = tpu.matmul %731, %708, %cst_224 {dimension_numbers = #tpu.dot_dimension_numbers<[1], [0], [0], [1], [0, 0, 1, 1], [], []>} : vector<2x32xf32>, vector<32x32xf32>, vector<2x32xf32> -> vector<2x32xf32>
    %cst_225 = arith.constant dense<0.000000e+00> : vector<2x32xf32>
    %738 = tpu.matmul %731, %709, %cst_225 {dimension_numbers = #tpu.dot_dimension_numbers<[1], [0], [0], [1], [0, 0, 1, 1], [], []>} : vector<2x32xf32>, vector<32x32xf32>, vector<2x32xf32> -> vector<2x32xf32>
    %739 = arith.addf %738, %712 : vector<2x32xf32>
    %740 = arith.addf %733, %736 : vector<2x32xf32>
    %741 = arith.negf %740 : vector<2x32xf32>
    %742 = math.exp %741 : vector<2x32xf32>
    %cst_226 = arith.constant 1.000000e+00 : f32
    %743 = vector.broadcast %cst_226 : f32 to vector<2x32xf32>
    %744 = arith.addf %743, %742 : vector<2x32xf32>
    %745 = arith.divf %743, %744 : vector<2x32xf32>
    %746 = arith.addf %734, %737 : vector<2x32xf32>
    %747 = arith.negf %746 : vector<2x32xf32>
    %748 = math.exp %747 : vector<2x32xf32>
    %cst_227 = arith.constant 1.000000e+00 : f32
    %749 = vector.broadcast %cst_227 : f32 to vector<2x32xf32>
    %750 = arith.addf %749, %748 : vector<2x32xf32>
    %751 = arith.divf %749, %750 : vector<2x32xf32>
    %752 = arith.mulf %745, %739 : vector<2x32xf32>
    %753 = arith.addf %735, %752 : vector<2x32xf32>
    %754 = math.tanh %753 : vector<2x32xf32>
    %755 = arith.subf %731, %754 : vector<2x32xf32>
    %756 = arith.mulf %751, %755 : vector<2x32xf32>
    %757 = arith.addf %754, %756 : vector<2x32xf32>
    %758 = arith.addf %732, %757 : vector<2x32xf32>
    %759 = vector.extract_strided_slice %690 {offsets = [10, 0], sizes = [2, 32], strides = [1, 1]} : vector<16x32xf32> to vector<2x32xf32>
    %760 = vector.extract_strided_slice %698 {offsets = [10, 0], sizes = [2, 32], strides = [1, 1]} : vector<16x32xf32> to vector<2x32xf32>
    %761 = vector.extract_strided_slice %706 {offsets = [10, 0], sizes = [2, 32], strides = [1, 1]} : vector<16x32xf32> to vector<2x32xf32>
    %cst_228 = arith.constant dense<0.000000e+00> : vector<2x32xf32>
    %762 = tpu.matmul %757, %707, %cst_228 {dimension_numbers = #tpu.dot_dimension_numbers<[1], [0], [0], [1], [0, 0, 1, 1], [], []>} : vector<2x32xf32>, vector<32x32xf32>, vector<2x32xf32> -> vector<2x32xf32>
    %cst_229 = arith.constant dense<0.000000e+00> : vector<2x32xf32>
    %763 = tpu.matmul %757, %708, %cst_229 {dimension_numbers = #tpu.dot_dimension_numbers<[1], [0], [0], [1], [0, 0, 1, 1], [], []>} : vector<2x32xf32>, vector<32x32xf32>, vector<2x32xf32> -> vector<2x32xf32>
    %cst_230 = arith.constant dense<0.000000e+00> : vector<2x32xf32>
    %764 = tpu.matmul %757, %709, %cst_230 {dimension_numbers = #tpu.dot_dimension_numbers<[1], [0], [0], [1], [0, 0, 1, 1], [], []>} : vector<2x32xf32>, vector<32x32xf32>, vector<2x32xf32> -> vector<2x32xf32>
    %765 = arith.addf %764, %712 : vector<2x32xf32>
    %766 = arith.addf %759, %762 : vector<2x32xf32>
    %767 = arith.negf %766 : vector<2x32xf32>
    %768 = math.exp %767 : vector<2x32xf32>
    %cst_231 = arith.constant 1.000000e+00 : f32
    %769 = vector.broadcast %cst_231 : f32 to vector<2x32xf32>
    %770 = arith.addf %769, %768 : vector<2x32xf32>
    %771 = arith.divf %769, %770 : vector<2x32xf32>
    %772 = arith.addf %760, %763 : vector<2x32xf32>
    %773 = arith.negf %772 : vector<2x32xf32>
    %774 = math.exp %773 : vector<2x32xf32>
    %cst_232 = arith.constant 1.000000e+00 : f32
    %775 = vector.broadcast %cst_232 : f32 to vector<2x32xf32>
    %776 = arith.addf %775, %774 : vector<2x32xf32>
    %777 = arith.divf %775, %776 : vector<2x32xf32>
    %778 = arith.mulf %771, %765 : vector<2x32xf32>
    %779 = arith.addf %761, %778 : vector<2x32xf32>
    %780 = math.tanh %779 : vector<2x32xf32>
    %781 = arith.subf %757, %780 : vector<2x32xf32>
    %782 = arith.mulf %777, %781 : vector<2x32xf32>
    %783 = arith.addf %780, %782 : vector<2x32xf32>
    %784 = arith.addf %758, %783 : vector<2x32xf32>
    %785 = vector.extract_strided_slice %690 {offsets = [8, 0], sizes = [2, 32], strides = [1, 1]} : vector<16x32xf32> to vector<2x32xf32>
    %786 = vector.extract_strided_slice %698 {offsets = [8, 0], sizes = [2, 32], strides = [1, 1]} : vector<16x32xf32> to vector<2x32xf32>
    %787 = vector.extract_strided_slice %706 {offsets = [8, 0], sizes = [2, 32], strides = [1, 1]} : vector<16x32xf32> to vector<2x32xf32>
    %cst_233 = arith.constant dense<0.000000e+00> : vector<2x32xf32>
    %788 = tpu.matmul %783, %707, %cst_233 {dimension_numbers = #tpu.dot_dimension_numbers<[1], [0], [0], [1], [0, 0, 1, 1], [], []>} : vector<2x32xf32>, vector<32x32xf32>, vector<2x32xf32> -> vector<2x32xf32>
    %cst_234 = arith.constant dense<0.000000e+00> : vector<2x32xf32>
    %789 = tpu.matmul %783, %708, %cst_234 {dimension_numbers = #tpu.dot_dimension_numbers<[1], [0], [0], [1], [0, 0, 1, 1], [], []>} : vector<2x32xf32>, vector<32x32xf32>, vector<2x32xf32> -> vector<2x32xf32>
    %cst_235 = arith.constant dense<0.000000e+00> : vector<2x32xf32>
    %790 = tpu.matmul %783, %709, %cst_235 {dimension_numbers = #tpu.dot_dimension_numbers<[1], [0], [0], [1], [0, 0, 1, 1], [], []>} : vector<2x32xf32>, vector<32x32xf32>, vector<2x32xf32> -> vector<2x32xf32>
    %791 = arith.addf %790, %712 : vector<2x32xf32>
    %792 = arith.addf %785, %788 : vector<2x32xf32>
    %793 = arith.negf %792 : vector<2x32xf32>
    %794 = math.exp %793 : vector<2x32xf32>
    %cst_236 = arith.constant 1.000000e+00 : f32
    %795 = vector.broadcast %cst_236 : f32 to vector<2x32xf32>
    %796 = arith.addf %795, %794 : vector<2x32xf32>
    %797 = arith.divf %795, %796 : vector<2x32xf32>
    %798 = arith.addf %786, %789 : vector<2x32xf32>
    %799 = arith.negf %798 : vector<2x32xf32>
    %800 = math.exp %799 : vector<2x32xf32>
    %cst_237 = arith.constant 1.000000e+00 : f32
    %801 = vector.broadcast %cst_237 : f32 to vector<2x32xf32>
    %802 = arith.addf %801, %800 : vector<2x32xf32>
    %803 = arith.divf %801, %802 : vector<2x32xf32>
    %804 = arith.mulf %797, %791 : vector<2x32xf32>
    %805 = arith.addf %787, %804 : vector<2x32xf32>
    %806 = math.tanh %805 : vector<2x32xf32>
    %807 = arith.subf %783, %806 : vector<2x32xf32>
    %808 = arith.mulf %803, %807 : vector<2x32xf32>
    %809 = arith.addf %806, %808 : vector<2x32xf32>
    %810 = arith.addf %784, %809 : vector<2x32xf32>
    %811 = vector.extract_strided_slice %690 {offsets = [6, 0], sizes = [2, 32], strides = [1, 1]} : vector<16x32xf32> to vector<2x32xf32>
    %812 = vector.extract_strided_slice %698 {offsets = [6, 0], sizes = [2, 32], strides = [1, 1]} : vector<16x32xf32> to vector<2x32xf32>
    %813 = vector.extract_strided_slice %706 {offsets = [6, 0], sizes = [2, 32], strides = [1, 1]} : vector<16x32xf32> to vector<2x32xf32>
    %cst_238 = arith.constant dense<0.000000e+00> : vector<2x32xf32>
    %814 = tpu.matmul %809, %707, %cst_238 {dimension_numbers = #tpu.dot_dimension_numbers<[1], [0], [0], [1], [0, 0, 1, 1], [], []>} : vector<2x32xf32>, vector<32x32xf32>, vector<2x32xf32> -> vector<2x32xf32>
    %cst_239 = arith.constant dense<0.000000e+00> : vector<2x32xf32>
    %815 = tpu.matmul %809, %708, %cst_239 {dimension_numbers = #tpu.dot_dimension_numbers<[1], [0], [0], [1], [0, 0, 1, 1], [], []>} : vector<2x32xf32>, vector<32x32xf32>, vector<2x32xf32> -> vector<2x32xf32>
    %cst_240 = arith.constant dense<0.000000e+00> : vector<2x32xf32>
    %816 = tpu.matmul %809, %709, %cst_240 {dimension_numbers = #tpu.dot_dimension_numbers<[1], [0], [0], [1], [0, 0, 1, 1], [], []>} : vector<2x32xf32>, vector<32x32xf32>, vector<2x32xf32> -> vector<2x32xf32>
    %817 = arith.addf %816, %712 : vector<2x32xf32>
    %818 = arith.addf %811, %814 : vector<2x32xf32>
    %819 = arith.negf %818 : vector<2x32xf32>
    %820 = math.exp %819 : vector<2x32xf32>
    %cst_241 = arith.constant 1.000000e+00 : f32
    %821 = vector.broadcast %cst_241 : f32 to vector<2x32xf32>
    %822 = arith.addf %821, %820 : vector<2x32xf32>
    %823 = arith.divf %821, %822 : vector<2x32xf32>
    %824 = arith.addf %812, %815 : vector<2x32xf32>
    %825 = arith.negf %824 : vector<2x32xf32>
    %826 = math.exp %825 : vector<2x32xf32>
    %cst_242 = arith.constant 1.000000e+00 : f32
    %827 = vector.broadcast %cst_242 : f32 to vector<2x32xf32>
    %828 = arith.addf %827, %826 : vector<2x32xf32>
    %829 = arith.divf %827, %828 : vector<2x32xf32>
    %830 = arith.mulf %823, %817 : vector<2x32xf32>
    %831 = arith.addf %813, %830 : vector<2x32xf32>
    %832 = math.tanh %831 : vector<2x32xf32>
    %833 = arith.subf %809, %832 : vector<2x32xf32>
    %834 = arith.mulf %829, %833 : vector<2x32xf32>
    %835 = arith.addf %832, %834 : vector<2x32xf32>
    %836 = arith.addf %810, %835 : vector<2x32xf32>
    %837 = vector.extract_strided_slice %690 {offsets = [4, 0], sizes = [2, 32], strides = [1, 1]} : vector<16x32xf32> to vector<2x32xf32>
    %838 = vector.extract_strided_slice %698 {offsets = [4, 0], sizes = [2, 32], strides = [1, 1]} : vector<16x32xf32> to vector<2x32xf32>
    %839 = vector.extract_strided_slice %706 {offsets = [4, 0], sizes = [2, 32], strides = [1, 1]} : vector<16x32xf32> to vector<2x32xf32>
    %cst_243 = arith.constant dense<0.000000e+00> : vector<2x32xf32>
    %840 = tpu.matmul %835, %707, %cst_243 {dimension_numbers = #tpu.dot_dimension_numbers<[1], [0], [0], [1], [0, 0, 1, 1], [], []>} : vector<2x32xf32>, vector<32x32xf32>, vector<2x32xf32> -> vector<2x32xf32>
    %cst_244 = arith.constant dense<0.000000e+00> : vector<2x32xf32>
    %841 = tpu.matmul %835, %708, %cst_244 {dimension_numbers = #tpu.dot_dimension_numbers<[1], [0], [0], [1], [0, 0, 1, 1], [], []>} : vector<2x32xf32>, vector<32x32xf32>, vector<2x32xf32> -> vector<2x32xf32>
    %cst_245 = arith.constant dense<0.000000e+00> : vector<2x32xf32>
    %842 = tpu.matmul %835, %709, %cst_245 {dimension_numbers = #tpu.dot_dimension_numbers<[1], [0], [0], [1], [0, 0, 1, 1], [], []>} : vector<2x32xf32>, vector<32x32xf32>, vector<2x32xf32> -> vector<2x32xf32>
    %843 = arith.addf %842, %712 : vector<2x32xf32>
    %844 = arith.addf %837, %840 : vector<2x32xf32>
    %845 = arith.negf %844 : vector<2x32xf32>
    %846 = math.exp %845 : vector<2x32xf32>
    %cst_246 = arith.constant 1.000000e+00 : f32
    %847 = vector.broadcast %cst_246 : f32 to vector<2x32xf32>
    %848 = arith.addf %847, %846 : vector<2x32xf32>
    %849 = arith.divf %847, %848 : vector<2x32xf32>
    %850 = arith.addf %838, %841 : vector<2x32xf32>
    %851 = arith.negf %850 : vector<2x32xf32>
    %852 = math.exp %851 : vector<2x32xf32>
    %cst_247 = arith.constant 1.000000e+00 : f32
    %853 = vector.broadcast %cst_247 : f32 to vector<2x32xf32>
    %854 = arith.addf %853, %852 : vector<2x32xf32>
    %855 = arith.divf %853, %854 : vector<2x32xf32>
    %856 = arith.mulf %849, %843 : vector<2x32xf32>
    %857 = arith.addf %839, %856 : vector<2x32xf32>
    %858 = math.tanh %857 : vector<2x32xf32>
    %859 = arith.subf %835, %858 : vector<2x32xf32>
    %860 = arith.mulf %855, %859 : vector<2x32xf32>
    %861 = arith.addf %858, %860 : vector<2x32xf32>
    %862 = arith.addf %836, %861 : vector<2x32xf32>
    %863 = vector.extract_strided_slice %690 {offsets = [2, 0], sizes = [2, 32], strides = [1, 1]} : vector<16x32xf32> to vector<2x32xf32>
    %864 = vector.extract_strided_slice %698 {offsets = [2, 0], sizes = [2, 32], strides = [1, 1]} : vector<16x32xf32> to vector<2x32xf32>
    %865 = vector.extract_strided_slice %706 {offsets = [2, 0], sizes = [2, 32], strides = [1, 1]} : vector<16x32xf32> to vector<2x32xf32>
    %cst_248 = arith.constant dense<0.000000e+00> : vector<2x32xf32>
    %866 = tpu.matmul %861, %707, %cst_248 {dimension_numbers = #tpu.dot_dimension_numbers<[1], [0], [0], [1], [0, 0, 1, 1], [], []>} : vector<2x32xf32>, vector<32x32xf32>, vector<2x32xf32> -> vector<2x32xf32>
    %cst_249 = arith.constant dense<0.000000e+00> : vector<2x32xf32>
    %867 = tpu.matmul %861, %708, %cst_249 {dimension_numbers = #tpu.dot_dimension_numbers<[1], [0], [0], [1], [0, 0, 1, 1], [], []>} : vector<2x32xf32>, vector<32x32xf32>, vector<2x32xf32> -> vector<2x32xf32>
    %cst_250 = arith.constant dense<0.000000e+00> : vector<2x32xf32>
    %868 = tpu.matmul %861, %709, %cst_250 {dimension_numbers = #tpu.dot_dimension_numbers<[1], [0], [0], [1], [0, 0, 1, 1], [], []>} : vector<2x32xf32>, vector<32x32xf32>, vector<2x32xf32> -> vector<2x32xf32>
    %869 = arith.addf %868, %712 : vector<2x32xf32>
    %870 = arith.addf %863, %866 : vector<2x32xf32>
    %871 = arith.negf %870 : vector<2x32xf32>
    %872 = math.exp %871 : vector<2x32xf32>
    %cst_251 = arith.constant 1.000000e+00 : f32
    %873 = vector.broadcast %cst_251 : f32 to vector<2x32xf32>
    %874 = arith.addf %873, %872 : vector<2x32xf32>
    %875 = arith.divf %873, %874 : vector<2x32xf32>
    %876 = arith.addf %864, %867 : vector<2x32xf32>
    %877 = arith.negf %876 : vector<2x32xf32>
    %878 = math.exp %877 : vector<2x32xf32>
    %cst_252 = arith.constant 1.000000e+00 : f32
    %879 = vector.broadcast %cst_252 : f32 to vector<2x32xf32>
    %880 = arith.addf %879, %878 : vector<2x32xf32>
    %881 = arith.divf %879, %880 : vector<2x32xf32>
    %882 = arith.mulf %875, %869 : vector<2x32xf32>
    %883 = arith.addf %865, %882 : vector<2x32xf32>
    %884 = math.tanh %883 : vector<2x32xf32>
    %885 = arith.subf %861, %884 : vector<2x32xf32>
    %886 = arith.mulf %881, %885 : vector<2x32xf32>
    %887 = arith.addf %884, %886 : vector<2x32xf32>
    %888 = arith.addf %862, %887 : vector<2x32xf32>
    %889 = vector.extract_strided_slice %690 {offsets = [0, 0], sizes = [2, 32], strides = [1, 1]} : vector<16x32xf32> to vector<2x32xf32>
    %890 = vector.extract_strided_slice %698 {offsets = [0, 0], sizes = [2, 32], strides = [1, 1]} : vector<16x32xf32> to vector<2x32xf32>
    %891 = vector.extract_strided_slice %706 {offsets = [0, 0], sizes = [2, 32], strides = [1, 1]} : vector<16x32xf32> to vector<2x32xf32>
    %cst_253 = arith.constant dense<0.000000e+00> : vector<2x32xf32>
    %892 = tpu.matmul %887, %707, %cst_253 {dimension_numbers = #tpu.dot_dimension_numbers<[1], [0], [0], [1], [0, 0, 1, 1], [], []>} : vector<2x32xf32>, vector<32x32xf32>, vector<2x32xf32> -> vector<2x32xf32>
    %cst_254 = arith.constant dense<0.000000e+00> : vector<2x32xf32>
    %893 = tpu.matmul %887, %708, %cst_254 {dimension_numbers = #tpu.dot_dimension_numbers<[1], [0], [0], [1], [0, 0, 1, 1], [], []>} : vector<2x32xf32>, vector<32x32xf32>, vector<2x32xf32> -> vector<2x32xf32>
    %cst_255 = arith.constant dense<0.000000e+00> : vector<2x32xf32>
    %894 = tpu.matmul %887, %709, %cst_255 {dimension_numbers = #tpu.dot_dimension_numbers<[1], [0], [0], [1], [0, 0, 1, 1], [], []>} : vector<2x32xf32>, vector<32x32xf32>, vector<2x32xf32> -> vector<2x32xf32>
    %895 = arith.addf %894, %712 : vector<2x32xf32>
    %896 = arith.addf %889, %892 : vector<2x32xf32>
    %897 = arith.negf %896 : vector<2x32xf32>
    %898 = math.exp %897 : vector<2x32xf32>
    %cst_256 = arith.constant 1.000000e+00 : f32
    %899 = vector.broadcast %cst_256 : f32 to vector<2x32xf32>
    %900 = arith.addf %899, %898 : vector<2x32xf32>
    %901 = arith.divf %899, %900 : vector<2x32xf32>
    %902 = arith.addf %890, %893 : vector<2x32xf32>
    %903 = arith.negf %902 : vector<2x32xf32>
    %904 = math.exp %903 : vector<2x32xf32>
    %cst_257 = arith.constant 1.000000e+00 : f32
    %905 = vector.broadcast %cst_257 : f32 to vector<2x32xf32>
    %906 = arith.addf %905, %904 : vector<2x32xf32>
    %907 = arith.divf %905, %906 : vector<2x32xf32>
    %908 = arith.mulf %901, %895 : vector<2x32xf32>
    %909 = arith.addf %891, %908 : vector<2x32xf32>
    %910 = math.tanh %909 : vector<2x32xf32>
    %911 = arith.subf %887, %910 : vector<2x32xf32>
    %912 = arith.mulf %907, %911 : vector<2x32xf32>
    %913 = arith.addf %910, %912 : vector<2x32xf32>
    %914 = arith.addf %888, %913 : vector<2x32xf32>
    %cst_258 = arith.constant 1.250000e-01 : f32
    %915 = vector.broadcast %cst_258 : f32 to vector<2x32xf32>
    %916 = arith.mulf %914, %915 : vector<2x32xf32>
    %c0_259 = arith.constant 0 : index
    %c0_260 = arith.constant 0 : index
    %c0_261 = arith.constant 0 : index
    %917 = vector.load %arg4[%c0_259, %c0_260, %c0_261] : memref<4x2x32xf32, #tpu.memory_space<vmem>>, vector<1x2x32xf32>
    %918 = vector.shape_cast %917 : vector<1x2x32xf32> to vector<2x32xf32>
    %919 = vector.shape_cast %221 : vector<2x32xf32> to vector<1x2x32xf32>
    tpu.vector_store %arg4[%c0_259, %c0_260, %c0_261], %919 {strides = array<i32>} : memref<4x2x32xf32, #tpu.memory_space<vmem>>, vector<1x2x32xf32>,
    %c1 = arith.constant 1 : index
    %c0_262 = arith.constant 0 : index
    %c0_263 = arith.constant 0 : index
    %920 = vector.load %arg4[%c1, %c0_262, %c0_263] : memref<4x2x32xf32, #tpu.memory_space<vmem>>, vector<1x2x32xf32>
    %921 = vector.shape_cast %920 : vector<1x2x32xf32> to vector<2x32xf32>
    %922 = vector.shape_cast %443 : vector<2x32xf32> to vector<1x2x32xf32>
    tpu.vector_store %arg4[%c1, %c0_262, %c0_263], %922 {strides = array<i32>} : memref<4x2x32xf32, #tpu.memory_space<vmem>>, vector<1x2x32xf32>,
    %c2_264 = arith.constant 2 : index
    %c0_265 = arith.constant 0 : index
    %c0_266 = arith.constant 0 : index
    %923 = vector.load %arg4[%c2_264, %c0_265, %c0_266] : memref<4x2x32xf32, #tpu.memory_space<vmem>>, vector<1x2x32xf32>
    %924 = vector.shape_cast %923 : vector<1x2x32xf32> to vector<2x32xf32>
    %925 = vector.shape_cast %679 : vector<2x32xf32> to vector<1x2x32xf32>
    tpu.vector_store %arg4[%c2_264, %c0_265, %c0_266], %925 {strides = array<i32>} : memref<4x2x32xf32, #tpu.memory_space<vmem>>, vector<1x2x32xf32>,
    %c3 = arith.constant 3 : index
    %c0_267 = arith.constant 0 : index
    %c0_268 = arith.constant 0 : index
    %926 = vector.load %arg4[%c3, %c0_267, %c0_268] : memref<4x2x32xf32, #tpu.memory_space<vmem>>, vector<1x2x32xf32>
    %927 = vector.shape_cast %926 : vector<1x2x32xf32> to vector<2x32xf32>
    %928 = vector.shape_cast %913 : vector<2x32xf32> to vector<1x2x32xf32>
    tpu.vector_store %arg4[%c3, %c0_267, %c0_268], %928 {strides = array<i32>} : memref<4x2x32xf32, #tpu.memory_space<vmem>>, vector<1x2x32xf32>,
    %c0_269 = arith.constant 0 : index
    %c0_270 = arith.constant 0 : index
    %929 = vector.load %arg3[%c0_269, %c0_270] : memref<2x64xf32, #tpu.memory_space<vmem>>, vector<2x32xf32>
    tpu.vector_store %arg3[%c0_269, %c0_270], %682 {strides = array<i32>} : memref<2x64xf32, #tpu.memory_space<vmem>>, vector<2x32xf32>,
    %c0_271 = arith.constant 0 : index
    %c32_272 = arith.constant 32 : index
    %930 = vector.load %arg3[%c0_271, %c32_272] : memref<2x64xf32, #tpu.memory_space<vmem>>, vector<2x32xf32>
    tpu.vector_store %arg3[%c0_271, %c32_272], %916 {strides = array<i32>} : memref<2x64xf32, #tpu.memory_space<vmem>>, vector<2x32xf32>,
    return
  }
}

</mosaic_0001>

<bundles_post_ra>
// kernel: recurrent_block_forward.1
= control target key start
LH: loop header
LB: loop body
LE: loop exit
PB: predicated region body
PF: predicated region fallthrough
CT: control target
= control target key end

     0   :  { %10 = vsyncpa [#allocation5], 0  ;;  %vm36_vm0 = vcmask 130048   ;;  %s6454_s0 = inlined_call_operand.vmem [shape: bf16[16,16], index: 0, kind: input, shape index: {}]   ;;  %s6455_s1 = inlined_call_operand.vmem [shape: bf16[480,32], index: 1, kind: input, shape index: {}]   ;;  %s6456_s2 = inlined_call_operand.vmem [shape: f32[400,32], index: 2, kind: input, shape index: {}]   ;;  %s6457_s3 = inlined_call_operand.hbm [shape: f32[2,64], index: 3, kind: output, shape index: {0}]   ;;  %s6458_s4 = inlined_call_operand.hbm [shape: f32[4,2,32], index: 4, kind: output, shape index: {1}]  }
   0x1   :  { %v4637_v0 = vld [vmem:[%s6455_s1] sm:$0xff]  ;;  %v4638_v1 = vld [vmem:[%s6455_s1 + $0x8] sm:$0xff]  ;;  %v4639_v3 = vld [vmem:[%s6455_s1 + $0x10] sm:$0xff] }
   0x2   :  { %v5101_v2 = vld [vmem:[%s6454_s0] sm:$0xff]  ;;  %47 = vmatpush.bf16.msra.mxu0 %v4637_v0  ;;  %71 = vmatpush.bf16.msra.mxu1 %v4638_v1 }
   0x3   :  { %95 = vmatpush.bf16.msra.mxu2 %v4639_v3 }
   0x5   :  { %4354 = vmatmul.msk.bf16.vlgmr.msra.gmra.mxu0 %vm36_vm0, %v5101_v2  ;;  %4359 = vmatmul.msk.bf16.vlgmr.msra.gmra.mxu1 %vm36_vm0, %v5101_v2 }
   0x6   :  { %4364 = vmatmul.msk.bf16.vlgmr.msra.gmra.mxu2 %vm36_vm0, %v5101_v2 }
   0x7   :  { %11 = vsyncpa [#allocation7], 0  ;;  %v5115_v4 = vld [vmem:[%s6456_s2 + $0x180] ss:$0 sm:$0xff]  ;;  %v5120_v5 = vld [vmem:[%s6456_s2 + $0x181] ss:$0 sm:$0xff] }
   0x8   :  { %v5133_v12 = vld [vmem:[%s6456_s2 + $0x18] sm:$0xff]  ;;  %v5145_v14 = vld [vmem:[%s6456_s2 + $0x10] sm:$0xff]  ;;  %v5155_v16 = vld [vmem:[%s6456_s2 + $0x8] sm:$0xff]  ;;  %vm159_vm9 = vcmask 254976   ;;  %vm161_vm10 = vcmask 261120   ;;  %s4329_s26 = sshll.u32 %s6458_s4, 4  ;;  %s4330_s26 = int_to_ptr.hbm [resolvable:$true] %s4329_s26 }
   0x9   :  { %v5138_v13 = vld [vmem:[%s6456_s2 + $0x58] sm:$0xff]  ;;  %177 = vmatpush.msra.mxu3 %v5133_v12  ;;  %v5150_v15 = vld [vmem:[%s6456_s2 + $0x50] sm:$0xff]  ;;  %v5160_v17 = vld [vmem:[%s6456_s2 + $0x48] sm:$0xff]  ;;  %304 = vmatpush.msrb.mxu1 %v5133_v12  ;;  %s5064_s27 = smov 32   ;;  %s5065_s28 = smov 2  }
   0xa   :  { %217 = vmatpush.msrb.mxu0 %v5138_v13  ;;  %v5168_v18 = vld [vmem:[%s6456_s2] sm:$0xff]  ;;  %v5187_v24 = vld [vmem:[%s6456_s2 + $0x38] sm:$0xff]  ;;  %v5192_v25 = vld [vmem:[%s6456_s2 + $0x30] sm:$0xff]  ;;  %s5066_s4 = smov [#allocation4]   ;;  %s4319_s6 = sshll.u32 %s6457_s3, 4  ;;  %s4320_s6 = int_to_ptr.hbm [resolvable:$true] %s4319_s6 }
   0xb   :  { %178 = vmatpush.msra.mxu3 %v5145_v14  ;;  %v5173_v19 = vld [vmem:[%s6456_s2 + $0x40] sm:$0xff]  ;;  %305 = vmatpush.msrb.mxu1 %v5145_v14  ;;  %v5199_v26 = vld [vmem:[%s6456_s2 + $0x28] sm:$0xff]  ;;  %s4317_s29 = sshll.u32 %s5066_s4, 4  ;;  %s4318_s29 = int_to_ptr.vmem [resolvable:$true] %s4317_s29 }
   0xc   :  { %218 = vmatpush.msrb.mxu0 %v5150_v15  ;;  %324 = vmatpush.msrb.mxu2 %v5187_v24  ;;  %v5208_v27 = vld [vmem:[%s6456_s2 + $0x20] sm:$0xff] }
   0xd   :  { %179 = vmatpush.msra.mxu3 %v5155_v16  ;;  %306 = vmatpush.msrb.mxu1 %v5155_v16  ;;  %v5223_v34 = vld [vmem:[%s6456_s2 + $0x182] ss:$0 sm:$0xff]  ;;  %v5229_v38 = vld [vmem:[%s6456_s2 + $0x183] ss:$0 sm:$0xff] }
   0xe   :  { %219 = vmatpush.msrb.mxu0 %v5160_v17  ;;  %325 = vmatpush.msrb.mxu2 %v5192_v25 }
   0xf   :  { %180 = vmatpush.msra.mxu3 %v5168_v18  ;;  %307 = vmatpush.msrb.mxu1 %v5168_v18 }
  0x10   :  { %220 = vmatpush.msrb.mxu0 %v5173_v19  ;;  %326 = vmatpush.msrb.mxu2 %v5199_v26 }
  0x11   :  { %197 = vmatpush.msrb.mxu3 %v5187_v24  ;;  %451 = vmatpush.msra.mxu1 %v5187_v24 }
  0x12   :  { %431 = vmatpush.msra.mxu0 %v5133_v12  ;;  %327 = vmatpush.msrb.mxu2 %v5208_v27 }
  0x13   :  { %198 = vmatpush.msrb.mxu3 %v5192_v25  ;;  %452 = vmatpush.msra.mxu1 %v5192_v25 }
  0x14   :  { %432 = vmatpush.msra.mxu0 %v5145_v14  ;;  %471 = vmatpush.msra.mxu2 %v5138_v13 }
  0x15   :  { %199 = vmatpush.msrb.mxu3 %v5199_v26  ;;  %453 = vmatpush.msra.mxu1 %v5199_v26 }
  0x16   :  { %433 = vmatpush.msra.mxu0 %v5155_v16  ;;  %472 = vmatpush.msra.mxu2 %v5150_v15 }
  0x17   :  { %200 = vmatpush.msrb.mxu3 %v5208_v27  ;;  %454 = vmatpush.msra.mxu1 %v5208_v27 }
  0x18   :  { %434 = vmatpush.msra.mxu0 %v5168_v18  ;;  %473 = vmatpush.msra.mxu2 %v5160_v17 }
  0x1a   :  { %474 = vmatpush.msra.mxu2 %v5173_v19 }
  0x82   :  { %v49_v6 = vpop.f32.mrf.mxu0  ;;  %v73_v7 = vpop.f32.mrf.mxu1 }
  0x83   :  { %v5123_v8 = vadd.f32 %v5115_v4, %v49_v6  ;;  %v5126_v9 = vadd.f32 %v5120_v5, %v73_v7 }
  0x85   :  { %v4365_v10 = vmul.f32 -1.442695, %v5123_v8  ;;  %v4366_v11 = vmul.f32 -1.442695, %v5126_v9 }
  0x87   :  { %4687 = vpow2.f32 %v4365_v10 }
  0x88   :  { %4689 = vpow2.f32 %v4366_v11 }
  0x89   :  { %v97_v40 = vpop.f32.mrf.mxu2 }
  0x8a   :  { %v5233_v42 = vadd.f32 %v5223_v34, %v97_v40  ;;  %v5261_v6 = vpop.f32.mrf.mxu0 }
  0x8d   :  { %v4688_v20 = vpop.eup %4687 }
  0x8e   :  { %v4690_v21 = vpop.eup %4689  ;;  %v119_v22 = vadd.f32 1.0, %v4688_v20 }
  0x8f   :  { %v138_v23 = vadd.f32 1.0, %v4690_v21 }
  0x90   :  { %4691 = vrcp.f32 %v119_v22  ;;  %v131_v33 = vand.u32 2147483648, %v119_v22  ;;  %v129_v36 = vand.u32 2147483647, %v119_v22  ;;  %vm125_vm2 = vweird.f32 %v119_v22 }
  0x91   :  { %4693 = vrcp.f32 %v138_v23  ;;  %v150_v48 = vand.u32 2147483648, %v138_v23  ;;  %vm144_vm5 = vweird.f32 %v138_v23  ;;  %v148_v50 = vand.u32 2147483647, %v138_v23 }
  0x92   :  { %v132_v41 = vor.u32 1.1754944e-38, %v131_v33  ;;  %vm130_vm4 = vcmp.eq.f32.partialorder %v129_v36, 8.507059e+37 }
  0x93   :  { %v151_v51 = vor.u32 1.1754944e-38, %v150_v48  ;;  %vm149_vm8 = vcmp.eq.f32.partialorder %v148_v50, 8.507059e+37 }
  0x96   :  { %v4692_v28 = vpop.eup %4691 }
  0x97   :  { %v4694_v29 = vpop.eup %4693  ;;  %v121_v30 = vmul.f32 %v4692_v28, %v119_v22  ;;  %vm126_vm1 = vweird.f32 %v4692_v28 }
  0x98   :  { %v140_v31 = vmul.f32 %v4694_v29, %v138_v23  ;;  %vm127_vm3 = vmor %vm125_vm2, %vm126_vm1  ;;  %vm145_vm6 = vweird.f32 %v4694_v29 }
  0x99   :  { %v122_v32 = vsub.f32 1.0, %v121_v30  ;;  %vm146_vm7 = vmor %vm144_vm5, %vm145_vm6 }
  0x9a   :  { %v141_v37 = vsub.f32 1.0, %v140_v31 }
  0x9b   :  { %v123_v35 = vmul.f32 %v4692_v28, %v122_v32 }
  0x9c   :  { %v142_v45 = vmul.f32 %v4694_v29, %v141_v37 }
  0x9d   :  { %v124_v39 = vadd.f32 %v4692_v28, %v123_v35 }
  0x9e   :  { %v143_v49 = vadd.f32 %v4694_v29, %v142_v45 }
  0x9f   :  { %v128_v43 = vsel %vm127_vm3, %v4692_v28, %v124_v39 }
  0xa0   :  { %v133_v44 = vsel %vm130_vm4, %v132_v41, %v128_v43  ;;  %v147_v52 = vsel %vm146_vm7, %v4694_v29, %v143_v49  ;;  %vm286_vm4 = vcmask 257026  }
  0xa1   :  { %v154_v46 = vmul.f32 %v5229_v38, %v133_v44  ;;  %v152_v54 = vsel %vm149_vm8, %v151_v51, %v147_v52 }
  0xa3   :  { %v155_v47 = vadd.f32 %v154_v46, %v5233_v42 }
  0xa5   :  { %4695 = vtanh.f32 %v155_v47 }
  0xab   :  { %v4696_v53 = vpop.eup %4695 }
  0xac   :  { %v157_v55 = vmul.f32 %v4696_v53, %v152_v54 }
  0xae   :  { %v5237_v56 = vsub.f32 %v4696_v53, %v157_v55 }
  0xb0   :  { %160 = vst.msk [vmem:[#allocation2] sm:$0x3] %vm159_vm9, %v5237_v56  ;;  %4367 = vmatmul.msk.f32.vlgmr.msra.gmra.mxu3 %vm161_vm10, %v5237_v56  ;;  %4369 = vmatmul.msk.f32.vlgmr.msrb.gmra.mxu0 %vm161_vm10, %v5237_v56 }
  0xb1   :  { %344 = vmatpush.msra.mxu3 %v5138_v13  ;;  %578 = vmatpush.msrb.mxu0 %v5187_v24 }
  0xb3   :  { %345 = vmatpush.msra.mxu3 %v5150_v15  ;;  %579 = vmatpush.msrb.mxu0 %v5192_v25 }
  0xb5   :  { %346 = vmatpush.msra.mxu3 %v5160_v17  ;;  %580 = vmatpush.msrb.mxu0 %v5199_v26 }
  0xb7   :  { %347 = vmatpush.msra.mxu3 %v5173_v19  ;;  %581 = vmatpush.msrb.mxu0 %v5208_v27 }
  0xb8   :  { %4368 = vmatmul.msk.f32.vlgmr.msrb.gmra.mxu3 %vm161_vm10, %v5237_v56 }
  0xb9   :  { %558 = vmatpush.msrb.mxu3 %v5133_v12 }
  0xbb   :  { %559 = vmatpush.msrb.mxu3 %v5145_v14 }
  0xbd   :  { %560 = vmatpush.msrb.mxu3 %v5155_v16 }
  0xbf   :  { %561 = vmatpush.msrb.mxu3 %v5168_v18 }
 0x12d   :  { %v222_v21 = vpop.f32.mrf.mxu0 }
 0x12e   :  { %v223_v28 = vadd.f32 %v5229_v38, %v222_v21 }
 0x130   :  { %v272_v35 = vrot.slane %v223_v28, 6 }
 0x133   :  { %v182_v57 = vpop.f32.mrf.mxu3 }
 0x134   :  { %v226_v58 = vrot.slane %v182_v57, 6 }
 0x136   :  { %v228_v59 = vadd.f32 %v226_v58, %v5123_v8 }
 0x138   :  { %v4370_v60 = vmul.f32 -1.442695, %v228_v59  ;;  %v5288_v59 = vpop.f32.mrf.mxu2 }
 0x13a   :  { %4697 = vpow2.f32 %v4370_v60 }
 0x13b   :  { %v202_v61 = vpop.f32.mrf.mxu3 }
 0x13c   :  { %v249_v62 = vrot.slane %v202_v61, 6 }
 0x13e   :  { %v251_v63 = vadd.f32 %v249_v62, %v5126_v9 }
 0x140   :  { %v4698_v0 = vpop.eup %4697  ;;  %v4371_v1 = vmul.f32 -1.442695, %v251_v63 }
 0x141   :  { %v232_v3 = vadd.f32 1.0, %v4698_v0 }
 0x142   :  { %4699 = vpow2.f32 %v4371_v1 }
 0x143   :  { %4701 = vrcp.f32 %v232_v3  ;;  %v244_v23 = vand.u32 2147483648, %v232_v3  ;;  %v242_v30 = vand.u32 2147483647, %v232_v3  ;;  %vm238_vm12 = vweird.f32 %v232_v3 }
 0x145   :  { %v245_v33 = vor.u32 1.1754944e-38, %v244_v23  ;;  %vm243_vm14 = vcmp.eq.f32.partialorder %v242_v30, 8.507059e+37 }
 0x148   :  { %v4700_v7 = vpop.eup %4699 }
 0x149   :  { %v4702_v10 = vpop.eup %4701  ;;  %v255_v11 = vadd.f32 1.0, %v4700_v7 }
 0x14a   :  { %v234_v20 = vmul.f32 %v4702_v10, %v232_v3  ;;  %vm239_vm11 = vweird.f32 %v4702_v10 }
 0x14b   :  { %4703 = vrcp.f32 %v255_v11  ;;  %vm240_vm13 = vmor %vm238_vm12, %vm239_vm11  ;;  %v267_v47 = vand.u32 2147483648, %v255_v11  ;;  %vm261_vm1 = vweird.f32 %v255_v11  ;;  %v265_v48 = vand.u32 2147483647, %v255_v11 }
 0x14c   :  { %v235_v22 = vsub.f32 1.0, %v234_v20 }
 0x14d   :  { %v268_v52 = vor.u32 1.1754944e-38, %v267_v47  ;;  %vm266_vm3 = vcmp.eq.f32.partialorder %v265_v48, 8.507059e+37 }
 0x14e   :  { %v236_v29 = vmul.f32 %v4702_v10, %v235_v22 }
 0x150   :  { %v237_v31 = vadd.f32 %v4702_v10, %v236_v29 }
 0x151   :  { %v4704_v32 = vpop.eup %4703 }
 0x152   :  { %v241_v36 = vsel %vm240_vm13, %v4702_v10, %v237_v31  ;;  %v257_v37 = vmul.f32 %v4704_v32, %v255_v11  ;;  %vm262_vm15 = vweird.f32 %v4704_v32 }
 0x153   :  { %v246_v39 = vsel %vm243_vm14, %v245_v33, %v241_v36  ;;  %vm263_vm2 = vmor %vm261_vm1, %vm262_vm15  ;;  %vm413_vm15 = vcmask 259076  }
 0x154   :  { %v274_v40 = vmul.f32 %v272_v35, %v246_v39  ;;  %v258_v41 = vsub.f32 1.0, %v257_v37 }
 0x156   :  { %v275_v43 = vadd.f32 %v274_v40, %v5233_v42  ;;  %v259_v44 = vmul.f32 %v4704_v32, %v258_v41 }
 0x158   :  { %4705 = vtanh.f32 %v275_v43  ;;  %v260_v45 = vadd.f32 %v4704_v32, %v259_v44 }
 0x15a   :  { %v264_v50 = vsel %vm263_vm2, %v4704_v32, %v260_v45 }
 0x15b   :  { %v269_v54 = vsel %vm266_vm3, %v268_v52, %v264_v50 }
 0x15e   :  { %v4706_v46 = vpop.eup %4705 }
 0x15f   :  { %v278_v49 = vrot.slane %v4706_v46, 2 }
 0x161   :  { %v280_v51 = vsub.f32 %v5237_v56, %v278_v49  ;;  %v5286_v56 = vpop.f32.mrf.mxu1 }
 0x163   :  { %v282_v53 = vrot.slane %v280_v51, 6 }
 0x165   :  { %v284_v55 = vmul.f32 %v282_v53, %v269_v54 }
 0x167   :  { %v5266_v57 = vadd.f32 %v4706_v46, %v284_v55 }
 0x169   :  { %287 = vst.msk [vmem:[#allocation2] sm:$0xc] %vm286_vm4, %v5266_v57  ;;  %v289_v58 = vrot.slane %v5266_v57, 2 }
 0x16b   :  { %4372 = vmatmul.msk.f32.vlgmr.msrb.gmra.mxu1 %vm161_vm10, %v289_v58  ;;  %4373 = vmatmul.msk.f32.vlgmr.msrb.gmra.mxu2 %vm161_vm10, %v289_v58 }
 0x16c   :  { %4374 = vmatmul.msk.f32.vlgmr.msra.gmra.mxu3 %vm161_vm10, %v289_v58  ;;  %598 = vmatpush.msrb.mxu1 %v5138_v13 }
 0x16d   :  { %674 = vmatpush.msrb.mxu2 %v5133_v12  ;;  %694 = vmatpush.msra.mxu3 %v5187_v24 }
 0x16e   :  { %599 = vmatpush.msrb.mxu1 %v5150_v15 }
 0x16f   :  { %675 = vmatpush.msrb.mxu2 %v5145_v14  ;;  %695 = vmatpush.msra.mxu3 %v5192_v25 }
 0x170   :  { %600 = vmatpush.msrb.mxu1 %v5160_v17 }
 0x171   :  { %676 = vmatpush.msrb.mxu2 %v5155_v16  ;;  %696 = vmatpush.msra.mxu3 %v5199_v26 }
 0x172   :  { %601 = vmatpush.msrb.mxu1 %v5173_v19 }
 0x173   :  { %677 = vmatpush.msrb.mxu2 %v5168_v18  ;;  %697 = vmatpush.msra.mxu3 %v5208_v27 }
 0x1e8   :  { %v309_v60 = vpop.f32.mrf.mxu1 }
 0x1e9   :  { %v353_v61 = vrot.slane %v309_v60, 4 }
 0x1eb   :  { %v355_v62 = vadd.f32 %v353_v61, %v5123_v8 }
 0x1ed   :  { %v4375_v63 = vmul.f32 -1.442695, %v355_v62 }
 0x1ee   :  { %v329_v0 = vpop.f32.mrf.mxu2 }
 0x1ef   :  { %4707 = vpow2.f32 %v4375_v63  ;;  %v376_v1 = vrot.slane %v329_v0, 4  ;;  %v349_v28 = vpop.f32.mrf.mxu3 }
 0x1f0   :  { %v350_v31 = vadd.f32 %v5229_v38, %v349_v28 }
 0x1f1   :  { %v378_v3 = vadd.f32 %v376_v1, %v5126_v9 }
 0x1f2   :  { %v399_v41 = vrot.slane %v350_v31, 4 }
 0x1f3   :  { %v4376_v7 = vmul.f32 -1.442695, %v378_v3 }
 0x1f5   :  { %v4708_v10 = vpop.eup %4707  ;;  %4709 = vpow2.f32 %v4376_v7 }
 0x1f6   :  { %v359_v11 = vadd.f32 1.0, %v4708_v10 }
 0x1f8   :  { %4711 = vrcp.f32 %v359_v11  ;;  %v371_v30 = vand.u32 2147483648, %v359_v11  ;;  %v369_v33 = vand.u32 2147483647, %v359_v11  ;;  %vm365_vm6 = vweird.f32 %v359_v11 }
 0x1fa   :  { %v372_v39 = vor.u32 1.1754944e-38, %v371_v30  ;;  %vm370_vm8 = vcmp.eq.f32.partialorder %v369_v33, 8.507059e+37 }
 0x1fb   :  { %v4710_v20 = vpop.eup %4709 }
 0x1fc   :  { %v382_v21 = vadd.f32 1.0, %v4710_v20 }
 0x1fe   :  { %v4712_v22 = vpop.eup %4711  ;;  %4713 = vrcp.f32 %v382_v21  ;;  %v394_v50 = vand.u32 2147483648, %v382_v21  ;;  %vm388_vm12 = vweird.f32 %v382_v21  ;;  %v392_v51 = vand.u32 2147483647, %v382_v21 }
 0x1ff   :  { %v361_v23 = vmul.f32 %v4712_v22, %v359_v11  ;;  %vm366_vm5 = vweird.f32 %v4712_v22 }
 0x200   :  { %vm367_vm7 = vmor %vm365_vm6, %vm366_vm5  ;;  %v395_v55 = vor.u32 1.1754944e-38, %v394_v50  ;;  %vm393_vm14 = vcmp.eq.f32.partialorder %v392_v51, 8.507059e+37 }
 0x201   :  { %v362_v29 = vsub.f32 1.0, %v361_v23 }
 0x203   :  { %v363_v32 = vmul.f32 %v4712_v22, %v362_v29 }
 0x204   :  { %v4714_v35 = vpop.eup %4713 }
 0x205   :  { %v364_v36 = vadd.f32 %v4712_v22, %v363_v32  ;;  %v384_v37 = vmul.f32 %v4714_v35, %v382_v21  ;;  %vm389_vm11 = vweird.f32 %v4714_v35 }
 0x206   :  { %vm390_vm13 = vmor %vm388_vm12, %vm389_vm11  ;;  %vm540_vm12 = vcmask 261126  }
 0x207   :  { %v368_v40 = vsel %vm367_vm7, %v4712_v22, %v364_v36  ;;  %v385_v45 = vsub.f32 1.0, %v384_v37 }
 0x208   :  { %v373_v43 = vsel %vm370_vm8, %v372_v39, %v368_v40 }
 0x209   :  { %v401_v44 = vmul.f32 %v399_v41, %v373_v43  ;;  %v386_v47 = vmul.f32 %v4714_v35, %v385_v45 }
 0x20b   :  { %v402_v46 = vadd.f32 %v401_v44, %v5233_v42  ;;  %v387_v48 = vadd.f32 %v4714_v35, %v386_v47 }
 0x20d   :  { %4715 = vtanh.f32 %v402_v46  ;;  %v391_v53 = vsel %vm390_vm13, %v4714_v35, %v387_v48 }
 0x20e   :  { %v396_v60 = vsel %vm393_vm14, %v395_v55, %v391_v53 }
 0x213   :  { %v4716_v49 = vpop.eup %4715 }
 0x214   :  { %v405_v52 = vrot.slane %v4716_v49, 2 }
 0x216   :  { %v407_v54 = vsub.f32 %v5266_v57, %v405_v52 }
 0x218   :  { %v409_v58 = vrot.slane %v407_v54, 6 }
 0x21a   :  { %v411_v61 = vmul.f32 %v409_v58, %v396_v60 }
 0x21c   :  { %v5295_v62 = vadd.f32 %v4716_v49, %v411_v61 }
 0x21e   :  { %414 = vst.msk [vmem:[#allocation2] sm:$0x30] %vm413_vm15, %v5295_v62  ;;  %v416_v63 = vrot.slane %v5295_v62, 4 }
 0x220   :  { %4377 = vmatmul.msk.f32.vlgmr.msra.gmra.mxu0 %vm161_vm10, %v416_v63  ;;  %4378 = vmatmul.msk.f32.vlgmr.msra.gmra.mxu1 %vm161_vm10, %v416_v63 }
 0x221   :  { %4379 = vmatmul.msk.f32.vlgmr.msra.gmra.mxu2 %vm161_vm10, %v416_v63  ;;  %714 = vmatpush.msra.mxu0 %v5138_v13 }
 0x222   :  { %800 = vmatpush.msra.mxu1 %v5133_v12  ;;  %820 = vmatpush.msra.mxu2 %v5187_v24 }
 0x223   :  { %715 = vmatpush.msra.mxu0 %v5150_v15 }
 0x224   :  { %801 = vmatpush.msra.mxu1 %v5145_v14  ;;  %821 = vmatpush.msra.mxu2 %v5192_v25 }
 0x225   :  { %716 = vmatpush.msra.mxu0 %v5160_v17 }
 0x226   :  { %802 = vmatpush.msra.mxu1 %v5155_v16  ;;  %822 = vmatpush.msra.mxu2 %v5199_v26 }
 0x227   :  { %717 = vmatpush.msra.mxu0 %v5173_v19 }
 0x228   :  { %803 = vmatpush.msra.mxu1 %v5168_v18  ;;  %823 = vmatpush.msra.mxu2 %v5208_v27 }
 0x29d   :  { %v436_v57 = vpop.f32.mrf.mxu0  ;;  %v456_v0 = vpop.f32.mrf.mxu1 }
 0x29e   :  { %v480_v1 = vrot.slane %v436_v57, 2  ;;  %v503_v3 = vrot.slane %v456_v0, 2 }
 0x2a0   :  { %v482_v7 = vadd.f32 %v480_v1, %v5123_v8  ;;  %v505_v10 = vadd.f32 %v503_v3, %v5126_v9 }
 0x2a2   :  { %v4380_v11 = vmul.f32 -1.442695, %v482_v7  ;;  %v4381_v20 = vmul.f32 -1.442695, %v505_v10 }
 0x2a4   :  { %4717 = vpow2.f32 %v4380_v11  ;;  %v476_v31 = vpop.f32.mrf.mxu2 }
 0x2a5   :  { %4719 = vpow2.f32 %v4381_v20  ;;  %v477_v8 = vadd.f32 %v5229_v38, %v476_v31  ;;  %v5353_v31 = vadd.f32 %v5223_v34, %v5288_v59 }
 0x2a7   :  { %v526_v43 = vrot.slane %v477_v8, 2 }
 0x2aa   :  { %v4718_v21 = vpop.eup %4717 }
 0x2ab   :  { %v4720_v22 = vpop.eup %4719  ;;  %v486_v23 = vadd.f32 1.0, %v4718_v21 }
 0x2ac   :  { %v509_v28 = vadd.f32 1.0, %v4720_v22 }
 0x2ad   :  { %4721 = vrcp.f32 %v486_v23  ;;  %v498_v33 = vand.u32 2147483648, %v486_v23  ;;  %v496_v9 = vand.u32 2147483647, %v486_v23  ;;  %vm492_vm2 = vweird.f32 %v486_v23 }
 0x2ae   :  { %4723 = vrcp.f32 %v509_v28  ;;  %v521_v51 = vand.u32 2147483648, %v509_v28  ;;  %vm515_vm7 = vweird.f32 %v509_v28  ;;  %v519_v52 = vand.u32 2147483647, %v509_v28 }
 0x2af   :  { %v499_v40 = vor.u32 1.1754944e-38, %v498_v33  ;;  %vm497_vm5 = vcmp.eq.f32.partialorder %v496_v9, 8.507059e+37 }
 0x2b0   :  { %v522_v58 = vor.u32 1.1754944e-38, %v521_v51  ;;  %vm520_vm11 = vcmp.eq.f32.partialorder %v519_v52, 8.507059e+37 }
 0x2b3   :  { %v4722_v29 = vpop.eup %4721 }
 0x2b4   :  { %v488_v30 = vmul.f32 %v4722_v29, %v486_v23  ;;  %v4724_v35 = vpop.eup %4723  ;;  %vm493_vm1 = vweird.f32 %v4722_v29 }
 0x2b5   :  { %v511_v39 = vmul.f32 %v4724_v35, %v509_v28  ;;  %vm494_vm3 = vmor %vm492_vm2, %vm493_vm1  ;;  %vm516_vm6 = vweird.f32 %v4724_v35 }
 0x2b6   :  { %v489_v32 = vsub.f32 1.0, %v488_v30  ;;  %vm517_vm8 = vmor %vm515_vm7, %vm516_vm6 }
 0x2b7   :  { %v512_v46 = vsub.f32 1.0, %v511_v39 }
 0x2b8   :  { %v490_v36 = vmul.f32 %v4722_v29, %v489_v32 }
 0x2b9   :  { %v513_v48 = vmul.f32 %v4724_v35, %v512_v46 }
 0x2ba   :  { %v491_v37 = vadd.f32 %v4722_v29, %v490_v36 }
 0x2bb   :  { %v514_v49 = vadd.f32 %v4724_v35, %v513_v48 }
 0x2bc   :  { %v495_v41 = vsel %vm494_vm3, %v4722_v29, %v491_v37 }
 0x2bd   :  { %v500_v44 = vsel %vm497_vm5, %v499_v40, %v495_v41  ;;  %v518_v54 = vsel %vm517_vm8, %v4724_v35, %v514_v49 }
 0x2be   :  { %v528_v45 = vmul.f32 %v526_v43, %v500_v44  ;;  %v523_v61 = vsel %vm520_vm11, %v522_v58, %v518_v54 }
 0x2c0   :  { %v529_v47 = vadd.f32 %v528_v45, %v5233_v42 }
 0x2c2   :  { %4725 = vtanh.f32 %v529_v47 }
 0x2c8   :  { %v4726_v50 = vpop.eup %4725 }
 0x2c9   :  { %v532_v53 = vrot.slane %v4726_v50, 2 }
 0x2cb   :  { %v534_v55 = vsub.f32 %v5295_v62, %v532_v53 }
 0x2cd   :  { %v536_v60 = vrot.slane %v534_v55, 6 }
 0x2cf   :  { %v538_v63 = vmul.f32 %v536_v60, %v523_v61 }
 0x2d1   :  { %v5320_v42 = vadd.f32 %v4726_v50, %v538_v63 }
 0x2d3   :  { %541 = vst.msk [vmem:[#allocation2] sm:$0xc0] %vm540_vm12, %v5320_v42  ;;  %v543_v57 = vrot.slane %v5320_v42, 6 }
 0x2d5   :  { %4382 = vmatmul.msk.f32.vlgmr.msrb.gmra.mxu3 %vm161_vm10, %v543_v57  ;;  %4383 = vmatmul.msk.f32.vlgmr.msrb.gmra.mxu0 %vm161_vm10, %v543_v57 }
 0x2d6   :  { %4384 = vmatmul.msk.f32.vlgmr.msrb.gmra.mxu1 %vm161_vm10, %v543_v57  ;;  %840 = vmatpush.msrb.mxu3 %v5138_v13 }
 0x2d7   :  { %926 = vmatpush.msrb.mxu0 %v5133_v12  ;;  %946 = vmatpush.msrb.mxu1 %v5187_v24  ;;  %v5342_v24 = vadd.f32 %v5120_v5, %v5286_v56 }
 0x2d8   :  { %841 = vmatpush.msrb.mxu3 %v5150_v15 }
 0x2d9   :  { %927 = vmatpush.msrb.mxu0 %v5145_v14  ;;  %947 = vmatpush.msrb.mxu1 %v5192_v25  ;;  %v5347_v25 = vadd.f32 %v5115_v4, %v5261_v6 }
 0x2da   :  { %842 = vmatpush.msrb.mxu3 %v5160_v17 }
 0x2db   :  { %928 = vmatpush.msrb.mxu0 %v5155_v16  ;;  %948 = vmatpush.msrb.mxu1 %v5199_v26 }
 0x2dc   :  { %843 = vmatpush.msrb.mxu3 %v5173_v19 }
 0x2dd   :  { %929 = vmatpush.msrb.mxu0 %v5168_v18  ;;  %949 = vmatpush.msrb.mxu1 %v5208_v27 }
 0x352   :  { %v583_v12 = vpop.f32.mrf.mxu0 }
 0x353   :  { %v626_v14 = vadd.f32 %v583_v12, %v5342_v24  ;;  %v603_v20 = vpop.f32.mrf.mxu1 }
 0x354   :  { %v604_v28 = vadd.f32 %v5229_v38, %v603_v20 }
 0x355   :  { %v4386_v62 = vmul.f32 -1.442695, %v626_v14 }
 0x358   :  { %v563_v16 = vpop.f32.mrf.mxu3 }
 0x359   :  { %v606_v26 = vadd.f32 %v563_v16, %v5347_v25 }
 0x35b   :  { %v4385_v0 = vmul.f32 -1.442695, %v606_v26 }
 0x35d   :  { %4727 = vpow2.f32 %v4385_v0 }
 0x35e   :  { %4729 = vpow2.f32 %v4386_v62 }
 0x363   :  { %v4728_v18 = vpop.eup %4727 }
 0x364   :  { %v4730_v27 = vpop.eup %4729  ;;  %v610_v1 = vadd.f32 1.0, %v4728_v18 }
 0x365   :  { %v630_v3 = vadd.f32 1.0, %v4730_v27 }
 0x366   :  { %4731 = vrcp.f32 %v610_v1  ;;  %v622_v10 = vand.u32 2147483648, %v610_v1  ;;  %v620_v6 = vand.u32 2147483647, %v610_v1  ;;  %vm616_vm14 = vweird.f32 %v610_v1 }
 0x367   :  { %4733 = vrcp.f32 %v630_v3  ;;  %v642_v37 = vand.u32 2147483648, %v630_v3  ;;  %vm636_vm5 = vweird.f32 %v630_v3  ;;  %v640_v39 = vand.u32 2147483647, %v630_v3 }
 0x368   :  { %v623_v23 = vor.u32 1.1754944e-38, %v622_v10  ;;  %vm621_vm2 = vcmp.eq.f32.partialorder %v620_v6, 8.507059e+37 }
 0x369   :  { %v643_v44 = vor.u32 1.1754944e-38, %v642_v37  ;;  %vm641_vm7 = vcmp.eq.f32.partialorder %v640_v39, 8.507059e+37 }
 0x36c   :  { %v4732_v5 = vpop.eup %4731 }
 0x36d   :  { %v612_v56 = vmul.f32 %v4732_v5, %v610_v1  ;;  %v4734_v11 = vpop.eup %4733  ;;  %vm617_vm13 = vweird.f32 %v4732_v5 }
 0x36e   :  { %v632_v22 = vmul.f32 %v4734_v11, %v630_v3  ;;  %vm618_vm1 = vmor %vm616_vm14, %vm617_vm13  ;;  %vm637_vm3 = vweird.f32 %v4734_v11 }
 0x36f   :  { %v613_v7 = vsub.f32 1.0, %v612_v56  ;;  %vm638_vm6 = vmor %vm636_vm5, %vm637_vm3 }
 0x370   :  { %v633_v33 = vsub.f32 1.0, %v632_v22 }
 0x371   :  { %v614_v4 = vmul.f32 %v4732_v5, %v613_v7 }
 0x372   :  { %v634_v8 = vmul.f32 %v4734_v11, %v633_v33  ;;  %v4640_v33 = vld [vmem:[%s6455_s1 + $0x18] sm:$0xff] }
 0x373   :  { %v615_v21 = vadd.f32 %v4732_v5, %v614_v4 }
 0x374   :  { %v635_v36 = vadd.f32 %v4734_v11, %v634_v8 }
 0x375   :  { %v619_v29 = vsel %vm618_vm1, %v4732_v5, %v615_v21 }
 0x376   :  { %v624_v30 = vsel %vm621_vm2, %v623_v23, %v619_v29  ;;  %v639_v41 = vsel %vm638_vm6, %v4734_v11, %v635_v36 }
 0x377   :  { %v646_v32 = vmul.f32 %v624_v30, %v604_v28  ;;  %v644_v59 = vsel %vm641_vm7, %v643_v44, %v639_v41 }
 0x379   :  { %v647_v35 = vadd.f32 %v646_v32, %v5353_v31 }
 0x37b   :  { %4735 = vtanh.f32 %v647_v35 }
 0x381   :  { %v4736_v9 = vpop.eup %4735 }
 0x382   :  { %v650_v40 = vrot.slane %v4736_v9, 2 }
 0x384   :  { %v652_v43 = vsub.f32 %v5320_v42, %v650_v40 }
 0x386   :  { %v654_v34 = vrot.slane %v652_v43, 6 }
 0x388   :  { %v656_v45 = vmul.f32 %v654_v34, %v644_v59 }
 0x38a   :  { %v657_v46 = vadd.f32 %v4736_v9, %v656_v45 }
 0x38c   :  { %658 = vst.msk [vmem:[#allocation2 + $0x8] sm:$0x3] %vm159_vm9, %v657_v46  ;;  %4387 = vmatmul.msk.f32.vlgmr.msrb.gmra.mxu2 %vm161_vm10, %v657_v46  ;;  %4388 = vmatmul.msk.f32.vlgmr.msra.gmra.mxu3 %vm161_vm10, %v657_v46 }
 0x38d   :  { %4389 = vmatmul.msk.f32.vlgmr.msra.gmra.mxu0 %vm161_vm10, %v657_v46  ;;  %966 = vmatpush.msrb.mxu2 %v5138_v13 }
 0x38e   :  { %1053 = vmatpush.bf16.msra.mxu3 %v4640_v33 }
 0x38f   :  { %967 = vmatpush.msrb.mxu2 %v5150_v15 }
 0x391   :  { %968 = vmatpush.msrb.mxu2 %v5160_v17 }
 0x393   :  { %969 = vmatpush.msrb.mxu2 %v5173_v19 }
 0x40a   :  { %v719_v60 = vpop.f32.mrf.mxu0 }
 0x40b   :  { %v720_v57 = vadd.f32 %v5229_v38, %v719_v60 }
 0x40d   :  { %v769_v0 = vrot.slane %v720_v57, 6 }
 0x40f   :  { %v679_v47 = vpop.f32.mrf.mxu2  ;;  %v699_v48 = vpop.f32.mrf.mxu3 }
 0x410   :  { %v723_v49 = vrot.slane %v679_v47, 6  ;;  %v746_v50 = vrot.slane %v699_v48, 6  ;;  %v4641_v48 = vld [vmem:[%s6455_s1 + $0x20] sm:$0xff] }
 0x411   :  { %1077 = vmatpush.bf16.msra.mxu0 %v4641_v48  ;;  %v5456_v48 = vld [vmem:[%s6456_s2 + $0x70] sm:$0xff] }
 0x412   :  { %v725_v51 = vadd.f32 %v723_v49, %v5347_v25  ;;  %v748_v52 = vadd.f32 %v746_v50, %v5342_v24  ;;  %v4642_v49 = vld [vmem:[%s6455_s1 + $0x28] sm:$0xff] }
 0x414   :  { %v4390_v53 = vmul.f32 -1.442695, %v725_v51  ;;  %v4391_v54 = vmul.f32 -1.442695, %v748_v52 }
 0x416   :  { %4737 = vpow2.f32 %v4390_v53 }
 0x417   :  { %4739 = vpow2.f32 %v4391_v54 }
 0x41c   :  { %v4738_v55 = vpop.eup %4737 }
 0x41d   :  { %v4740_v13 = vpop.eup %4739  ;;  %v729_v58 = vadd.f32 1.0, %v4738_v55 }
 0x41e   :  { %v752_v15 = vadd.f32 1.0, %v4740_v13 }
 0x41f   :  { %4741 = vrcp.f32 %v729_v58  ;;  %v741_v63 = vand.u32 2147483648, %v729_v58  ;;  %v739_v14 = vand.u32 2147483647, %v729_v58  ;;  %vm735_vm11 = vweird.f32 %v729_v58 }
 0x420   :  { %4743 = vrcp.f32 %v752_v15  ;;  %v764_v11 = vand.u32 2147483648, %v752_v15  ;;  %vm758_vm2 = vweird.f32 %v752_v15  ;;  %v762_v4 = vand.u32 2147483647, %v752_v15 }
 0x421   :  { %v742_v26 = vor.u32 1.1754944e-38, %v741_v63  ;;  %vm740_vm14 = vcmp.eq.f32.partialorder %v739_v14, 8.507059e+37 }
 0x422   :  { %v765_v22 = vor.u32 1.1754944e-38, %v764_v11  ;;  %vm763_vm5 = vcmp.eq.f32.partialorder %v762_v4, 8.507059e+37 }
 0x425   :  { %v4742_v17 = vpop.eup %4741 }
 0x426   :  { %v731_v19 = vmul.f32 %v4742_v17, %v729_v58  ;;  %v4744_v42 = vpop.eup %4743  ;;  %vm736_vm8 = vweird.f32 %v4742_v17 }
 0x427   :  { %vm737_vm13 = vmor %vm735_vm11, %vm736_vm8  ;;  %v754_v62 = vmul.f32 %v4744_v42, %v752_v15  ;;  %vm759_vm1 = vweird.f32 %v4744_v42 }
 0x428   :  { %v732_v61 = vsub.f32 1.0, %v731_v19  ;;  %vm760_vm3 = vmor %vm758_vm2, %vm759_vm1 }
 0x429   :  { %v755_v3 = vsub.f32 1.0, %v754_v62 }
 0x42a   :  { %v733_v12 = vmul.f32 %v4742_v17, %v732_v61 }
 0x42b   :  { %v756_v56 = vmul.f32 %v4744_v42, %v755_v3 }
 0x42c   :  { %v734_v16 = vadd.f32 %v4742_v17, %v733_v12 }
 0x42d   :  { %v757_v7 = vadd.f32 %v4744_v42, %v756_v56  ;;  %v5007_v56 = vld [vmem:[%s6454_s0] sm:$0xff] }
 0x42e   :  { %v738_v18 = vsel %vm737_vm13, %v4742_v17, %v734_v16 }
 0x42f   :  { %v743_v27 = vsel %vm740_vm14, %v742_v26, %v738_v18  ;;  %v761_v20 = vsel %vm760_vm3, %v4744_v42, %v757_v7  ;;  %v4675_v7 = vld [vmem:[%s6456_s2 + $0x184] ss:$0 sm:$0xff] }
 0x430   :  { %v771_v1 = vmul.f32 %v769_v0, %v743_v27  ;;  %v766_v28 = vsel %vm763_vm5, %v765_v22, %v761_v20 }
 0x432   :  { %v772_v5 = vadd.f32 %v771_v1, %v5353_v31 }
 0x434   :  { %4745 = vtanh.f32 %v772_v5 }
 0x43a   :  { %v4746_v10 = vpop.eup %4745 }
 0x43b   :  { %v775_v6 = vrot.slane %v4746_v10, 2 }
 0x43d   :  { %v777_v21 = vsub.f32 %v657_v46, %v775_v6 }
 0x43f   :  { %v779_v23 = vrot.slane %v777_v21, 6 }
 0x441   :  { %v781_v29 = vmul.f32 %v779_v23, %v766_v28 }
 0x443   :  { %v5369_v30 = vadd.f32 %v4746_v10, %v781_v29 }
 0x445   :  { %783 = vst.msk [vmem:[#allocation2 + $0x8] sm:$0xc] %vm286_vm4, %v5369_v30  ;;  %v785_v32 = vrot.slane %v5369_v30, 2 }
 0x447   :  { %4392 = vmatmul.msk.f32.vlgmr.msra.gmra.mxu1 %vm161_vm10, %v785_v32  ;;  %4393 = vmatmul.msk.f32.vlgmr.msra.gmra.mxu2 %vm161_vm10, %v785_v32 }
 0x448   :  { %4394 = vmatmul.msk.f32.vlgmr.msrb.gmra.mxu3 %vm161_vm10, %v785_v32  ;;  %1101 = vmatpush.bf16.msra.mxu1 %v4642_v49  ;;  %v5461_v49 = vld [vmem:[%s6456_s2 + $0xb0] sm:$0xff] }
 0x450   :  { %4406 = vmatmul.msk.bf16.vlgmr.msra.gmra.mxu3 %vm36_vm0, %v5101_v2 }
 0x4c4   :  { %v805_v35 = vpop.f32.mrf.mxu1 }
 0x4c5   :  { %v849_v8 = vrot.slane %v805_v35, 4 }
 0x4c7   :  { %v851_v36 = vadd.f32 %v849_v8, %v5347_v25 }
 0x4c9   :  { %v4395_v9 = vmul.f32 -1.442695, %v851_v36  ;;  %v4676_v36 = vld [vmem:[%s6456_s2 + $0x185] ss:$0 sm:$0xff] }
 0x4ca   :  { %v825_v37 = vpop.f32.mrf.mxu2 }
 0x4cb   :  { %4747 = vpow2.f32 %v4395_v9  ;;  %v872_v39 = vrot.slane %v825_v37, 4  ;;  %v845_v46 = vpop.f32.mrf.mxu3  ;;  %v5425_v9 = vld [vmem:[%s6456_s2 + $0x186] ss:$0 sm:$0xff] }
 0x4cc   :  { %v846_v51 = vadd.f32 %v5229_v38, %v845_v46 }
 0x4cd   :  { %v874_v40 = vadd.f32 %v872_v39, %v5342_v24 }
 0x4ce   :  { %v895_v17 = vrot.slane %v846_v51, 4  ;;  %v5471_v51 = vld [vmem:[%s6456_s2 + $0x68] sm:$0xff] }
 0x4cf   :  { %v4396_v41 = vmul.f32 -1.442695, %v874_v40 }
 0x4d1   :  { %v4748_v43 = vpop.eup %4747  ;;  %4749 = vpow2.f32 %v4396_v41 }
 0x4d2   :  { %v855_v44 = vadd.f32 1.0, %v4748_v43 }
 0x4d3   :  { %v1055_v10 = vpop.f32.mrf.mxu3 }
 0x4d4   :  { %4751 = vrcp.f32 %v855_v44  ;;  %v867_v50 = vand.u32 2147483648, %v855_v44  ;;  %v865_v53 = vand.u32 2147483647, %v855_v44  ;;  %vm861_vm7 = vweird.f32 %v855_v44 }
 0x4d5   :  { %v5409_v11 = vadd.f32 %v4675_v7, %v1055_v10 }
 0x4d6   :  { %v868_v58 = vor.u32 1.1754944e-38, %v867_v50  ;;  %vm866_vm11 = vcmp.eq.f32.partialorder %v865_v53, 8.507059e+37 }
 0x4d7   :  { %v4750_v34 = vpop.eup %4749 }
 0x4d8   :  { %v878_v59 = vadd.f32 1.0, %v4750_v34 }
 0x4da   :  { %v4752_v45 = vpop.eup %4751  ;;  %4753 = vrcp.f32 %v878_v59  ;;  %v890_v12 = vand.u32 2147483648, %v878_v59  ;;  %vm884_vm14 = vweird.f32 %v878_v59  ;;  %v888_v14 = vand.u32 2147483647, %v878_v59 }
 0x4db   :  { %v857_v2 = vmul.f32 %v4752_v45, %v855_v44  ;;  %vm862_vm6 = vweird.f32 %v4752_v45  ;;  %v1057_v4 = vpop.f32.mrf.mxu3 }
 0x4dc   :  { %vm863_vm8 = vmor %vm861_vm7, %vm862_vm6  ;;  %v891_v0 = vor.u32 1.1754944e-38, %v890_v12  ;;  %vm889_vm2 = vcmp.eq.f32.partialorder %v888_v14, 8.507059e+37  ;;  %v5411_v6 = vadd.f32 %v4675_v7, %v1057_v4  ;;  %v5526_v12 = vld [vmem:[%s6456_s2 + $0x88] sm:$0xff] }
 0x4dd   :  { %v858_v47 = vsub.f32 1.0, %v857_v2 }
 0x4de   :  { %v4417_v20 = vmul.f32 -1.442695, %v5411_v6 }
 0x4df   :  { %v859_v52 = vmul.f32 %v4752_v45, %v858_v47 }
 0x4e0   :  { %v4754_v54 = vpop.eup %4753 }
 0x4e1   :  { %v860_v55 = vadd.f32 %v4752_v45, %v859_v52  ;;  %v880_v13 = vmul.f32 %v4754_v54, %v878_v59  ;;  %vm885_vm13 = vweird.f32 %v4754_v54  ;;  %v5441_v59 = vld [vmem:[%s6456_s2 + $0x78] sm:$0xff]  ;;  %v5476_v52 = vld [vmem:[%s6456_s2 + $0xa8] sm:$0xff] }
 0x4e2   :  { %vm886_vm1 = vmor %vm884_vm14, %vm885_vm13  ;;  %1182 = vmatpush.msra.mxu2 %v5441_v59 }
 0x4e3   :  { %v864_v15 = vsel %vm863_vm8, %v4752_v45, %v860_v55  ;;  %v881_v61 = vsub.f32 1.0, %v880_v13  ;;  %v5446_v45 = vld [vmem:[%s6456_s2 + $0xb8] sm:$0xff]  ;;  %v5487_v55 = vld [vmem:[%s6456_s2 + $0x60] sm:$0xff] }
 0x4e4   :  { %v869_v19 = vsel %vm866_vm11, %v868_v58, %v864_v15  ;;  %1222 = vmatpush.msrb.mxu3 %v5446_v45  ;;  %1183 = vmatpush.msra.mxu2 %v5456_v48  ;;  %v5492_v13 = vld [vmem:[%s6456_s2 + $0xa0] sm:$0xff] }
 0x4e5   :  { %v897_v60 = vmul.f32 %v895_v17, %v869_v19  ;;  %v882_v38 = vmul.f32 %v4754_v54, %v881_v61  ;;  %v5503_v17 = vld [vmem:[%s6456_s2 + $0x98] sm:$0xff]  ;;  %v5508_v19 = vld [vmem:[%s6456_s2 + $0x90] sm:$0xff] }
 0x4e6   :  { %1223 = vmatpush.msrb.mxu3 %v5461_v49  ;;  %1184 = vmatpush.msra.mxu2 %v5471_v51 }
 0x4e7   :  { %v898_v63 = vadd.f32 %v897_v60, %v5353_v31  ;;  %v883_v42 = vadd.f32 %v4754_v54, %v882_v38 }
 0x4e8   :  { %1224 = vmatpush.msrb.mxu3 %v5476_v52  ;;  %1185 = vmatpush.msra.mxu2 %v5487_v55 }
 0x4e9   :  { %4755 = vtanh.f32 %v898_v63  ;;  %v887_v26 = vsel %vm886_vm1, %v4754_v54, %v883_v42 }
 0x4ea   :  { %v892_v27 = vsel %vm889_vm2, %v891_v0, %v887_v26  ;;  %4757 = vpow2.f32 %v4417_v20  ;;  %1225 = vmatpush.msrb.mxu3 %v5492_v13  ;;  %v5008_v26 = vld [vmem:[%s6456_s2 + $0x183] ss:$0 sm:$0xff] }
 0x4ec   :  { %1434 = vmatpush.msra.mxu3 %v5441_v59 }
 0x4ee   :  { %1435 = vmatpush.msra.mxu3 %v5456_v48 }
 0x4ef   :  { %v4756_v57 = vpop.eup %4755 }
 0x4f0   :  { %v901_v16 = vrot.slane %v4756_v57, 2  ;;  %v4758_v21 = vpop.eup %4757  ;;  %1436 = vmatpush.msra.mxu3 %v5471_v51 }
 0x4f1   :  { %v5414_v22 = vadd.f32 1.0, %v4758_v21 }
 0x4f2   :  { %v903_v62 = vsub.f32 %v5369_v30, %v901_v16  ;;  %1437 = vmatpush.msra.mxu3 %v5487_v55 }
 0x4f3   :  { %4759 = vrcp.f32 %v5414_v22  ;;  %v1137_v63 = vand.u32 2147483648, %v5414_v22 }
 0x4f4   :  { %v905_v18 = vrot.slane %v903_v62, 6 }
 0x4f6   :  { %v907_v1 = vmul.f32 %v905_v18, %v892_v27  ;;  %v5542_v27 = vld [vmem:[%s6456_s2 + $0x80] sm:$0xff] }
 0x4f8   :  { %v5393_v3 = vadd.f32 %v4756_v57, %v907_v1  ;;  %v1135_v57 = vand.u32 2147483647, %v5414_v22 }
 0x4f9   :  { %v5427_v40 = vpop.eup %4759 }
 0x4fa   :  { %909 = vst.msk [vmem:[#allocation2 + $0x8] sm:$0x30] %vm413_vm15, %v5393_v3  ;;  %v911_v5 = vrot.slane %v5393_v3, 4  ;;  %v1127_v41 = vmul.f32 %v5427_v40, %v5414_v22  ;;  %vm1132_vm3 = vweird.f32 %v5427_v40  ;;  %vm5552_vm8 = vcmp.eq.f32.partialorder %v1135_v57, 8.507059e+37 }
 0x4fc   :  { %4397 = vmatmul.msk.f32.vlgmr.msrb.gmra.mxu0 %vm161_vm10, %v911_v5  ;;  %4398 = vmatmul.msk.f32.vlgmr.msrb.gmra.mxu1 %vm161_vm10, %v911_v5  ;;  %v1128_v46 = vsub.f32 1.0, %v1127_v41 }
 0x4fd   :  { %4399 = vmatmul.msk.f32.vlgmr.msrb.gmra.mxu2 %vm161_vm10, %v911_v5  ;;  %1308 = vmatpush.msrb.mxu0 %v5441_v59 }
 0x4fe   :  { %v1129_v54 = vmul.f32 %v5427_v40, %v1128_v46  ;;  %1202 = vmatpush.msrb.mxu2 %v5503_v17  ;;  %1328 = vmatpush.msrb.mxu1 %v5503_v17 }
 0x4ff   :  { %1309 = vmatpush.msrb.mxu0 %v5456_v48 }
 0x500   :  { %v1130_v61 = vadd.f32 %v5427_v40, %v1129_v54  ;;  %1203 = vmatpush.msrb.mxu2 %v5508_v19  ;;  %1329 = vmatpush.msrb.mxu1 %v5508_v19 }
 0x501   :  { %1310 = vmatpush.msrb.mxu0 %v5471_v51 }
 0x502   :  { %1204 = vmatpush.msrb.mxu2 %v5526_v12  ;;  %1330 = vmatpush.msrb.mxu1 %v5526_v12 }
 0x503   :  { %1311 = vmatpush.msrb.mxu0 %v5487_v55 }
 0x504   :  { %4411 = vmatmul.msk.bf16.vlgmr.msra.gmra.mxu0 %vm36_vm0, %v5007_v56  ;;  %4416 = vmatmul.msk.bf16.vlgmr.msra.gmra.mxu1 %vm36_vm0, %v5007_v56  ;;  %vm1131_vm0 = vweird.f32 %v5414_v22  ;;  %v1138_v56 = vor.u32 1.1754944e-38, %v1137_v63 }
 0x505   :  { %vm5518_vm5 = vmor %vm1131_vm0, %vm1132_vm3  ;;  %1454 = vmatpush.msra.mxu0 %v5503_v17  ;;  %1205 = vmatpush.msrb.mxu2 %v5542_v27 }
 0x506   :  { %v1134_v5 = vsel %vm5518_vm5, %v5427_v40, %v1130_v61  ;;  %1331 = vmatpush.msrb.mxu1 %v5542_v27 }
 0x507   :  { %1455 = vmatpush.msra.mxu0 %v5508_v19 }
 0x508   :  { %1474 = vmatpush.msra.mxu1 %v5446_v45 }
 0x509   :  { %1456 = vmatpush.msra.mxu0 %v5526_v12 }
 0x50a   :  { %1475 = vmatpush.msra.mxu1 %v5461_v49 }
 0x50b   :  { %1457 = vmatpush.msra.mxu0 %v5542_v27 }
 0x50c   :  { %1476 = vmatpush.msra.mxu1 %v5476_v52 }
 0x50e   :  { %1477 = vmatpush.msra.mxu1 %v5492_v13 }
 0x579   :  { %v931_v23 = vpop.f32.mrf.mxu0  ;;  %v951_v28 = vpop.f32.mrf.mxu1 }
 0x57a   :  { %v975_v29 = vrot.slane %v931_v23, 2  ;;  %v998_v30 = vrot.slane %v951_v28, 2 }
 0x57c   :  { %v977_v32 = vadd.f32 %v975_v29, %v5347_v25  ;;  %v1000_v33 = vadd.f32 %v998_v30, %v5342_v24  ;;  %v5566_v29 = vld [vmem:[%s6456_s2 + $0x187] ss:$0 sm:$0xff] }
 0x57e   :  { %v4400_v35 = vmul.f32 -1.442695, %v977_v32  ;;  %v4401_v8 = vmul.f32 -1.442695, %v1000_v33  ;;  %v1139_v32 = vsel %vm5552_vm8, %v1138_v56, %v1134_v5 }
 0x580   :  { %4761 = vpow2.f32 %v4400_v35  ;;  %v971_v60 = vpop.f32.mrf.mxu2 }
 0x581   :  { %4763 = vpow2.f32 %v4401_v8  ;;  %v1079_v37 = vpop.f32.mrf.mxu0  ;;  %v1103_v39 = vpop.f32.mrf.mxu1  ;;  %v972_v62 = vadd.f32 %v5008_v26, %v971_v60 }
 0x582   :  { %v5429_v25 = vadd.f32 %v4676_v36, %v1079_v37  ;;  %v5432_v24 = vadd.f32 %v5425_v9, %v1103_v39  ;;  %v1160_v37 = vmul.f32 %v5566_v29, %v1139_v32 }
 0x583   :  { %v1021_v28 = vrot.slane %v972_v62, 2 }
 0x586   :  { %v4762_v43 = vpop.eup %4761 }
 0x587   :  { %v4764_v44 = vpop.eup %4763  ;;  %v5436_v34 = vadd.f32 1.0, %v4762_v43 }
 0x588   :  { %v5451_v47 = vadd.f32 1.0, %v4764_v44 }
 0x589   :  { %4765 = vrcp.f32 %v5436_v34  ;;  %v1081_v2 = vpop.f32.mrf.mxu0  ;;  %v993_v14 = vand.u32 2147483648, %v5436_v34  ;;  %v991_v18 = vand.u32 2147483647, %v5436_v34  ;;  %vm987_vm7 = vweird.f32 %v5436_v34  ;;  %v1105_v22 = vpop.f32.mrf.mxu1 }
 0x58a   :  { %v5464_v50 = vadd.f32 %v4676_v36, %v1081_v2  ;;  %4767 = vrcp.f32 %v5451_v47  ;;  %v5573_v35 = vadd.f32 %v5425_v9, %v1105_v22  ;;  %vm1010_vm2 = vweird.f32 %v5451_v47 }
 0x58b   :  { %v994_v21 = vor.u32 1.1754944e-38, %v993_v14  ;;  %vm992_vm13 = vcmp.eq.f32.partialorder %v991_v18, 8.507059e+37 }
 0x58c   :  { %v4418_v53 = vmul.f32 -1.442695, %v5464_v50  ;;  %v1161_v40 = vadd.f32 %v1160_v37, %v5573_v35 }
 0x58e   :  { %4769 = vpow2.f32 %v4418_v53  ;;  %v1016_v53 = vand.u32 2147483648, %v5451_v47 }
 0x58f   :  { %v4766_v58 = vpop.eup %4765 }
 0x590   :  { %v983_v15 = vmul.f32 %v4766_v58, %v5436_v34  ;;  %v5533_v16 = vpop.eup %4767  ;;  %vm988_vm6 = vweird.f32 %v4766_v58  ;;  %v1017_v14 = vor.u32 1.1754944e-38, %v1016_v53 }
 0x591   :  { %v1006_v20 = vmul.f32 %v5533_v16, %v5451_v47  ;;  %vm989_vm11 = vmor %vm987_vm7, %vm988_vm6  ;;  %vm1011_vm14 = vweird.f32 %v5533_v16 }
 0x592   :  { %v984_v38 = vsub.f32 1.0, %v983_v15  ;;  %vm5586_vm0 = vmor %vm1010_vm2, %vm1011_vm14 }
 0x593   :  { %v1007_v8 = vsub.f32 1.0, %v1006_v20 }
 0x594   :  { %v985_v0 = vmul.f32 %v4766_v58, %v984_v38  ;;  %v4770_v1 = vpop.eup %4769 }
 0x595   :  { %v1144_v10 = vadd.f32 1.0, %v4770_v1  ;;  %v1008_v41 = vmul.f32 %v5533_v16, %v1007_v8 }
 0x596   :  { %v986_v7 = vadd.f32 %v4766_v58, %v985_v0 }
 0x597   :  { %4771 = vrcp.f32 %v1144_v10  ;;  %v1156_v44 = vand.u32 2147483648, %v1144_v10  ;;  %v1154_v2 = vand.u32 2147483647, %v1144_v10  ;;  %vm1150_vm3 = vweird.f32 %v1144_v10 }
 0x598   :  { %v990_v23 = vsel %vm989_vm11, %v4766_v58, %v986_v7  ;;  %v1014_v58 = vand.u32 2147483647, %v5451_v47 }
 0x599   :  { %v995_v30 = vsel %vm992_vm13, %v994_v21, %v990_v23  ;;  %v1157_v61 = vor.u32 1.1754944e-38, %v1156_v44  ;;  %vm1155_vm6 = vcmp.eq.f32.partialorder %v1154_v2, 8.507059e+37 }
 0x59a   :  { %v1023_v33 = vmul.f32 %v1021_v28, %v995_v30  ;;  %vm1015_vm7 = vcmp.eq.f32.partialorder %v1014_v58, 8.507059e+37 }
 0x59c   :  { %v1024_v36 = vadd.f32 %v1023_v33, %v5353_v31  ;;  %v1009_v31 = vadd.f32 %v5533_v16, %v1008_v41 }
 0x59d   :  { %v4772_v39 = vpop.eup %4771 }
 0x59e   :  { %4773 = vtanh.f32 %v1024_v36  ;;  %v1146_v43 = vmul.f32 %v4772_v39, %v1144_v10  ;;  %vm1151_vm1 = vweird.f32 %v4772_v39  ;;  %v1013_v63 = vsel %vm5586_vm0, %v5533_v16, %v1009_v31 }
 0x59f   :  { %4775 = vtanh.f32 %v1161_v40  ;;  %vm1152_vm5 = vmor %vm1150_vm3, %vm1151_vm1  ;;  %v1018_v47 = vsel %vm1015_vm7, %v1017_v14, %v1013_v63 }
 0x5a0   :  { %v1147_v9 = vsub.f32 1.0, %v1146_v43 }
 0x5a2   :  { %v1148_v34 = vmul.f32 %v4772_v39, %v1147_v9 }
 0x5a4   :  { %v4774_v46 = vpop.eup %4773  ;;  %v1149_v60 = vadd.f32 %v4772_v39, %v1148_v34 }
 0x5a5   :  { %v1027_v15 = vrot.slane %v4774_v46, 2  ;;  %v4776_v57 = vpop.eup %4775 }
 0x5a6   :  { %v1153_v42 = vsel %vm1152_vm5, %v4772_v39, %v1149_v60 }
 0x5a7   :  { %v1029_v38 = vsub.f32 %v5393_v3, %v1027_v15  ;;  %v1158_v26 = vsel %vm1155_vm6, %v1157_v61, %v1153_v42 }
 0x5a8   :  { %v1163_v0 = vmul.f32 %v4776_v57, %v1158_v26 }
 0x5a9   :  { %v1031_v62 = vrot.slane %v1029_v38, 6 }
 0x5aa   :  { %v5595_v1 = vsub.f32 %v4776_v57, %v1163_v0 }
 0x5ab   :  { %v1033_v18 = vmul.f32 %v1031_v62, %v1018_v47 }
 0x5ac   :  { %1165 = vst.msk [vmem:[#allocation3 + $0x8] sm:$0xc0] %vm540_vm12, %v5595_v1  ;;  %v1167_v16 = vrot.slane %v5595_v1, 6 }
 0x5ad   :  { %v1034_v5 = vadd.f32 %v4774_v46, %v1033_v18 }
 0x5ae   :  { %4419 = vmatmul.msk.f32.vlgmr.msra.gmra.mxu2 %vm161_vm10, %v1167_v16  ;;  %4421 = vmatmul.msk.f32.vlgmr.msrb.gmra.mxu3 %vm161_vm10, %v1167_v16 }
 0x5af   :  { %1035 = vst.msk [vmem:[#allocation2 + $0x8] sm:$0xc0] %vm540_vm12, %v1034_v5  ;;  %1348 = vmatpush.msra.mxu2 %v5446_v45  ;;  %1570 = vmatpush.msrb.mxu3 %v5503_v17 }
 0x5b0   :  { %4298 = vst.msk [vmem:[#allocation6 - $0x6] sm:$0xc0] %vm540_vm12, %v1034_v5 }
 0x5b1   :  { %1349 = vmatpush.msra.mxu2 %v5461_v49  ;;  %1571 = vmatpush.msrb.mxu3 %v5508_v19 }
 0x5b3   :  { %1350 = vmatpush.msra.mxu2 %v5476_v52  ;;  %1572 = vmatpush.msrb.mxu3 %v5526_v12 }
 0x5b5   :  { %1351 = vmatpush.msra.mxu2 %v5492_v13  ;;  %1573 = vmatpush.msrb.mxu3 %v5542_v27 }
 0x5b6   :  { %4420 = vmatmul.msk.f32.vlgmr.msrb.gmra.mxu2 %vm161_vm10, %v1167_v16 }
 0x5b7   :  { %1550 = vmatpush.msrb.mxu2 %v5441_v59 }
 0x5b9   :  { %1551 = vmatpush.msrb.mxu2 %v5456_v48 }
 0x5bb   :  { %1552 = vmatpush.msrb.mxu2 %v5471_v51 }
 0x5bd   :  { %1553 = vmatpush.msrb.mxu2 %v5487_v55 }
 0x631   :  { %v1187_v3 = vpop.f32.mrf.mxu2  ;;  %v1227_v36 = vpop.f32.mrf.mxu3 }
 0x632   :  { %v1231_v56 = vrot.slane %v1187_v3, 4  ;;  %v1228_v40 = vadd.f32 %v5566_v29, %v1227_v36 }
 0x634   :  { %v1233_v7 = vadd.f32 %v1231_v56, %v5411_v6  ;;  %v1277_v2 = vrot.slane %v1228_v40, 4 }
 0x636   :  { %v4422_v10 = vmul.f32 -1.442695, %v1233_v7 }
 0x638   :  { %4777 = vpow2.f32 %v4422_v10 }
 0x639   :  { %v1207_v4 = vpop.f32.mrf.mxu2 }
 0x63a   :  { %v1254_v20 = vrot.slane %v1207_v4, 4 }
 0x63c   :  { %v1256_v21 = vadd.f32 %v1254_v20, %v5464_v50 }
 0x63e   :  { %v4778_v22 = vpop.eup %4777  ;;  %v4423_v23 = vmul.f32 -1.442695, %v1256_v21 }
 0x63f   :  { %v1237_v28 = vadd.f32 1.0, %v4778_v22 }
 0x640   :  { %4779 = vpow2.f32 %v4423_v23 }
 0x641   :  { %4781 = vrcp.f32 %v1237_v28  ;;  %v1249_v39 = vand.u32 2147483648, %v1237_v28  ;;  %v1247_v43 = vand.u32 2147483647, %v1237_v28  ;;  %vm1243_vm11 = vweird.f32 %v1237_v28 }
 0x643   :  { %v1250_v31 = vor.u32 1.1754944e-38, %v1249_v39  ;;  %vm1248_vm14 = vcmp.eq.f32.partialorder %v1247_v43, 8.507059e+37 }
 0x646   :  { %v4780_v30 = vpop.eup %4779 }
 0x647   :  { %v4782_v32 = vpop.eup %4781  ;;  %v1260_v33 = vadd.f32 1.0, %v4780_v30 }
 0x648   :  { %v1239_v8 = vmul.f32 %v4782_v32, %v1237_v28  ;;  %vm1244_vm8 = vweird.f32 %v4782_v32 }
 0x649   :  { %4783 = vrcp.f32 %v1260_v33  ;;  %vm1245_vm13 = vmor %vm1243_vm11, %vm1244_vm8  ;;  %v1272_v38 = vand.u32 2147483648, %v1260_v33  ;;  %vm1266_vm2 = vweird.f32 %v1260_v33  ;;  %v1270_v57 = vand.u32 2147483647, %v1260_v33 }
 0x64a   :  { %v1240_v37 = vsub.f32 1.0, %v1239_v8 }
 0x64b   :  { %v1273_v62 = vor.u32 1.1754944e-38, %v1272_v38  ;;  %vm1271_vm3 = vcmp.eq.f32.partialorder %v1270_v57, 8.507059e+37 }
 0x64c   :  { %v1241_v41 = vmul.f32 %v4782_v32, %v1240_v37 }
 0x64e   :  { %v1242_v9 = vadd.f32 %v4782_v32, %v1241_v41 }
 0x64f   :  { %v4784_v44 = vpop.eup %4783 }
 0x650   :  { %v1246_v34 = vsel %vm1245_vm13, %v4782_v32, %v1242_v9  ;;  %v1262_v46 = vmul.f32 %v4784_v44, %v1260_v33  ;;  %vm1267_vm1 = vweird.f32 %v4784_v44 }
 0x651   :  { %v1251_v53 = vsel %vm1248_vm14, %v1250_v31, %v1246_v34  ;;  %vm1268_vm0 = vmor %vm1266_vm2, %vm1267_vm1 }
 0x652   :  { %v1279_v54 = vmul.f32 %v1277_v2, %v1251_v53  ;;  %v1263_v58 = vsub.f32 1.0, %v1262_v46 }
 0x654   :  { %v1280_v15 = vadd.f32 %v1279_v54, %v5573_v35  ;;  %v1264_v60 = vmul.f32 %v4784_v44, %v1263_v58 }
 0x656   :  { %4785 = vtanh.f32 %v1280_v15  ;;  %v1265_v61 = vadd.f32 %v4784_v44, %v1264_v60 }
 0x658   :  { %v1269_v26 = vsel %vm1268_vm0, %v4784_v44, %v1265_v61 }
 0x659   :  { %v1274_v47 = vsel %vm1271_vm3, %v1273_v62, %v1269_v26 }
 0x65c   :  { %v4786_v63 = vpop.eup %4785 }
 0x65d   :  { %v1283_v42 = vrot.slane %v4786_v63, 6 }
 0x65f   :  { %v1285_v14 = vsub.f32 %v5595_v1, %v1283_v42 }
 0x661   :  { %v1287_v0 = vrot.slane %v1285_v14, 2 }
 0x663   :  { %v1289_v18 = vmul.f32 %v1287_v0, %v1274_v47 }
 0x665   :  { %v5622_v5 = vadd.f32 %v4786_v63, %v1289_v18 }
 0x667   :  { %1291 = vst.msk [vmem:[#allocation3 + $0x8] sm:$0x30] %vm413_vm15, %v5622_v5  ;;  %v1293_v16 = vrot.slane %v5622_v5, 4 }
 0x669   :  { %4424 = vmatmul.msk.f32.vlgmr.msrb.gmra.mxu0 %vm161_vm10, %v1293_v16  ;;  %4425 = vmatmul.msk.f32.vlgmr.msrb.gmra.mxu1 %vm161_vm10, %v1293_v16 }
 0x66a   :  { %4426 = vmatmul.msk.f32.vlgmr.msra.gmra.mxu2 %vm161_vm10, %v1293_v16  ;;  %1590 = vmatpush.msrb.mxu0 %v5446_v45 }
 0x66b   :  { %1676 = vmatpush.msrb.mxu1 %v5441_v59  ;;  %1696 = vmatpush.msra.mxu2 %v5503_v17 }
 0x66c   :  { %1591 = vmatpush.msrb.mxu0 %v5461_v49 }
 0x66d   :  { %1677 = vmatpush.msrb.mxu1 %v5456_v48  ;;  %1697 = vmatpush.msra.mxu2 %v5508_v19 }
 0x66e   :  { %1592 = vmatpush.msrb.mxu0 %v5476_v52 }
 0x66f   :  { %1678 = vmatpush.msrb.mxu1 %v5471_v51  ;;  %1698 = vmatpush.msra.mxu2 %v5526_v12 }
 0x670   :  { %1593 = vmatpush.msrb.mxu0 %v5492_v13 }
 0x671   :  { %1679 = vmatpush.msrb.mxu1 %v5487_v55  ;;  %1699 = vmatpush.msra.mxu2 %v5542_v27 }
 0x6e6   :  { %v1313_v1 = vpop.f32.mrf.mxu0  ;;  %v1333_v3 = vpop.f32.mrf.mxu1 }
 0x6e7   :  { %v1357_v56 = vrot.slane %v1313_v1, 6  ;;  %v1380_v7 = vrot.slane %v1333_v3, 6 }
 0x6e9   :  { %v1359_v10 = vadd.f32 %v1357_v56, %v5411_v6  ;;  %v1382_v4 = vadd.f32 %v1380_v7, %v5464_v50 }
 0x6eb   :  { %v4427_v20 = vmul.f32 -1.442695, %v1359_v10  ;;  %v4428_v21 = vmul.f32 -1.442695, %v1382_v4 }
 0x6ed   :  { %4787 = vpow2.f32 %v4427_v20  ;;  %v1353_v8 = vpop.f32.mrf.mxu2 }
 0x6ee   :  { %4789 = vpow2.f32 %v4428_v21  ;;  %v1354_v40 = vadd.f32 %v5566_v29, %v1353_v8 }
 0x6f0   :  { %v1403_v2 = vrot.slane %v1354_v40, 6 }
 0x6f3   :  { %v4788_v22 = vpop.eup %4787 }
 0x6f4   :  { %v4790_v23 = vpop.eup %4789  ;;  %v1363_v28 = vadd.f32 1.0, %v4788_v22 }
 0x6f5   :  { %v1386_v30 = vadd.f32 1.0, %v4790_v23 }
 0x6f6   :  { %4791 = vrcp.f32 %v1363_v28  ;;  %v1375_v37 = vand.u32 2147483648, %v1363_v28  ;;  %v1373_v43 = vand.u32 2147483647, %v1363_v28  ;;  %vm1369_vm6 = vweird.f32 %v1363_v28 }
 0x6f7   :  { %4793 = vrcp.f32 %v1386_v30  ;;  %v1398_v63 = vand.u32 2147483648, %v1386_v30  ;;  %vm1392_vm13 = vweird.f32 %v1386_v30  ;;  %v1396_v38 = vand.u32 2147483647, %v1386_v30 }
 0x6f8   :  { %v1376_v31 = vor.u32 1.1754944e-38, %v1375_v37  ;;  %vm1374_vm8 = vcmp.eq.f32.partialorder %v1373_v43, 8.507059e+37 }
 0x6f9   :  { %v1399_v26 = vor.u32 1.1754944e-38, %v1398_v63  ;;  %vm1397_vm1 = vcmp.eq.f32.partialorder %v1396_v38, 8.507059e+37 }
 0x6fc   :  { %v4792_v32 = vpop.eup %4791 }
 0x6fd   :  { %v1365_v33 = vmul.f32 %v4792_v32, %v1363_v28  ;;  %v4794_v39 = vpop.eup %4793  ;;  %vm1370_vm5 = vweird.f32 %v4792_v32 }
 0x6fe   :  { %v1388_v44 = vmul.f32 %v4794_v39, %v1386_v30  ;;  %vm1371_vm7 = vmor %vm1369_vm6, %vm1370_vm5  ;;  %vm1393_vm11 = vweird.f32 %v4794_v39 }
 0x6ff   :  { %v1366_v36 = vsub.f32 1.0, %v1365_v33  ;;  %vm1394_vm14 = vmor %vm1392_vm13, %vm1393_vm11 }
 0x700   :  { %v1389_v54 = vsub.f32 1.0, %v1388_v44 }
 0x701   :  { %v1367_v41 = vmul.f32 %v4792_v32, %v1366_v36 }
 0x702   :  { %v1390_v15 = vmul.f32 %v4794_v39, %v1389_v54 }
 0x703   :  { %v1368_v9 = vadd.f32 %v4792_v32, %v1367_v41 }
 0x704   :  { %v1391_v60 = vadd.f32 %v4794_v39, %v1390_v15 }
 0x705   :  { %v1372_v34 = vsel %vm1371_vm7, %v4792_v32, %v1368_v9 }
 0x706   :  { %v1377_v46 = vsel %vm1374_vm8, %v1376_v31, %v1372_v34  ;;  %v1395_v57 = vsel %vm1394_vm14, %v4794_v39, %v1391_v60 }
 0x707   :  { %v1405_v53 = vmul.f32 %v1403_v2, %v1377_v46  ;;  %v1400_v0 = vsel %vm1397_vm1, %v1399_v26, %v1395_v57 }
 0x709   :  { %v1406_v58 = vadd.f32 %v1405_v53, %v5573_v35 }
 0x70b   :  { %4795 = vtanh.f32 %v1406_v58 }
 0x711   :  { %v4796_v61 = vpop.eup %4795 }
 0x712   :  { %v1409_v42 = vrot.slane %v4796_v61, 6 }
 0x714   :  { %v1411_v14 = vsub.f32 %v5622_v5, %v1409_v42 }
 0x716   :  { %v1413_v62 = vrot.slane %v1411_v14, 2 }
 0x718   :  { %v1415_v47 = vmul.f32 %v1413_v62, %v1400_v0 }
 0x71a   :  { %v5647_v18 = vadd.f32 %v4796_v61, %v1415_v47 }
 0x71c   :  { %1417 = vst.msk [vmem:[#allocation3 + $0x8] sm:$0xc] %vm286_vm4, %v5647_v18  ;;  %v1419_v16 = vrot.slane %v5647_v18, 2 }
 0x71e   :  { %4429 = vmatmul.msk.f32.vlgmr.msra.gmra.mxu3 %vm161_vm10, %v1419_v16  ;;  %4430 = vmatmul.msk.f32.vlgmr.msra.gmra.mxu0 %vm161_vm10, %v1419_v16 }
 0x71f   :  { %4431 = vmatmul.msk.f32.vlgmr.msra.gmra.mxu1 %vm161_vm10, %v1419_v16  ;;  %1716 = vmatpush.msra.mxu3 %v5446_v45 }
 0x720   :  { %1802 = vmatpush.msra.mxu0 %v5441_v59  ;;  %1822 = vmatpush.msra.mxu1 %v5503_v17 }
 0x721   :  { %1717 = vmatpush.msra.mxu3 %v5461_v49 }
 0x722   :  { %1803 = vmatpush.msra.mxu0 %v5456_v48  ;;  %1823 = vmatpush.msra.mxu1 %v5508_v19 }
 0x723   :  { %1718 = vmatpush.msra.mxu3 %v5476_v52 }
 0x724   :  { %1804 = vmatpush.msra.mxu0 %v5471_v51  ;;  %1824 = vmatpush.msra.mxu1 %v5526_v12 }
 0x725   :  { %1719 = vmatpush.msra.mxu3 %v5492_v13 }
 0x726   :  { %1805 = vmatpush.msra.mxu0 %v5487_v55  ;;  %1825 = vmatpush.msra.mxu1 %v5542_v27 }
 0x79b   :  { %v1459_v5 = vpop.f32.mrf.mxu0 }
 0x79c   :  { %v1502_v1 = vadd.f32 %v1459_v5, %v5464_v50  ;;  %v1479_v36 = vpop.f32.mrf.mxu1 }
 0x79d   :  { %v1480_v40 = vadd.f32 %v5566_v29, %v1479_v36 }
 0x79e   :  { %v4433_v7 = vmul.f32 -1.442695, %v1502_v1 }
 0x7a1   :  { %v1439_v3 = vpop.f32.mrf.mxu3 }
 0x7a2   :  { %v1482_v56 = vadd.f32 %v1439_v3, %v5411_v6 }
 0x7a4   :  { %v4432_v10 = vmul.f32 -1.442695, %v1482_v56 }
 0x7a6   :  { %4797 = vpow2.f32 %v4432_v10 }
 0x7a7   :  { %4799 = vpow2.f32 %v4433_v7 }
 0x7ac   :  { %v4798_v4 = vpop.eup %4797 }
 0x7ad   :  { %v4800_v20 = vpop.eup %4799  ;;  %v1486_v21 = vadd.f32 1.0, %v4798_v4 }
 0x7ae   :  { %v1506_v22 = vadd.f32 1.0, %v4800_v20 }
 0x7af   :  { %4801 = vrcp.f32 %v1486_v21  ;;  %v1498_v32 = vand.u32 2147483648, %v1486_v21  ;;  %v1496_v50 = vand.u32 2147483647, %v1486_v21  ;;  %vm1492_vm0 = vweird.f32 %v1486_v21 }
 0x7b0   :  { %4803 = vrcp.f32 %v1506_v22  ;;  %v1518_v53 = vand.u32 2147483648, %v1506_v22  ;;  %vm1512_vm7 = vweird.f32 %v1506_v22  ;;  %v1516_v54 = vand.u32 2147483647, %v1506_v22 }
 0x7b1   :  { %v1499_v39 = vor.u32 1.1754944e-38, %v1498_v32  ;;  %vm1497_vm5 = vcmp.eq.f32.partialorder %v1496_v50, 8.507059e+37 }
 0x7b2   :  { %v1519_v61 = vor.u32 1.1754944e-38, %v1518_v53  ;;  %vm1517_vm11 = vcmp.eq.f32.partialorder %v1516_v54, 8.507059e+37 }
 0x7b5   :  { %v4802_v23 = vpop.eup %4801 }
 0x7b6   :  { %v1488_v28 = vmul.f32 %v4802_v23, %v1486_v21  ;;  %v4804_v33 = vpop.eup %4803  ;;  %vm1493_vm2 = vweird.f32 %v4802_v23 }
 0x7b7   :  { %v1508_v37 = vmul.f32 %v4804_v33, %v1506_v22  ;;  %vm1494_vm3 = vmor %vm1492_vm0, %vm1493_vm2  ;;  %vm1513_vm6 = vweird.f32 %v4804_v33 }
 0x7b8   :  { %v1489_v30 = vsub.f32 1.0, %v1488_v28  ;;  %vm1514_vm8 = vmor %vm1512_vm7, %vm1513_vm6 }
 0x7b9   :  { %v1509_v44 = vsub.f32 1.0, %v1508_v37 }
 0x7ba   :  { %v1490_v8 = vmul.f32 %v4802_v23, %v1489_v30 }
 0x7bb   :  { %v1510_v34 = vmul.f32 %v4804_v33, %v1509_v44 }
 0x7bc   :  { %v1491_v6 = vadd.f32 %v4802_v23, %v1490_v8 }
 0x7bd   :  { %v1511_v2 = vadd.f32 %v4804_v33, %v1510_v34 }
 0x7be   :  { %v1495_v41 = vsel %vm1494_vm3, %v4802_v23, %v1491_v6 }
 0x7bf   :  { %v1500_v43 = vsel %vm1497_vm5, %v1499_v39, %v1495_v41  ;;  %v1515_v15 = vsel %vm1514_vm8, %v4804_v33, %v1511_v2 }
 0x7c0   :  { %v1522_v9 = vmul.f32 %v1500_v43, %v1480_v40  ;;  %v1520_v38 = vsel %vm1517_vm11, %v1519_v61, %v1515_v15 }
 0x7c2   :  { %v1523_v31 = vadd.f32 %v1522_v9, %v5573_v35 }
 0x7c4   :  { %4805 = vtanh.f32 %v1523_v31 }
 0x7ca   :  { %v4806_v46 = vpop.eup %4805 }
 0x7cb   :  { %v1526_v58 = vrot.slane %v4806_v46, 6 }
 0x7cd   :  { %v1528_v60 = vsub.f32 %v5647_v18, %v1526_v58 }
 0x7cf   :  { %v1530_v63 = vrot.slane %v1528_v60, 2 }
 0x7d1   :  { %v1532_v42 = vmul.f32 %v1530_v63, %v1520_v38 }
 0x7d3   :  { %v5672_v57 = vadd.f32 %v4806_v46, %v1532_v42 }
 0x7d5   :  { %1534 = vst.msk [vmem:[#allocation3 + $0x8] sm:$0x3] %vm159_vm9, %v5672_v57  ;;  %4434 = vmatmul.msk.f32.vlgmr.msrb.gmra.mxu2 %vm161_vm10, %v5672_v57  ;;  %4435 = vmatmul.msk.f32.vlgmr.msrb.gmra.mxu3 %vm161_vm10, %v5672_v57 }
 0x7d6   :  { %4436 = vmatmul.msk.f32.vlgmr.msrb.gmra.mxu0 %vm161_vm10, %v5672_v57  ;;  %1842 = vmatpush.msrb.mxu2 %v5446_v45 }
 0x7d7   :  { %1928 = vmatpush.msrb.mxu3 %v5441_v59  ;;  %1948 = vmatpush.msrb.mxu0 %v5503_v17 }
 0x7d8   :  { %1843 = vmatpush.msrb.mxu2 %v5461_v49 }
 0x7d9   :  { %1929 = vmatpush.msrb.mxu3 %v5456_v48  ;;  %1949 = vmatpush.msrb.mxu0 %v5508_v19 }
 0x7da   :  { %1844 = vmatpush.msrb.mxu2 %v5476_v52 }
 0x7db   :  { %1930 = vmatpush.msrb.mxu3 %v5471_v51  ;;  %1950 = vmatpush.msrb.mxu0 %v5526_v12 }
 0x7dc   :  { %1845 = vmatpush.msrb.mxu2 %v5492_v13 }
 0x7dd   :  { %1931 = vmatpush.msrb.mxu3 %v5487_v55  ;;  %1951 = vmatpush.msrb.mxu0 %v5542_v27 }
 0x853   :  { %v1595_v18 = vpop.f32.mrf.mxu0 }
 0x854   :  { %v1596_v3 = vadd.f32 %v5566_v29, %v1595_v18 }
 0x856   :  { %v1645_v21 = vrot.slane %v1596_v3, 2 }
 0x858   :  { %v1555_v59 = vpop.f32.mrf.mxu2  ;;  %v1575_v17 = vpop.f32.mrf.mxu3 }
 0x859   :  { %v1599_v35 = vrot.slane %v1555_v59, 2  ;;  %v1622_v14 = vrot.slane %v1575_v17, 2 }
 0x85b   :  { %v1601_v48 = vadd.f32 %v1599_v35, %v5409_v11  ;;  %v1624_v19 = vadd.f32 %v1622_v14, %v5429_v25 }
 0x85d   :  { %v4437_v26 = vmul.f32 -1.442695, %v1601_v48  ;;  %v4438_v62 = vmul.f32 -1.442695, %v1624_v19 }
 0x85f   :  { %4807 = vpow2.f32 %v4437_v26 }
 0x860   :  { %4809 = vpow2.f32 %v4438_v62 }
 0x865   :  { %v4808_v51 = vpop.eup %4807 }
 0x866   :  { %v4810_v12 = vpop.eup %4809  ;;  %v1605_v0 = vadd.f32 1.0, %v4808_v51 }
 0x867   :  { %v1628_v47 = vadd.f32 1.0, %v4810_v12 }
 0x868   :  { %4811 = vrcp.f32 %v1605_v0  ;;  %v1617_v5 = vand.u32 2147483648, %v1605_v0  ;;  %v1615_v7 = vand.u32 2147483647, %v1605_v0  ;;  %vm1611_vm14 = vweird.f32 %v1605_v0 }
 0x869   :  { %4813 = vrcp.f32 %v1628_v47  ;;  %v1640_v36 = vand.u32 2147483648, %v1628_v47  ;;  %vm1634_vm3 = vweird.f32 %v1628_v47  ;;  %v1638_v6 = vand.u32 2147483647, %v1628_v47 }
 0x86a   :  { %v1618_v4 = vor.u32 1.1754944e-38, %v1617_v5  ;;  %vm1616_vm2 = vcmp.eq.f32.partialorder %v1615_v7, 8.507059e+37 }
 0x86b   :  { %v1641_v41 = vor.u32 1.1754944e-38, %v1640_v36  ;;  %vm1639_vm6 = vcmp.eq.f32.partialorder %v1638_v6, 8.507059e+37 }
 0x86e   :  { %v4812_v55 = vpop.eup %4811 }
 0x86f   :  { %v1607_v27 = vmul.f32 %v4812_v55, %v1605_v0  ;;  %v4814_v1 = vpop.eup %4813  ;;  %vm1612_vm13 = vweird.f32 %v4812_v55 }
 0x870   :  { %vm1613_vm1 = vmor %vm1611_vm14, %vm1612_vm13  ;;  %v1630_v20 = vmul.f32 %v4814_v1, %v1628_v47  ;;  %vm1635_vm0 = vweird.f32 %v4814_v1 }
 0x871   :  { %v1608_v16 = vsub.f32 1.0, %v1607_v27  ;;  %vm1636_vm5 = vmor %vm1634_vm3, %vm1635_vm0 }
 0x872   :  { %v1631_v30 = vsub.f32 1.0, %v1630_v20 }
 0x873   :  { %v1609_v56 = vmul.f32 %v4812_v55, %v1608_v16 }
 0x874   :  { %v1632_v33 = vmul.f32 %v4814_v1, %v1631_v30 }
 0x875   :  { %v1610_v10 = vadd.f32 %v4812_v55, %v1609_v56 }
 0x876   :  { %v1633_v8 = vadd.f32 %v4814_v1, %v1632_v33 }
 0x877   :  { %v1614_v22 = vsel %vm1613_vm1, %v4812_v55, %v1610_v10 }
 0x878   :  { %v1619_v23 = vsel %vm1616_vm2, %v1618_v4, %v1614_v22  ;;  %v1637_v39 = vsel %vm1636_vm5, %v4814_v1, %v1633_v8 }
 0x879   :  { %v1647_v28 = vmul.f32 %v1645_v21, %v1619_v23  ;;  %v1642_v9 = vsel %vm1639_vm6, %v1641_v41, %v1637_v39 }
 0x87b   :  { %v1648_v32 = vadd.f32 %v1647_v28, %v5432_v24 }
 0x87d   :  { %4815 = vtanh.f32 %v1648_v32 }
 0x883   :  { %v4816_v50 = vpop.eup %4815 }
 0x884   :  { %v1651_v37 = vrot.slane %v4816_v50, 6 }
 0x886   :  { %v1653_v40 = vsub.f32 %v5672_v57, %v1651_v37 }
 0x888   :  { %v1655_v43 = vrot.slane %v1653_v40, 2 }
 0x88a   :  { %v1657_v44 = vmul.f32 %v1655_v43, %v1642_v9 }
 0x88c   :  { %v1658_v31 = vadd.f32 %v4816_v50, %v1657_v44 }
 0x88e   :  { %1659 = vst.msk [vmem:[#allocation3] sm:$0xc0] %vm540_vm12, %v1658_v31  ;;  %v1661_v34 = vrot.slane %v1658_v31, 6 }
 0x890   :  { %4439 = vmatmul.msk.f32.vlgmr.msrb.gmra.mxu1 %vm161_vm10, %v1661_v34  ;;  %4440 = vmatmul.msk.f32.vlgmr.msra.gmra.mxu2 %vm161_vm10, %v1661_v34 }
 0x891   :  { %4441 = vmatmul.msk.f32.vlgmr.msra.gmra.mxu3 %vm161_vm10, %v1661_v34  ;;  %1968 = vmatpush.msrb.mxu1 %v5446_v45  ;;  %v4644_v34 = vld [vmem:[%s6455_s1 + $0x38] sm:$0xff] }
 0x892   :  { %2093 = vmatpush.bf16.msra.mxu3 %v4644_v34  ;;  %v5009_v34 = vld [vmem:[%s6456_s2 + $0x187] ss:$0 sm:$0xff] }
 0x893   :  { %1969 = vmatpush.msrb.mxu1 %v5461_v49 }
 0x895   :  { %1970 = vmatpush.msrb.mxu1 %v5476_v52 }
 0x897   :  { %1971 = vmatpush.msrb.mxu1 %v5492_v13 }
 0x90d   :  { %v1681_v2 = vpop.f32.mrf.mxu1 }
 0x90e   :  { %v1725_v46 = vrot.slane %v1681_v2, 4  ;;  %v4648_v2 = vld [vmem:[%s6455_s1 + $0x58] sm:$0xff] }
 0x910   :  { %v1727_v53 = vadd.f32 %v1725_v46, %v5409_v11 }
 0x912   :  { %v4442_v54 = vmul.f32 -1.442695, %v1727_v53 }
 0x913   :  { %v1701_v58 = vpop.f32.mrf.mxu2 }
 0x914   :  { %4817 = vpow2.f32 %v4442_v54  ;;  %v1748_v15 = vrot.slane %v1701_v58, 4  ;;  %v1721_v42 = vpop.f32.mrf.mxu3  ;;  %v4643_v54 = vld [vmem:[%s6455_s1 + $0x30] sm:$0xff] }
 0x915   :  { %v1722_v17 = vadd.f32 %v5566_v29, %v1721_v42  ;;  %v4647_v58 = vld [vmem:[%s6455_s1 + $0x50] sm:$0xff]  ;;  %2094 = vmatpush.bf16.msra.mxu3 %v4643_v54  ;;  %v4654_v54 = vld [vmem:[%s6455_s1 + $0x88] sm:$0xff] }
 0x916   :  { %v1750_v60 = vadd.f32 %v1748_v15, %v5429_v25 }
 0x917   :  { %v1771_v12 = vrot.slane %v1722_v17, 4 }
 0x918   :  { %v4443_v61 = vmul.f32 -1.442695, %v1750_v60 }
 0x91a   :  { %v4818_v63 = vpop.eup %4817  ;;  %4819 = vpow2.f32 %v4443_v61 }
 0x91b   :  { %v1731_v45 = vadd.f32 1.0, %v4818_v63 }
 0x91d   :  { %4821 = vrcp.f32 %v1731_v45  ;;  %v1743_v59 = vand.u32 2147483648, %v1731_v45  ;;  %v1741_v14 = vand.u32 2147483647, %v1731_v45  ;;  %vm1737_vm8 = vweird.f32 %v1731_v45 }
 0x91f   :  { %v1744_v62 = vor.u32 1.1754944e-38, %v1743_v59  ;;  %vm1742_vm13 = vcmp.eq.f32.partialorder %v1741_v14, 8.507059e+37 }
 0x920   :  { %v4820_v49 = vpop.eup %4819 }
 0x921   :  { %v1754_v38 = vadd.f32 1.0, %v4820_v49 }
 0x923   :  { %v4822_v52 = vpop.eup %4821  ;;  %4823 = vrcp.f32 %v1754_v38  ;;  %v1766_v1 = vand.u32 2147483648, %v1754_v38  ;;  %vm1760_vm1 = vweird.f32 %v1754_v38  ;;  %v1764_v3 = vand.u32 2147483647, %v1754_v38 }
 0x924   :  { %v1733_v13 = vmul.f32 %v4822_v52, %v1731_v45  ;;  %vm1738_vm7 = vweird.f32 %v4822_v52 }
 0x925   :  { %vm1739_vm11 = vmor %vm1737_vm8, %vm1738_vm7  ;;  %v1767_v4 = vor.u32 1.1754944e-38, %v1766_v1  ;;  %vm1765_vm0 = vcmp.eq.f32.partialorder %v1764_v3, 8.507059e+37  ;;  %v2030_v1 = vld [vmem:[#allocation2 + $0x8] sm:$0xff]  ;;  %v2029_v3 = vld [vmem:[#allocation2] sm:$0xff] }
 0x926   :  { %v1734_v57 = vsub.f32 1.0, %v1733_v13 }
 0x928   :  { %v1735_v35 = vmul.f32 %v4822_v52, %v1734_v57 }
 0x929   :  { %v4824_v48 = vpop.eup %4823 }
 0x92a   :  { %v1736_v19 = vadd.f32 %v4822_v52, %v1735_v35  ;;  %v1756_v26 = vmul.f32 %v4824_v48, %v1754_v38  ;;  %vm1761_vm14 = vweird.f32 %v4824_v48 }
 0x92b   :  { %vm1762_vm2 = vmor %vm1760_vm1, %vm1761_vm14 }
 0x92c   :  { %v1740_v51 = vsel %vm1739_vm11, %v4822_v52, %v1736_v19  ;;  %v1757_v55 = vsub.f32 1.0, %v1756_v26 }
 0x92d   :  { %v1745_v0 = vsel %vm1742_vm13, %v1744_v62, %v1740_v51 }
 0x92e   :  { %v1773_v47 = vmul.f32 %v1771_v12, %v1745_v0  ;;  %v1758_v18 = vmul.f32 %v4824_v48, %v1757_v55 }
 0x930   :  { %v1774_v27 = vadd.f32 %v1773_v47, %v5432_v24  ;;  %v1759_v16 = vadd.f32 %v4824_v48, %v1758_v18  ;;  %v4652_v18 = vld [vmem:[%s6455_s1 + $0x78] sm:$0xff] }
 0x932   :  { %4825 = vtanh.f32 %v1774_v27  ;;  %v1763_v7 = vsel %vm1762_vm2, %v4824_v48, %v1759_v16 }
 0x933   :  { %v1768_v21 = vsel %vm1765_vm0, %v1767_v4, %v1763_v7 }
 0x938   :  { %v4826_v5 = vpop.eup %4825 }
 0x939   :  { %v1777_v56 = vrot.slane %v4826_v5, 6 }
 0x93b   :  { %v1779_v10 = vsub.f32 %v1658_v31, %v1777_v56  ;;  %v5750_v56 = vpack.c.bf16 %v2030_v1, %v2029_v3  ;;  %v5811_v3 = vld [vmem:[%s6456_s2 + $0xd8] sm:$0xff] }
 0x93d   :  { %v1781_v20 = vrot.slane %v1779_v10, 2 }
 0x93f   :  { %v1783_v22 = vmul.f32 %v1781_v20, %v1768_v21 }
 0x941   :  { %v5711_v23 = vadd.f32 %v4826_v5, %v1783_v22  ;;  %v4651_v5 = vld [vmem:[%s6455_s1 + $0x70] sm:$0xff] }
 0x943   :  { %1785 = vst.msk [vmem:[#allocation3] sm:$0x30] %vm413_vm15, %v5711_v23  ;;  %v1787_v28 = vrot.slane %v5711_v23, 4 }
 0x945   :  { %4444 = vmatmul.msk.f32.vlgmr.msra.gmra.mxu0 %vm161_vm10, %v1787_v28  ;;  %4445 = vmatmul.msk.f32.vlgmr.msra.gmra.mxu1 %vm161_vm10, %v1787_v28 }
 0x946   :  { %4446 = vmatmul.msk.f32.vlgmr.msrb.gmra.mxu2 %vm161_vm10, %v1787_v28  ;;  %2157 = vmatpush.bf16.msra.mxu1 %v4648_v2 }
 0x94a   :  { %2158 = vmatpush.bf16.msra.mxu1 %v4647_v58 }
 0x9c2   :  { %v1807_v30 = vpop.f32.mrf.mxu0  ;;  %v1827_v32 = vpop.f32.mrf.mxu1 }
 0x9c3   :  { %v1851_v33 = vrot.slane %v1807_v30, 6  ;;  %v1874_v8 = vrot.slane %v1827_v32, 6 }
 0x9c5   :  { %v1853_v50 = vadd.f32 %v1851_v33, %v5409_v11  ;;  %v1876_v36 = vadd.f32 %v1874_v8, %v5429_v25 }
 0x9c7   :  { %v4447_v6 = vmul.f32 -1.442695, %v1853_v50  ;;  %v4448_v37 = vmul.f32 -1.442695, %v1876_v36  ;;  %v4646_v50 = vld [vmem:[%s6455_s1 + $0x48] sm:$0xff]  ;;  %v4645_v36 = vld [vmem:[%s6455_s1 + $0x40] sm:$0xff] }
 0x9c8   :  { %2064 = vmatpush.bf16.msra.mxu2 %v4646_v50 }
 0x9c9   :  { %4827 = vpow2.f32 %v4447_v6  ;;  %v1847_v31 = vpop.f32.mrf.mxu2  ;;  %v4649_v6 = vld [vmem:[%s6455_s1 + $0x60] sm:$0xff] }
 0x9ca   :  { %4829 = vpow2.f32 %v4448_v37  ;;  %v1848_v60 = vadd.f32 %v5566_v29, %v1847_v31 }
 0x9cc   :  { %v1897_v13 = vrot.slane %v1848_v60, 6  ;;  %2065 = vmatpush.bf16.msra.mxu2 %v4645_v36  ;;  %v4653_v60 = vld [vmem:[%s6455_s1 + $0x80] sm:$0xff]  ;;  %v5869_v36 = vld [vmem:[%s6456_s2 + $0x118] sm:$0xff] }
 0x9cf   :  { %v4828_v39 = vpop.eup %4827 }
 0x9d0   :  { %v4830_v40 = vpop.eup %4829  ;;  %v1857_v41 = vadd.f32 1.0, %v4828_v39  ;;  %2195 = vmatpush.bf16.msrb.mxu2 %v4654_v54 }
 0x9d1   :  { %v1880_v43 = vadd.f32 1.0, %v4830_v40 }
 0x9d2   :  { %4831 = vrcp.f32 %v1857_v41  ;;  %v1869_v53 = vand.u32 2147483648, %v1857_v41  ;;  %v1867_v63 = vand.u32 2147483647, %v1857_v41  ;;  %vm1863_vm3 = vweird.f32 %v1857_v41 }
 0x9d3   :  { %4833 = vrcp.f32 %v1880_v43  ;;  %v1892_v48 = vand.u32 2147483648, %v1880_v43  ;;  %vm1886_vm8 = vweird.f32 %v1880_v43  ;;  %v1890_v19 = vand.u32 2147483647, %v1880_v43 }
 0x9d4   :  { %v1870_v38 = vor.u32 1.1754944e-38, %v1869_v53  ;;  %vm1868_vm6 = vcmp.eq.f32.partialorder %v1867_v63, 8.507059e+37  ;;  %2196 = vmatpush.bf16.msrb.mxu2 %v4653_v60  ;;  %v5913_v60 = vld [vmem:[%s6456_s2 + $0x18b] ss:$0 sm:$0xff] }
 0x9d5   :  { %v1893_v12 = vor.u32 1.1754944e-38, %v1892_v48  ;;  %vm1891_vm13 = vcmp.eq.f32.partialorder %v1890_v19, 8.507059e+37  ;;  %v2033_v48 = vld [vmem:[#allocation3 + $0x8] sm:$0xff] }
 0x9d8   :  { %v4832_v9 = vpop.eup %4831 }
 0x9d9   :  { %v1859_v44 = vmul.f32 %v4832_v9, %v1857_v41  ;;  %v4834_v15 = vpop.eup %4833  ;;  %vm1864_vm15 = vweird.f32 %v4832_v9 }
 0x9da   :  { %v1882_v49 = vmul.f32 %v4834_v15, %v1880_v43  ;;  %vm1865_vm5 = vmor %vm1863_vm3, %vm1864_vm15  ;;  %vm1887_vm7 = vweird.f32 %v4834_v15 }
 0x9db   :  { %v1860_v46 = vsub.f32 1.0, %v1859_v44  ;;  %vm1888_vm11 = vmor %vm1886_vm8, %vm1887_vm7 }
 0x9dc   :  { %v1883_v59 = vsub.f32 1.0, %v1882_v49 }
 0x9dd   :  { %v1861_v61 = vmul.f32 %v4832_v9, %v1860_v46 }
 0x9de   :  { %v1884_v29 = vmul.f32 %v4834_v15, %v1883_v59 }
 0x9df   :  { %v1862_v45 = vadd.f32 %v4832_v9, %v1861_v61 }
 0x9e0   :  { %v1885_v35 = vadd.f32 %v4834_v15, %v1884_v29 }
 0x9e1   :  { %v1866_v52 = vsel %vm1865_vm5, %v4832_v9, %v1862_v45 }
 0x9e2   :  { %v1871_v42 = vsel %vm1868_vm6, %v1870_v38, %v1866_v52  ;;  %v1889_v62 = vsel %vm1888_vm11, %v4834_v15, %v1885_v35 }
 0x9e3   :  { %v1899_v57 = vmul.f32 %v1897_v13, %v1871_v42  ;;  %v1894_v47 = vsel %vm1891_vm13, %v1893_v12, %v1889_v62 }
 0x9e5   :  { %v1900_v17 = vadd.f32 %v1899_v57, %v5432_v24 }
 0x9e7   :  { %4835 = vtanh.f32 %v1900_v17 }
 0x9ed   :  { %v4836_v14 = vpop.eup %4835 }
 0x9ee   :  { %v1903_v26 = vrot.slane %v4836_v14, 6 }
 0x9f0   :  { %v1905_v51 = vsub.f32 %v5711_v23, %v1903_v26  ;;  %v5796_v26 = vld [vmem:[%s6456_s2 + $0x189] ss:$0 sm:$0xff] }
 0x9f2   :  { %v1907_v0 = vrot.slane %v1905_v51, 2 }
 0x9f4   :  { %v1909_v55 = vmul.f32 %v1907_v0, %v1894_v47 }
 0x9f6   :  { %v5736_v27 = vadd.f32 %v4836_v14, %v1909_v55 }
 0x9f8   :  { %1911 = vst.msk [vmem:[#allocation3] sm:$0xc] %vm286_vm4, %v5736_v27  ;;  %v1913_v16 = vrot.slane %v5736_v27, 2 }
 0x9fa   :  { %4449 = vmatmul.msk.f32.vlgmr.msrb.gmra.mxu3 %vm161_vm10, %v1913_v16  ;;  %4450 = vmatmul.msk.f32.vlgmr.msrb.gmra.mxu0 %vm161_vm10, %v1913_v16 }
 0x9fb   :  { %4451 = vmatmul.msk.f32.vlgmr.msrb.gmra.mxu1 %vm161_vm10, %v1913_v16  ;;  %2221 = vmatpush.bf16.msrb.mxu3 %v4652_v18 }
 0x9ff   :  { %2222 = vmatpush.bf16.msrb.mxu3 %v4651_v5 }
 0xa02   :  { %4471 = vmatmul.msk.bf16.vlgmr.msra.gmra.mxu3 %vm161_vm10, %v5750_v56 }
 0xa03   :  { %4489 = vmatmul.msk.bf16.vlgmr.msra.gmra.mxu1 %vm161_vm10, %v5750_v56  ;;  %2473 = vmatpush.msra.mxu3 %v5869_v36 }
 0xa12   :  { %4507 = vmatmul.msk.bf16.vlgmr.msrb.gmra.mxu3 %vm161_vm10, %v5750_v56 }
 0xa77   :  { %v1953_v7 = vpop.f32.mrf.mxu0 }
 0xa78   :  { %v1996_v10 = vadd.f32 %v1953_v7, %v5429_v25  ;;  %v1973_v43 = vpop.f32.mrf.mxu1  ;;  %v5816_v7 = vld [vmem:[%s6456_s2 + $0xd0] sm:$0xff] }
 0xa79   :  { %v1974_v2 = vadd.f32 %v5009_v34, %v1973_v43 }
 0xa7a   :  { %v4453_v21 = vmul.f32 -1.442695, %v1996_v10  ;;  %v5822_v10 = vld [vmem:[%s6456_s2 + $0xf8] sm:$0xff] }
 0xa7b   :  { %2326 = vmatpush.msrb.mxu1 %v5822_v10 }
 0xa7d   :  { %v1933_v4 = vpop.f32.mrf.mxu3 }
 0xa7e   :  { %v1976_v20 = vadd.f32 %v1933_v4, %v5409_v11  ;;  %v4650_v11 = vld [vmem:[%s6455_s1 + $0x68] sm:$0xff]  ;;  %v5827_v4 = vld [vmem:[%s6456_s2 + $0xf0] sm:$0xff] }
 0xa7f   :  { %2131 = vmatpush.bf16.msra.mxu0 %v4650_v11  ;;  %2327 = vmatpush.msrb.mxu1 %v5827_v4 }
 0xa80   :  { %v4452_v22 = vmul.f32 -1.442695, %v1976_v20  ;;  %v2160_v62 = vpop.f32.mrf.mxu1  ;;  %v5832_v20 = vld [vmem:[%s6456_s2 + $0xc8] sm:$0xff] }
 0xa82   :  { %4837 = vpow2.f32 %v4452_v22 }
 0xa83   :  { %4839 = vpow2.f32 %v4453_v21  ;;  %2132 = vmatpush.bf16.msra.mxu0 %v4649_v6  ;;  %v5874_v6 = vld [vmem:[%s6456_s2 + $0x110] sm:$0xff] }
 0xa84   :  { %2474 = vmatpush.msra.mxu3 %v5874_v6 }
 0xa85   :  { %v2096_v47 = vpop.f32.mrf.mxu3 }
 0xa87   :  { %2306 = vmatpush.msrb.mxu0 %v5811_v3 }
 0xa88   :  { %v4838_v23 = vpop.eup %4837 }
 0xa89   :  { %v4840_v28 = vpop.eup %4839  ;;  %v1980_v30 = vadd.f32 1.0, %v4838_v23  ;;  %2307 = vmatpush.msrb.mxu0 %v5816_v7 }
 0xa8a   :  { %v2000_v32 = vadd.f32 1.0, %v4840_v28  ;;  %v5840_v28 = vld [vmem:[%s6456_s2 + $0xe8] sm:$0xff] }
 0xa8b   :  { %4841 = vrcp.f32 %v1980_v30  ;;  %v1992_v37 = vand.u32 2147483648, %v1980_v30  ;;  %v1990_v41 = vand.u32 2147483647, %v1980_v30  ;;  %vm1986_vm14 = vweird.f32 %v1980_v30  ;;  %2308 = vmatpush.msrb.mxu0 %v5832_v20  ;;  %2328 = vmatpush.msrb.mxu1 %v5840_v28 }
 0xa8c   :  { %4843 = vrcp.f32 %v2000_v32  ;;  %v2012_v38 = vand.u32 2147483648, %v2000_v32  ;;  %vm2006_vm15 = vweird.f32 %v2000_v32  ;;  %v2010_v52 = vand.u32 2147483647, %v2000_v32 }
 0xa8d   :  { %v1993_v31 = vor.u32 1.1754944e-38, %v1992_v37  ;;  %vm1991_vm2 = vcmp.eq.f32.partialorder %v1990_v41, 8.507059e+37  ;;  %v2098_v22 = vpop.f32.mrf.mxu3  ;;  %v5882_v37 = vld [vmem:[%s6456_s2 + $0x108] sm:$0xff] }
 0xa8e   :  { %v2013_v59 = vor.u32 1.1754944e-38, %v2012_v38  ;;  %vm2011_vm5 = vcmp.eq.f32.partialorder %v2010_v52, 8.507059e+37  ;;  %2475 = vmatpush.msra.mxu3 %v5882_v37 }
 0xa91   :  { %v4842_v33 = vpop.eup %4841 }
 0xa92   :  { %v1982_v8 = vmul.f32 %v4842_v33, %v1980_v30  ;;  %v4844_v39 = vpop.eup %4843  ;;  %vm1987_vm4 = vweird.f32 %v4842_v33 }
 0xa93   :  { %v2002_v44 = vmul.f32 %v4844_v39, %v2000_v32  ;;  %vm1988_vm1 = vmor %vm1986_vm14, %vm1987_vm4  ;;  %vm2007_vm0 = vweird.f32 %v4844_v39  ;;  %v5846_v32 = vld [vmem:[%s6456_s2 + $0xc0] sm:$0xff] }
 0xa94   :  { %v1983_v25 = vsub.f32 1.0, %v1982_v8  ;;  %vm2008_vm3 = vmor %vm2006_vm15, %vm2007_vm0  ;;  %2309 = vmatpush.msrb.mxu0 %v5846_v32 }
 0xa95   :  { %v2003_v15 = vsub.f32 1.0, %v2002_v44 }
 0xa96   :  { %v1984_v40 = vmul.f32 %v4842_v33, %v1983_v25 }
 0xa97   :  { %v2004_v63 = vmul.f32 %v4844_v39, %v2003_v15  ;;  %v5908_v15 = vld [vmem:[%s6456_s2 + $0x18a] ss:$0 sm:$0xff] }
 0xa98   :  { %v1985_v9 = vadd.f32 %v4842_v33, %v1984_v40 }
 0xa99   :  { %v2005_v45 = vadd.f32 %v4844_v39, %v2004_v63 }
 0xa9a   :  { %v1989_v46 = vsel %vm1988_vm1, %v4842_v33, %v1985_v9  ;;  %v5853_v33 = vld [vmem:[%s6456_s2 + $0xe0] sm:$0xff] }
 0xa9b   :  { %v1994_v53 = vsel %vm1991_vm2, %v1993_v31, %v1989_v46  ;;  %v2009_v42 = vsel %vm2008_vm3, %v4844_v39, %v2005_v45  ;;  %2329 = vmatpush.msrb.mxu1 %v5853_v33  ;;  %v5891_v39 = vld [vmem:[%s6456_s2 + $0x100] sm:$0xff] }
 0xa9c   :  { %v2016_v58 = vmul.f32 %v1994_v53, %v1974_v2  ;;  %v2014_v29 = vsel %vm2011_vm5, %v2013_v59, %v2009_v42  ;;  %2476 = vmatpush.msra.mxu3 %v5891_v39  ;;  %v2224_v53 = vpop.f32.mrf.mxu3 }
 0xa9d   :  { %2433 = vmatpush.msra.mxu1 %v5811_v3 }
 0xa9e   :  { %v2017_v61 = vadd.f32 %v2016_v58, %v5432_v24  ;;  %2687 = vmatpush.msrb.mxu3 %v5811_v3 }
 0xa9f   :  { %2434 = vmatpush.msra.mxu1 %v5816_v7 }
 0xaa0   :  { %4845 = vtanh.f32 %v2017_v61  ;;  %2688 = vmatpush.msrb.mxu3 %v5816_v7 }
 0xaa1   :  { %2435 = vmatpush.msra.mxu1 %v5832_v20 }
 0xaa2   :  { %2689 = vmatpush.msrb.mxu3 %v5832_v20 }
 0xaa3   :  { %2436 = vmatpush.msra.mxu1 %v5846_v32 }
 0xaa4   :  { %2690 = vmatpush.msrb.mxu3 %v5846_v32 }
 0xaa6   :  { %v4846_v49 = vpop.eup %4845 }
 0xaa7   :  { %v2020_v13 = vrot.slane %v4846_v49, 6 }
 0xaa9   :  { %v2022_v57 = vsub.f32 %v5736_v27, %v2020_v13  ;;  %v4680_v27 = vld [vmem:[%s6456_s2 + $0x188] ss:$0 sm:$0xff] }
 0xaab   :  { %v2024_v17 = vrot.slane %v2022_v57, 2 }
 0xaad   :  { %v2026_v35 = vmul.f32 %v2024_v17, %v2014_v29 }
 0xaaf   :  { %v2027_v24 = vadd.f32 %v4846_v49, %v2026_v35 }
 0xab1   :  { %2028 = vst.msk [vmem:[#allocation3] sm:$0x3] %vm159_vm9, %v2027_v24 }
 0xab2   :  { %4300 = vst.msk [vmem:[#allocation6 + $0x2] sm:$0x3] %vm159_vm9, %v2027_v24 }
 0xab8   :  { %v2032_v14 = vld [vmem:[#allocation3] sm:$0xff] }
 0xab9   :  { %v5785_v19 = vpack.c.bf16 %v2033_v48, %v2032_v14 }
 0xabb   :  { %4462 = vmatmul.msk.bf16.vlgmr.msra.gmra.mxu2 %vm161_vm10, %v5785_v19  ;;  %4480 = vmatmul.msk.bf16.vlgmr.msra.gmra.mxu0 %vm161_vm10, %v5785_v19 }
 0xabc   :  { %2453 = vmatpush.msra.mxu2 %v5822_v10  ;;  %2346 = vmatpush.msra.mxu0 %v5869_v36 }
 0xabe   :  { %2454 = vmatpush.msra.mxu2 %v5827_v4  ;;  %2347 = vmatpush.msra.mxu0 %v5874_v6 }
 0xac0   :  { %2455 = vmatpush.msra.mxu2 %v5840_v28  ;;  %2348 = vmatpush.msra.mxu0 %v5882_v37 }
 0xac2   :  { %2456 = vmatpush.msra.mxu2 %v5853_v33  ;;  %2349 = vmatpush.msra.mxu0 %v5891_v39 }
 0xacb   :  { %4498 = vmatmul.msk.bf16.vlgmr.msrb.gmra.mxu2 %vm161_vm10, %v5785_v19 }
 0xacc   :  { %2600 = vmatpush.msrb.mxu2 %v5869_v36 }
 0xace   :  { %2601 = vmatpush.msrb.mxu2 %v5874_v6 }
 0xad0   :  { %2602 = vmatpush.msrb.mxu2 %v5882_v37 }
 0xad2   :  { %2603 = vmatpush.msrb.mxu2 %v5891_v39 }
 0xb38   :  { %v2134_v51 = vpop.f32.mrf.mxu0 }
 0xb39   :  { %v2161_v12 = vadd.f32 %v2160_v62, %v2134_v51  ;;  %v5944_v51 = vpop.f32.mrf.mxu1 }
 0xb3b   :  { %v5799_v0 = vadd.f32 %v5796_v26, %v2161_v12 }
 0xb3d   :  { %v4509_v55 = vmul.f32 -1.442695, %v5799_v0 }
 0xb3e   :  { %v2067_v18 = vpop.f32.mrf.mxu2 }
 0xb3f   :  { %v2097_v16 = vadd.f32 %v2096_v47, %v2067_v18  ;;  %4847 = vpow2.f32 %v4509_v55 }
 0xb40   :  { %v5946_v12 = vpop.f32.mrf.mxu0 }
 0xb41   :  { %v5805_v5 = vadd.f32 %v4680_v27, %v2097_v16 }
 0xb43   :  { %v4508_v1 = vmul.f32 -1.442695, %v5805_v5 }
 0xb45   :  { %4849 = vpow2.f32 %v4508_v1  ;;  %v4848_v21 = vpop.eup %4847 }
 0xb46   :  { %v2069_v23 = vpop.f32.mrf.mxu2  ;;  %v5855_v8 = vadd.f32 1.0, %v4848_v21 }
 0xb47   :  { %v2099_v30 = vadd.f32 %v2098_v22, %v2069_v23 }
 0xb48   :  { %4851 = vrcp.f32 %v5855_v8  ;;  %v2281_v59 = vand.u32 2147483648, %v5855_v8  ;;  %vm2275_vm4 = vweird.f32 %v5855_v8  ;;  %v2279_v17 = vand.u32 2147483647, %v5855_v8 }
 0xb49   :  { %v5857_v50 = vadd.f32 %v4680_v27, %v2099_v30 }
 0xb4a   :  { %v2282_v35 = vor.u32 1.1754944e-38, %v2281_v59  ;;  %vm2280_vm1 = vcmp.eq.f32.partialorder %v2279_v17, 8.507059e+37 }
 0xb4b   :  { %v4850_v11 = vpop.eup %4849 }
 0xb4c   :  { %v2250_v25 = vadd.f32 1.0, %v4850_v11 }
 0xb4e   :  { %4853 = vrcp.f32 %v2250_v25  ;;  %v4852_v40 = vpop.eup %4851  ;;  %v2198_v31 = vpop.f32.mrf.mxu2  ;;  %v2262_v34 = vand.u32 2147483648, %v2250_v25  ;;  %v2260_v46 = vand.u32 2147483647, %v2250_v25  ;;  %vm2256_vm7 = vweird.f32 %v2250_v25 }
 0xb4f   :  { %v2271_v9 = vmul.f32 %v4852_v40, %v5855_v8  ;;  %v2225_v58 = vadd.f32 %v2224_v53, %v2198_v31  ;;  %vm2276_vm13 = vweird.f32 %v4852_v40 }
 0xb50   :  { %v2263_v63 = vor.u32 1.1754944e-38, %v2262_v34  ;;  %vm2261_vm11 = vcmp.eq.f32.partialorder %v2260_v46, 8.507059e+37  ;;  %vm2277_vm14 = vmor %vm2275_vm4, %vm2276_vm13 }
 0xb51   :  { %v2272_v54 = vsub.f32 1.0, %v2271_v9  ;;  %v5917_v52 = vadd.f32 %v5908_v15, %v2225_v58 }
 0xb53   :  { %v2273_v38 = vmul.f32 %v4852_v40, %v2272_v54 }
 0xb54   :  { %v4854_v41 = vpop.eup %4853 }
 0xb55   :  { %v2252_v43 = vmul.f32 %v4854_v41, %v2250_v25  ;;  %vm2257_vm6 = vweird.f32 %v4854_v41  ;;  %v2274_v57 = vadd.f32 %v4852_v40, %v2273_v38 }
 0xb56   :  { %vm2258_vm8 = vmor %vm2256_vm7, %vm2257_vm6 }
 0xb57   :  { %v2253_v44 = vsub.f32 1.0, %v2252_v43  ;;  %v2278_v29 = vsel %vm2277_vm14, %v4852_v40, %v2274_v57 }
 0xb58   :  { %v2283_v14 = vsel %vm2280_vm1, %v2282_v35, %v2278_v29 }
 0xb59   :  { %v2254_v2 = vmul.f32 %v4854_v41, %v2253_v44 }
 0xb5b   :  { %v2255_v61 = vadd.f32 %v4854_v41, %v2254_v2 }
 0xb5d   :  { %v2259_v45 = vsel %vm2258_vm8, %v4854_v41, %v2255_v61 }
 0xb5e   :  { %v2264_v49 = vsel %vm2261_vm11, %v2263_v63, %v2259_v45 }
 0xb5f   :  { %v2285_v13 = vmul.f32 %v5913_v60, %v2264_v49 }
 0xb61   :  { %v2286_v42 = vadd.f32 %v2285_v13, %v5917_v52 }
 0xb63   :  { %4855 = vtanh.f32 %v2286_v42 }
 0xb69   :  { %v4856_v24 = vpop.eup %4855 }
 0xb6a   :  { %v2288_v48 = vmul.f32 %v4856_v24, %v2283_v14 }
 0xb6c   :  { %v5924_v62 = vsub.f32 %v4856_v24, %v2288_v48 }
 0xb6e   :  { %4510 = vmatmul.msk.f32.vlgmr.msrb.gmra.mxu0 %vm161_vm10, %v5924_v62  ;;  %4511 = vmatmul.msk.f32.vlgmr.msrb.gmra.mxu1 %vm161_vm10, %v5924_v62 }
 0xb6f   :  { %2560 = vmatpush.msrb.mxu0 %v5811_v3  ;;  %2580 = vmatpush.msrb.mxu1 %v5822_v10 }
 0xb71   :  { %2561 = vmatpush.msrb.mxu0 %v5816_v7  ;;  %2581 = vmatpush.msrb.mxu1 %v5827_v4 }
 0xb73   :  { %2562 = vmatpush.msrb.mxu0 %v5832_v20  ;;  %2582 = vmatpush.msrb.mxu1 %v5840_v28 }
 0xb75   :  { %2563 = vmatpush.msrb.mxu0 %v5846_v32  ;;  %2583 = vmatpush.msrb.mxu1 %v5853_v33 }
 0xb76   :  { %4512 = vmatmul.msk.f32.vlgmr.msra.gmra.mxu0 %vm161_vm10, %v5924_v62 }
 0xb77   :  { %2707 = vmatpush.msra.mxu0 %v5822_v10 }
 0xb79   :  { %2708 = vmatpush.msra.mxu0 %v5827_v4 }
 0xb7b   :  { %2709 = vmatpush.msra.mxu0 %v5840_v28 }
 0xb7d   :  { %2710 = vmatpush.msra.mxu0 %v5853_v33 }
 0xbeb   :  { %v2311_v47 = vpop.f32.mrf.mxu0  ;;  %v2331_v55 = vpop.f32.mrf.mxu1 }
 0xbec   :  { %v2355_v27 = vrot.slane %v2311_v47, 6  ;;  %v2378_v18 = vrot.slane %v2331_v55, 6 }
 0xbee   :  { %v2357_v16 = vadd.f32 %v2355_v27, %v5805_v5  ;;  %v2380_v1 = vadd.f32 %v2378_v18, %v5799_v0 }
 0xbf0   :  { %v4513_v21 = vmul.f32 -1.442695, %v2357_v16  ;;  %v4514_v22 = vmul.f32 -1.442695, %v2380_v1  ;;  %v5976_v16 = vpop.f32.mrf.mxu2 }
 0xbf2   :  { %4857 = vpow2.f32 %v4513_v21 }
 0xbf3   :  { %4859 = vpow2.f32 %v4514_v22  ;;  %v2351_v41 = vpop.f32.mrf.mxu0 }
 0xbf4   :  { %v2352_v31 = vadd.f32 %v5913_v60, %v2351_v41 }
 0xbf6   :  { %v2401_v61 = vrot.slane %v2352_v31, 6 }
 0xbf8   :  { %v4858_v23 = vpop.eup %4857 }
 0xbf9   :  { %v4860_v30 = vpop.eup %4859  ;;  %v2361_v8 = vadd.f32 1.0, %v4858_v23 }
 0xbfa   :  { %v2384_v11 = vadd.f32 1.0, %v4860_v30 }
 0xbfb   :  { %4861 = vrcp.f32 %v2361_v8  ;;  %v2373_v9 = vand.u32 2147483648, %v2361_v8  ;;  %v2371_v2 = vand.u32 2147483647, %v2361_v8  ;;  %vm2367_vm0 = vweird.f32 %v2361_v8 }
 0xbfc   :  { %4863 = vrcp.f32 %v2384_v11  ;;  %v2396_v59 = vand.u32 2147483648, %v2384_v11  ;;  %vm2390_vm6 = vweird.f32 %v2384_v11  ;;  %v2394_v17 = vand.u32 2147483647, %v2384_v11 }
 0xbfd   :  { %v2374_v54 = vor.u32 1.1754944e-38, %v2373_v9  ;;  %vm2372_vm3 = vcmp.eq.f32.partialorder %v2371_v2, 8.507059e+37 }
 0xbfe   :  { %v2397_v14 = vor.u32 1.1754944e-38, %v2396_v59  ;;  %vm2395_vm8 = vcmp.eq.f32.partialorder %v2394_v17, 8.507059e+37 }
 0xc01   :  { %v4862_v25 = vpop.eup %4861 }
 0xc02   :  { %v2363_v40 = vmul.f32 %v4862_v25, %v2361_v8  ;;  %v4864_v44 = vpop.eup %4863  ;;  %vm2368_vm2 = vweird.f32 %v4862_v25 }
 0xc03   :  { %v2386_v53 = vmul.f32 %v4864_v44, %v2384_v11  ;;  %vm2369_vm15 = vmor %vm2367_vm0, %vm2368_vm2  ;;  %vm2391_vm5 = vweird.f32 %v4864_v44 }
 0xc04   :  { %v2364_v43 = vsub.f32 1.0, %v2363_v40  ;;  %vm2392_vm7 = vmor %vm2390_vm6, %vm2391_vm5 }
 0xc05   :  { %v2387_v49 = vsub.f32 1.0, %v2386_v53 }
 0xc06   :  { %v2365_v34 = vmul.f32 %v4862_v25, %v2364_v43  ;;  %v5980_v43 = vpop.f32.mrf.mxu3 }
 0xc07   :  { %v2388_v13 = vmul.f32 %v4864_v44, %v2387_v49 }
 0xc08   :  { %v2366_v46 = vadd.f32 %v4862_v25, %v2365_v34 }
 0xc09   :  { %v2389_v42 = vadd.f32 %v4864_v44, %v2388_v13 }
 0xc0a   :  { %v2370_v58 = vsel %vm2369_vm15, %v4862_v25, %v2366_v46 }
 0xc0b   :  { %v2375_v63 = vsel %vm2372_vm3, %v2374_v54, %v2370_v58  ;;  %v2393_v35 = vsel %vm2392_vm7, %v4864_v44, %v2389_v42 }
 0xc0c   :  { %v2403_v45 = vmul.f32 %v2401_v61, %v2375_v63  ;;  %v2398_v47 = vsel %vm2395_vm8, %v2397_v14, %v2393_v35 }
 0xc0e   :  { %v2404_v38 = vadd.f32 %v2403_v45, %v5917_v52 }
 0xc10   :  { %4865 = vtanh.f32 %v2404_v38 }
 0xc16   :  { %v4866_v57 = vpop.eup %4865 }
 0xc17   :  { %v2407_v29 = vrot.slane %v4866_v57, 2 }
 0xc19   :  { %v2409_v24 = vsub.f32 %v5924_v62, %v2407_v29 }
 0xc1b   :  { %v2411_v48 = vrot.slane %v2409_v24, 6 }
 0xc1d   :  { %v2413_v55 = vmul.f32 %v2411_v48, %v2398_v47 }
 0xc1f   :  { %v5953_v27 = vadd.f32 %v4866_v57, %v2413_v55 }
 0xc21   :  { %v5956_v18 = vrot.slane %v5953_v27, 2 }
 0xc23   :  { %4515 = vmatmul.msk.f32.vlgmr.msra.gmra.mxu1 %vm161_vm10, %v5956_v18  ;;  %4516 = vmatmul.msk.f32.vlgmr.msra.gmra.mxu2 %vm161_vm10, %v5956_v18 }
 0xc24   :  { %4517 = vmatmul.msk.f32.vlgmr.msra.gmra.mxu3 %vm161_vm10, %v5956_v18  ;;  %2727 = vmatpush.msra.mxu1 %v5869_v36 }
 0xc25   :  { %2803 = vmatpush.msra.mxu2 %v5811_v3  ;;  %2823 = vmatpush.msra.mxu3 %v5822_v10 }
 0xc26   :  { %2728 = vmatpush.msra.mxu1 %v5874_v6 }
 0xc27   :  { %2804 = vmatpush.msra.mxu2 %v5816_v7  ;;  %2824 = vmatpush.msra.mxu3 %v5827_v4 }
 0xc28   :  { %2729 = vmatpush.msra.mxu1 %v5882_v37 }
 0xc29   :  { %2805 = vmatpush.msra.mxu2 %v5832_v20  ;;  %2825 = vmatpush.msra.mxu3 %v5840_v28 }
 0xc2a   :  { %2730 = vmatpush.msra.mxu1 %v5891_v39 }
 0xc2b   :  { %2806 = vmatpush.msra.mxu2 %v5846_v32  ;;  %2826 = vmatpush.msra.mxu3 %v5853_v33 }
 0xca0   :  { %v2438_v1 = vpop.f32.mrf.mxu1 }
 0xca1   :  { %v2482_v21 = vrot.slane %v2438_v1, 4 }
 0xca3   :  { %v2484_v22 = vadd.f32 %v2482_v21, %v5805_v5 }
 0xca5   :  { %v4518_v23 = vmul.f32 -1.442695, %v2484_v22 }
 0xca6   :  { %v2458_v30 = vpop.f32.mrf.mxu2 }
 0xca7   :  { %4867 = vpow2.f32 %v4518_v23  ;;  %v2505_v8 = vrot.slane %v2458_v30, 4  ;;  %v2478_v2 = vpop.f32.mrf.mxu3 }
 0xca8   :  { %v2479_v54 = vadd.f32 %v5913_v60, %v2478_v2 }
 0xca9   :  { %v2507_v11 = vadd.f32 %v2505_v8, %v5799_v0 }
 0xcaa   :  { %v2528_v42 = vrot.slane %v2479_v54, 4 }
 0xcab   :  { %v4519_v25 = vmul.f32 -1.442695, %v2507_v11 }
 0xcad   :  { %v4868_v40 = vpop.eup %4867  ;;  %4869 = vpow2.f32 %v4519_v25 }
 0xcae   :  { %v2488_v41 = vadd.f32 1.0, %v4868_v40  ;;  %v2418_v40 = vadd.f32 %v5956_v18, %v5924_v62 }
 0xcb0   :  { %4871 = vrcp.f32 %v2488_v41  ;;  %v2500_v53 = vand.u32 2147483648, %v2488_v41  ;;  %v2498_v61 = vand.u32 2147483647, %v2488_v41  ;;  %vm2494_vm13 = vweird.f32 %v2488_v41 }
 0xcb2   :  { %v2501_v38 = vor.u32 1.1754944e-38, %v2500_v53  ;;  %vm2499_vm14 = vcmp.eq.f32.partialorder %v2498_v61, 8.507059e+37 }
 0xcb3   :  { %v4870_v9 = vpop.eup %4869 }
 0xcb4   :  { %v2511_v44 = vadd.f32 1.0, %v4870_v9 }
 0xcb6   :  { %v4872_v31 = vpop.eup %4871  ;;  %4873 = vrcp.f32 %v2511_v44  ;;  %v2523_v48 = vand.u32 2147483648, %v2511_v44  ;;  %vm2517_vm2 = vweird.f32 %v2511_v44  ;;  %v2521_v47 = vand.u32 2147483647, %v2511_v44 }
 0xcb7   :  { %v2490_v34 = vmul.f32 %v4872_v31, %v2488_v41  ;;  %vm2495_vm11 = vweird.f32 %v4872_v31 }
 0xcb8   :  { %vm2496_vm4 = vmor %vm2494_vm13, %vm2495_vm11  ;;  %v2524_v22 = vor.u32 1.1754944e-38, %v2523_v48  ;;  %vm2522_vm15 = vcmp.eq.f32.partialorder %v2521_v47, 8.507059e+37 }
 0xcb9   :  { %v2491_v46 = vsub.f32 1.0, %v2490_v34 }
 0xcbb   :  { %v2492_v58 = vmul.f32 %v4872_v31, %v2491_v46 }
 0xcbc   :  { %v4874_v63 = vpop.eup %4873 }
 0xcbd   :  { %v2493_v45 = vadd.f32 %v4872_v31, %v2492_v58  ;;  %v2513_v49 = vmul.f32 %v4874_v63, %v2511_v44  ;;  %vm2518_vm1 = vweird.f32 %v4874_v63 }
 0xcbe   :  { %vm2519_vm0 = vmor %vm2517_vm2, %vm2518_vm1 }
 0xcbf   :  { %v2497_v13 = vsel %vm2496_vm4, %v4872_v31, %v2493_v45  ;;  %v2514_v17 = vsub.f32 1.0, %v2513_v49 }
 0xcc0   :  { %v2502_v57 = vsel %vm2499_vm14, %v2501_v38, %v2497_v13 }
 0xcc1   :  { %v2530_v59 = vmul.f32 %v2528_v42, %v2502_v57  ;;  %v2515_v35 = vmul.f32 %v4874_v63, %v2514_v17 }
 0xcc3   :  { %v2531_v29 = vadd.f32 %v2530_v59, %v5917_v52  ;;  %v2516_v24 = vadd.f32 %v4874_v63, %v2515_v35 }
 0xcc5   :  { %4875 = vtanh.f32 %v2531_v29  ;;  %v2520_v1 = vsel %vm2519_vm0, %v4874_v63, %v2516_v24 }
 0xcc6   :  { %v2525_v30 = vsel %vm2522_vm15, %v2524_v22, %v2520_v1 }
 0xccb   :  { %v4876_v14 = vpop.eup %4875 }
 0xccc   :  { %v2534_v55 = vrot.slane %v4876_v14, 2 }
 0xcce   :  { %v2536_v21 = vsub.f32 %v5953_v27, %v2534_v55 }
 0xcd0   :  { %v2538_v23 = vrot.slane %v2536_v21, 6 }
 0xcd2   :  { %v2540_v8 = vmul.f32 %v2538_v23, %v2525_v30 }
 0xcd4   :  { %v5985_v11 = vadd.f32 %v4876_v14, %v2540_v8 }
 0xcd6   :  { %v2543_v25 = vrot.slane %v5985_v11, 4 }
 0xcd8   :  { %4520 = vmatmul.msk.f32.vlgmr.msrb.gmra.mxu0 %vm161_vm10, %v2543_v25  ;;  %4521 = vmatmul.msk.f32.vlgmr.msrb.gmra.mxu1 %vm161_vm10, %v2543_v25  ;;  %v5992_v41 = vadd.f32 %v2543_v25, %v2418_v40 }
 0xcd9   :  { %4522 = vmatmul.msk.f32.vlgmr.msrb.gmra.mxu2 %vm161_vm10, %v2543_v25  ;;  %2843 = vmatpush.msrb.mxu0 %v5869_v36 }
 0xcda   :  { %2930 = vmatpush.msrb.mxu1 %v5811_v3  ;;  %2950 = vmatpush.msrb.mxu2 %v5822_v10 }
 0xcdb   :  { %2844 = vmatpush.msrb.mxu0 %v5874_v6 }
 0xcdc   :  { %2931 = vmatpush.msrb.mxu1 %v5816_v7  ;;  %2951 = vmatpush.msrb.mxu2 %v5827_v4 }
 0xcdd   :  { %2845 = vmatpush.msrb.mxu0 %v5882_v37 }
 0xcde   :  { %2932 = vmatpush.msrb.mxu1 %v5832_v20  ;;  %2952 = vmatpush.msrb.mxu2 %v5840_v28 }
 0xcdf   :  { %2846 = vmatpush.msrb.mxu0 %v5891_v39 }
 0xce0   :  { %2933 = vmatpush.msrb.mxu1 %v5846_v32  ;;  %2953 = vmatpush.msrb.mxu2 %v5853_v33 }
 0xd55   :  { %v2565_v62 = vpop.f32.mrf.mxu0  ;;  %v2585_v27 = vpop.f32.mrf.mxu1 }
 0xd56   :  { %v2609_v18 = vrot.slane %v2565_v62, 2  ;;  %v2632_v9 = vrot.slane %v2585_v27, 2 }
 0xd58   :  { %v2611_v44 = vadd.f32 %v2609_v18, %v5805_v5  ;;  %v2634_v31 = vadd.f32 %v2632_v9, %v5799_v0 }
 0xd5a   :  { %v4523_v34 = vmul.f32 -1.442695, %v2611_v44  ;;  %v4524_v2 = vmul.f32 -1.442695, %v2634_v31 }
 0xd5c   :  { %4877 = vpow2.f32 %v4523_v34  ;;  %v2605_v45 = vpop.f32.mrf.mxu2 }
 0xd5d   :  { %4879 = vpow2.f32 %v4524_v2  ;;  %v2606_v5 = vadd.f32 %v5913_v60, %v2605_v45 }
 0xd5f   :  { %v2655_v35 = vrot.slane %v2606_v5, 2 }
 0xd62   :  { %v4878_v46 = vpop.eup %4877 }
 0xd63   :  { %v4880_v53 = vpop.eup %4879  ;;  %v2615_v54 = vadd.f32 1.0, %v4878_v46 }
 0xd64   :  { %v2638_v58 = vadd.f32 1.0, %v4880_v53 }
 0xd65   :  { %4881 = vrcp.f32 %v2615_v54  ;;  %v2627_v38 = vand.u32 2147483648, %v2615_v54  ;;  %v2625_v0 = vand.u32 2147483647, %v2615_v54  ;;  %vm2621_vm5 = vweird.f32 %v2615_v54 }
 0xd66   :  { %4883 = vrcp.f32 %v2638_v58  ;;  %v2650_v22 = vand.u32 2147483648, %v2638_v58  ;;  %vm2644_vm11 = vweird.f32 %v2638_v58  ;;  %v2648_v23 = vand.u32 2147483647, %v2638_v58 }
 0xd67   :  { %v2628_v17 = vor.u32 1.1754944e-38, %v2627_v38  ;;  %vm2626_vm7 = vcmp.eq.f32.partialorder %v2625_v0, 8.507059e+37 }
 0xd68   :  { %v2651_v40 = vor.u32 1.1754944e-38, %v2650_v22  ;;  %vm2649_vm4 = vcmp.eq.f32.partialorder %v2648_v23, 8.507059e+37 }
 0xd6b   :  { %v4882_v61 = vpop.eup %4881 }
 0xd6c   :  { %v2617_v63 = vmul.f32 %v4882_v61, %v2615_v54  ;;  %v4884_v13 = vpop.eup %4883  ;;  %vm2622_vm3 = vweird.f32 %v4882_v61 }
 0xd6d   :  { %v2640_v59 = vmul.f32 %v4884_v13, %v2638_v58  ;;  %vm2623_vm6 = vmor %vm2621_vm5, %vm2622_vm3  ;;  %vm2645_vm8 = vweird.f32 %v4884_v13 }
 0xd6e   :  { %v2618_v49 = vsub.f32 1.0, %v2617_v63  ;;  %vm2646_vm13 = vmor %vm2644_vm11, %vm2645_vm8 }
 0xd6f   :  { %v2641_v48 = vsub.f32 1.0, %v2640_v59 }
 0xd70   :  { %v2619_v42 = vmul.f32 %v4882_v61, %v2618_v49 }
 0xd71   :  { %v2642_v55 = vmul.f32 %v4884_v13, %v2641_v48 }
 0xd72   :  { %v2620_v57 = vadd.f32 %v4882_v61, %v2619_v42 }
 0xd73   :  { %v2643_v1 = vadd.f32 %v4884_v13, %v2642_v55 }
 0xd74   :  { %v2624_v29 = vsel %vm2623_vm6, %v4882_v61, %v2620_v57  ;;  %v2227_v61 = vadd.f32 %v5980_v43, %v5976_v16 }
 0xd75   :  { %v2629_v24 = vsel %vm2626_vm7, %v2628_v17, %v2624_v29  ;;  %v2647_v8 = vsel %vm2646_vm13, %v4884_v13, %v2643_v1 }
 0xd76   :  { %v2657_v14 = vmul.f32 %v2655_v35, %v2629_v24  ;;  %v2652_v27 = vsel %vm2649_vm4, %v2651_v40, %v2647_v8  ;;  %v6044_v42 = vadd.f32 %v5908_v15, %v2227_v61 }
 0xd78   :  { %v2658_v47 = vadd.f32 %v2657_v14, %v5917_v52 }
 0xd7a   :  { %4885 = vtanh.f32 %v2658_v47 }
 0xd80   :  { %v4886_v21 = vpop.eup %4885 }
 0xd81   :  { %v2661_v30 = vrot.slane %v4886_v21, 2 }
 0xd83   :  { %v2663_v25 = vsub.f32 %v5985_v11, %v2661_v30 }
 0xd85   :  { %v2665_v62 = vrot.slane %v2663_v25, 6 }
 0xd87   :  { %v2667_v18 = vmul.f32 %v2665_v62, %v2652_v27 }
 0xd89   :  { %v6012_v9 = vadd.f32 %v4886_v21, %v2667_v18 }
 0xd8b   :  { %v2670_v52 = vrot.slane %v6012_v9, 6 }
 0xd8d   :  { %4525 = vmatmul.msk.f32.vlgmr.msrb.gmra.mxu3 %vm161_vm10, %v2670_v52  ;;  %4526 = vmatmul.msk.f32.vlgmr.msra.gmra.mxu0 %vm161_vm10, %v2670_v52  ;;  %v6018_v44 = vadd.f32 %v2670_v52, %v5992_v41 }
 0xd8e   :  { %4527 = vmatmul.msk.f32.vlgmr.msra.gmra.mxu1 %vm161_vm10, %v2670_v52  ;;  %2970 = vmatpush.msrb.mxu3 %v5869_v36 }
 0xd8f   :  { %3057 = vmatpush.msra.mxu0 %v5811_v3  ;;  %3077 = vmatpush.msra.mxu1 %v5822_v10  ;;  %v2163_v3 = vadd.f32 %v5944_v51, %v5946_v12 }
 0xd90   :  { %2971 = vmatpush.msrb.mxu3 %v5874_v6 }
 0xd91   :  { %3058 = vmatpush.msra.mxu0 %v5816_v7  ;;  %3078 = vmatpush.msra.mxu1 %v5827_v4  ;;  %v6036_v7 = vadd.f32 %v5796_v26, %v2163_v3  ;;  %v4658_v3 = vld [vmem:[%s6455_s1 + $0xa8] sm:$0xff] }
 0xd92   :  { %2972 = vmatpush.msrb.mxu3 %v5882_v37 }
 0xd93   :  { %3059 = vmatpush.msra.mxu0 %v5832_v20  ;;  %3079 = vmatpush.msra.mxu1 %v5840_v28 }
 0xd94   :  { %2973 = vmatpush.msrb.mxu3 %v5891_v39 }
 0xd95   :  { %3060 = vmatpush.msra.mxu0 %v5846_v32  ;;  %3080 = vmatpush.msra.mxu1 %v5853_v33 }
 0xe0a   :  { %v2712_v10 = vpop.f32.mrf.mxu0 }
 0xe0b   :  { %v2755_v4 = vadd.f32 %v2712_v10, %v6036_v7  ;;  %v2732_v58 = vpop.f32.mrf.mxu1 }
 0xe0c   :  { %v2733_v38 = vadd.f32 %v5913_v60, %v2732_v58 }
 0xe0d   :  { %v4529_v41 = vmul.f32 -1.442695, %v2755_v4 }
 0xe10   :  { %v2692_v11 = vpop.f32.mrf.mxu3 }
 0xe11   :  { %v2735_v20 = vadd.f32 %v2692_v11, %v5857_v50  ;;  %v4657_v11 = vld [vmem:[%s6455_s1 + $0xa0] sm:$0xff] }
 0xe13   :  { %v4528_v28 = vmul.f32 -1.442695, %v2735_v20 }
 0xe15   :  { %4887 = vpow2.f32 %v4528_v28 }
 0xe16   :  { %4889 = vpow2.f32 %v4529_v41 }
 0xe1b   :  { %v4888_v31 = vpop.eup %4887 }
 0xe1c   :  { %v4890_v32 = vpop.eup %4889  ;;  %v2739_v34 = vadd.f32 1.0, %v4888_v31 }
 0xe1d   :  { %v2759_v33 = vadd.f32 1.0, %v4890_v32 }
 0xe1e   :  { %4891 = vrcp.f32 %v2739_v34  ;;  %v2751_v26 = vand.u32 2147483648, %v2739_v34  ;;  %v2749_v54 = vand.u32 2147483647, %v2739_v34  ;;  %vm2745_vm1 = vweird.f32 %v2739_v34 }
 0xe1f   :  { %4893 = vrcp.f32 %v2759_v33  ;;  %v2771_v29 = vand.u32 2147483648, %v2759_v33  ;;  %vm2765_vm3 = vweird.f32 %v2759_v33  ;;  %v2769_v35 = vand.u32 2147483647, %v2759_v33 }
 0xe20   :  { %v2752_v49 = vor.u32 1.1754944e-38, %v2751_v26  ;;  %vm2750_vm0 = vcmp.eq.f32.partialorder %v2749_v54, 8.507059e+37 }
 0xe21   :  { %v2772_v47 = vor.u32 1.1754944e-38, %v2771_v29  ;;  %vm2770_vm6 = vcmp.eq.f32.partialorder %v2769_v35, 8.507059e+37 }
 0xe24   :  { %v4892_v51 = vpop.eup %4891 }
 0xe25   :  { %v2741_v12 = vmul.f32 %v4892_v51, %v2739_v34  ;;  %v4894_v46 = vpop.eup %4893  ;;  %vm2746_vm14 = vweird.f32 %v4892_v51 }
 0xe26   :  { %v2761_v45 = vmul.f32 %v4894_v46, %v2759_v33  ;;  %vm2747_vm2 = vmor %vm2745_vm1, %vm2746_vm14  ;;  %vm2766_vm15 = vweird.f32 %v4894_v46 }
 0xe27   :  { %v2742_v2 = vsub.f32 1.0, %v2741_v12  ;;  %vm2767_vm5 = vmor %vm2765_vm3, %vm2766_vm15 }
 0xe28   :  { %v2762_v57 = vsub.f32 1.0, %v2761_v45 }
 0xe29   :  { %v2743_v53 = vmul.f32 %v4892_v51, %v2742_v2 }
 0xe2a   :  { %v2763_v17 = vmul.f32 %v4894_v46, %v2762_v57 }
 0xe2b   :  { %v2744_v63 = vadd.f32 %v4892_v51, %v2743_v53 }
 0xe2c   :  { %v2764_v16 = vadd.f32 %v4894_v46, %v2763_v17 }
 0xe2d   :  { %v2748_v13 = vsel %vm2747_vm2, %v4892_v51, %v2744_v63 }
 0xe2e   :  { %v2753_v5 = vsel %vm2750_vm0, %v2752_v49, %v2748_v13  ;;  %v2768_v14 = vsel %vm2767_vm5, %v4894_v46, %v2764_v16 }
 0xe2f   :  { %v2775_v0 = vmul.f32 %v2753_v5, %v2733_v38  ;;  %v2773_v55 = vsel %vm2770_vm6, %v2772_v47, %v2768_v14 }
 0xe31   :  { %v2776_v59 = vadd.f32 %v2775_v0, %v6044_v42 }
 0xe33   :  { %4895 = vtanh.f32 %v2776_v59 }
 0xe39   :  { %v4896_v43 = vpop.eup %4895 }
 0xe3a   :  { %v2779_v24 = vrot.slane %v4896_v43, 2 }
 0xe3c   :  { %v2781_v48 = vsub.f32 %v6012_v9, %v2779_v24  ;;  %v4665_v24 = vld [vmem:[%s6455_s1 + $0xe0] sm:$0xff] }
 0xe3e   :  { %v2783_v15 = vrot.slane %v2781_v48, 6 }
 0xe40   :  { %v2785_v1 = vmul.f32 %v2783_v15, %v2773_v55 }
 0xe42   :  { %v6048_v21 = vadd.f32 %v4896_v43, %v2785_v1  ;;  %v4666_v43 = vld [vmem:[%s6455_s1 + $0xe8] sm:$0xff] }
 0xe44   :  { %4530 = vmatmul.msk.f32.vlgmr.msra.gmra.mxu2 %vm161_vm10, %v6048_v21  ;;  %4531 = vmatmul.msk.f32.vlgmr.msra.gmra.mxu3 %vm161_vm10, %v6048_v21  ;;  %v2787_v29 = vadd.f32 %v6048_v21, %v6018_v44 }
 0xe45   :  { %4532 = vmatmul.msk.f32.vlgmr.msrb.gmra.mxu0 %vm161_vm10, %v6048_v21  ;;  %3097 = vmatpush.msra.mxu2 %v5869_v36 }
 0xe46   :  { %3197 = vmatpush.bf16.msra.mxu3 %v4658_v3 }
 0xe47   :  { %3098 = vmatpush.msra.mxu2 %v5874_v6 }
 0xe49   :  { %3099 = vmatpush.msra.mxu2 %v5882_v37 }
 0xe4a   :  { %3198 = vmatpush.bf16.msra.mxu3 %v4657_v11 }
 0xe4b   :  { %3100 = vmatpush.msra.mxu2 %v5891_v39 }
 0xec2   :  { %v2848_v52 = vpop.f32.mrf.mxu0 }
 0xec3   :  { %v2849_v41 = vadd.f32 %v5913_v60, %v2848_v52 }
 0xec5   :  { %v2898_v51 = vrot.slane %v2849_v41, 6 }
 0xec7   :  { %v2808_v22 = vpop.f32.mrf.mxu2  ;;  %v2828_v23 = vpop.f32.mrf.mxu3 }
 0xec8   :  { %v2852_v30 = vrot.slane %v2808_v22, 6  ;;  %v2875_v8 = vrot.slane %v2828_v23, 6 }
 0xeca   :  { %v2854_v25 = vadd.f32 %v2852_v30, %v5857_v50  ;;  %v2877_v40 = vadd.f32 %v2875_v8, %v6036_v7 }
 0xecc   :  { %v4533_v62 = vmul.f32 -1.442695, %v2854_v25  ;;  %v4534_v27 = vmul.f32 -1.442695, %v2877_v40 }
 0xece   :  { %4897 = vpow2.f32 %v4533_v62 }
 0xecf   :  { %4899 = vpow2.f32 %v4534_v27  ;;  %v4656_v27 = vld [vmem:[%s6455_s1 + $0x98] sm:$0xff] }
 0xed0   :  { %3223 = vmatpush.bf16.msrb.mxu0 %v4656_v27 }
 0xed4   :  { %v4898_v18 = vpop.eup %4897 }
 0xed5   :  { %v4900_v36 = vpop.eup %4899  ;;  %v2858_v9 = vadd.f32 1.0, %v4898_v18  ;;  %v4662_v18 = vld [vmem:[%s6455_s1 + $0xc8] sm:$0xff] }
 0xed6   :  { %v2881_v6 = vadd.f32 1.0, %v4900_v36 }
 0xed7   :  { %4901 = vrcp.f32 %v2858_v9  ;;  %v2870_v4 = vand.u32 2147483648, %v2858_v9  ;;  %v2868_v31 = vand.u32 2147483647, %v2858_v9  ;;  %vm2864_vm8 = vweird.f32 %v2858_v9 }
 0xed8   :  { %4903 = vrcp.f32 %v2881_v6  ;;  %v2893_v63 = vand.u32 2147483648, %v2881_v6  ;;  %vm2887_vm14 = vweird.f32 %v2881_v6  ;;  %v2891_v45 = vand.u32 2147483647, %v2881_v6 }
 0xed9   :  { %v2871_v34 = vor.u32 1.1754944e-38, %v2870_v4  ;;  %vm2869_vm13 = vcmp.eq.f32.partialorder %v2868_v31, 8.507059e+37  ;;  %v4659_v4 = vld [vmem:[%s6455_s1 + $0xb0] sm:$0xff] }
 0xeda   :  { %v2894_v5 = vor.u32 1.1754944e-38, %v2893_v63  ;;  %vm2892_vm2 = vcmp.eq.f32.partialorder %v2891_v45, 8.507059e+37 }
 0xedd   :  { %v4902_v37 = vpop.eup %4901 }
 0xede   :  { %v2860_v39 = vmul.f32 %v4902_v37, %v2858_v9  ;;  %v4904_v20 = vpop.eup %4903  ;;  %vm2865_vm7 = vweird.f32 %v4902_v37  ;;  %v4660_v9 = vld [vmem:[%s6455_s1 + $0xb8] sm:$0xff] }
 0xedf   :  { %vm2866_vm11 = vmor %vm2864_vm8, %vm2865_vm7  ;;  %v2883_v33 = vmul.f32 %v4904_v20, %v2881_v6  ;;  %vm2888_vm4 = vweird.f32 %v4904_v20 }
 0xee0   :  { %v2861_v10 = vsub.f32 1.0, %v2860_v39  ;;  %vm2889_vm1 = vmor %vm2887_vm14, %vm2888_vm4  ;;  %v4661_v39 = vld [vmem:[%s6455_s1 + $0xc0] sm:$0xff] }
 0xee1   :  { %v2884_v46 = vsub.f32 1.0, %v2883_v33 }
 0xee2   :  { %v2862_v28 = vmul.f32 %v4902_v37, %v2861_v10 }
 0xee3   :  { %v2885_v54 = vmul.f32 %v4904_v20, %v2884_v46 }
 0xee4   :  { %v2863_v32 = vadd.f32 %v4902_v37, %v2862_v28 }
 0xee5   :  { %v2886_v58 = vadd.f32 %v4904_v20, %v2885_v54 }
 0xee6   :  { %v2867_v12 = vsel %vm2866_vm11, %v4902_v37, %v2863_v32  ;;  %v4655_v37 = vld [vmem:[%s6455_s1 + $0x90] sm:$0xff] }
 0xee7   :  { %v2872_v2 = vsel %vm2869_vm13, %v2871_v34, %v2867_v12  ;;  %v2890_v38 = vsel %vm2889_vm1, %v4904_v20, %v2886_v58  ;;  %3224 = vmatpush.bf16.msrb.mxu0 %v4655_v37 }
 0xee8   :  { %v2900_v26 = vmul.f32 %v2898_v51, %v2872_v2  ;;  %v2895_v57 = vsel %vm2892_vm2, %v2894_v5, %v2890_v38  ;;  %v4664_v5 = vld [vmem:[%s6455_s1 + $0xd8] sm:$0xff] }
 0xeea   :  { %v2901_v53 = vadd.f32 %v2900_v26, %v6044_v42 }
 0xeec   :  { %4905 = vtanh.f32 %v2901_v53 }
 0xef2   :  { %v4906_v61 = vpop.eup %4905 }
 0xef3   :  { %v2904_v49 = vrot.slane %v4906_v61, 2 }
 0xef5   :  { %v2906_v13 = vsub.f32 %v6048_v21, %v2904_v49 }
 0xef7   :  { %v2908_v0 = vrot.slane %v2906_v13, 6 }
 0xef9   :  { %v2910_v59 = vmul.f32 %v2908_v0, %v2895_v57 }
 0xefb   :  { %v6071_v17 = vadd.f32 %v4906_v61, %v2910_v59  ;;  %v4663_v59 = vld [vmem:[%s6455_s1 + $0xd0] sm:$0xff] }
 0xefd   :  { %v2913_v16 = vrot.slane %v6071_v17, 2 }
 0xeff   :  { %4535 = vmatmul.msk.f32.vlgmr.msrb.gmra.mxu1 %vm161_vm10, %v2913_v16  ;;  %4536 = vmatmul.msk.f32.vlgmr.msrb.gmra.mxu2 %vm161_vm10, %v2913_v16  ;;  %v6081_v35 = vadd.f32 %v2913_v16, %v2787_v29 }
 0xf00   :  { %4537 = vmatmul.msk.f32.vlgmr.msrb.gmra.mxu3 %vm161_vm10, %v2913_v16  ;;  %3261 = vmatpush.bf16.msrb.mxu1 %v4662_v18 }
 0xf01   :  { %3325 = vmatpush.bf16.msrb.mxu3 %v4666_v43  ;;  %3287 = vmatpush.bf16.msrb.mxu2 %v4660_v9 }
 0xf04   :  { %3262 = vmatpush.bf16.msrb.mxu1 %v4661_v39 }
 0xf05   :  { %3326 = vmatpush.bf16.msrb.mxu3 %v4665_v24  ;;  %3288 = vmatpush.bf16.msrb.mxu2 %v4659_v4 }
 0xf08   :  { %4553 = vmatmul.msk.bf16.vlgmr.msra.gmra.mxu3 %vm161_vm10, %v5785_v19 }
 0xf18   :  { %4589 = vmatmul.msk.bf16.vlgmr.msrb.gmra.mxu3 %vm161_vm10, %v5785_v19 }
 0xf7c   :  { %v2935_v44 = vpop.f32.mrf.mxu1 }
 0xf7d   :  { %v2979_v14 = vrot.slane %v2935_v44, 4 }
 0xf7f   :  { %v2981_v48 = vadd.f32 %v2979_v14, %v5857_v50 }
 0xf81   :  { %v4538_v47 = vmul.f32 -1.442695, %v2981_v48 }
 0xf82   :  { %v2955_v15 = vpop.f32.mrf.mxu2 }
 0xf83   :  { %4907 = vpow2.f32 %v4538_v47  ;;  %v3002_v55 = vrot.slane %v2955_v15, 4  ;;  %v2975_v62 = vpop.f32.mrf.mxu3 }
 0xf84   :  { %v2976_v52 = vadd.f32 %v5913_v60, %v2975_v62 }
 0xf85   :  { %v3004_v1 = vadd.f32 %v3002_v55, %v6036_v7 }
 0xf86   :  { %v3025_v32 = vrot.slane %v2976_v52, 4  ;;  %v6158_v52 = vld [vmem:[%s6456_s2 + $0x18e] ss:$0 sm:$0xff] }
 0xf87   :  { %v4539_v21 = vmul.f32 -1.442695, %v3004_v1 }
 0xf89   :  { %v4908_v22 = vpop.eup %4907  ;;  %4909 = vpow2.f32 %v4539_v21 }
 0xf8a   :  { %v2985_v23 = vadd.f32 1.0, %v4908_v22 }
 0xf8b   :  { %v3200_v44 = vpop.f32.mrf.mxu3 }
 0xf8c   :  { %4911 = vrcp.f32 %v2985_v23  ;;  %v2997_v6 = vand.u32 2147483648, %v2985_v23  ;;  %v2995_v10 = vand.u32 2147483647, %v2985_v23  ;;  %vm2991_vm15 = vweird.f32 %v2985_v23 }
 0xf8e   :  { %v2998_v28 = vor.u32 1.1754944e-38, %v2997_v6  ;;  %vm2996_vm5 = vcmp.eq.f32.partialorder %v2995_v10, 8.507059e+37 }
 0xf8f   :  { %v4910_v30 = vpop.eup %4909 }
 0xf90   :  { %v3008_v8 = vadd.f32 1.0, %v4910_v30  ;;  %v4684_v30 = vld [vmem:[%s6456_s2 + $0x18d] ss:$0 sm:$0xff] }
 0xf92   :  { %v4912_v25 = vpop.eup %4911  ;;  %4913 = vrcp.f32 %v3008_v8  ;;  %v3020_v46 = vand.u32 2147483648, %v3008_v8  ;;  %vm3014_vm7 = vweird.f32 %v3008_v8  ;;  %v3018_v53 = vand.u32 2147483647, %v3008_v8 }
 0xf93   :  { %v2987_v40 = vmul.f32 %v4912_v25, %v2985_v23  ;;  %vm2992_vm0 = vweird.f32 %v4912_v25 }
 0xf94   :  { %vm2993_vm3 = vmor %vm2991_vm15, %vm2992_vm0  ;;  %v3021_v63 = vor.u32 1.1754944e-38, %v3020_v46  ;;  %vm3019_vm11 = vcmp.eq.f32.partialorder %v3018_v53, 8.507059e+37 }
 0xf95   :  { %v2988_v36 = vsub.f32 1.0, %v2987_v40 }
 0xf97   :  { %v2989_v3 = vmul.f32 %v4912_v25, %v2988_v36 }
 0xf98   :  { %v4914_v11 = vpop.eup %4913 }
 0xf99   :  { %v2990_v20 = vadd.f32 %v4912_v25, %v2989_v3  ;;  %v3010_v41 = vmul.f32 %v4914_v11, %v3008_v8  ;;  %vm3015_vm6 = vweird.f32 %v4914_v11 }
 0xf9a   :  { %vm3016_vm8 = vmor %vm3014_vm7, %vm3015_vm6 }
 0xf9b   :  { %v2994_v31 = vsel %vm2993_vm3, %v4912_v25, %v2990_v20  ;;  %v3011_v33 = vsub.f32 1.0, %v3010_v41 }
 0xf9c   :  { %v2999_v60 = vsel %vm2996_vm5, %v2998_v28, %v2994_v31  ;;  %v5010_v28 = vld [vmem:[%s6456_s2 + $0x18b] ss:$0 sm:$0xff] }
 0xf9d   :  { %v3027_v34 = vmul.f32 %v3025_v32, %v2999_v60  ;;  %v3012_v12 = vmul.f32 %v4914_v11, %v3011_v33 }
 0xf9f   :  { %v3028_v51 = vadd.f32 %v3027_v34, %v6044_v42  ;;  %v3013_v2 = vadd.f32 %v4914_v11, %v3012_v12 }
 0xfa1   :  { %4915 = vtanh.f32 %v3028_v51  ;;  %v3017_v58 = vsel %vm3016_vm8, %v4914_v11, %v3013_v2  ;;  %v6174_v2 = vld [vmem:[%s6456_s2 + $0x138] sm:$0xff] }
 0xfa2   :  { %v3022_v49 = vsel %vm3019_vm11, %v3021_v63, %v3017_v58  ;;  %v6193_v63 = vld [vmem:[%s6456_s2 + $0x150] sm:$0xff] }
 0xfa7   :  { %v4916_v26 = vpop.eup %4915 }
 0xfa8   :  { %v3031_v54 = vrot.slane %v4916_v26, 2 }
 0xfaa   :  { %v3033_v61 = vsub.f32 %v6071_v17, %v3031_v54 }
 0xfac   :  { %v3035_v45 = vrot.slane %v3033_v61, 6  ;;  %v6188_v61 = vld [vmem:[%s6456_s2 + $0x130] sm:$0xff] }
 0xfae   :  { %v3037_v38 = vmul.f32 %v3035_v45, %v3022_v49 }
 0xfb0   :  { %v6114_v13 = vadd.f32 %v4916_v26, %v3037_v38  ;;  %v6179_v26 = vld [vmem:[%s6456_s2 + $0x158] sm:$0xff] }
 0xfb1   :  { %3585 = vmatpush.msra.mxu3 %v6179_v26 }
 0xfb2   :  { %v3040_v0 = vrot.slane %v6114_v13, 4 }
 0xfb3   :  { %3586 = vmatpush.msra.mxu3 %v6193_v63 }
 0xfb4   :  { %4540 = vmatmul.msk.f32.vlgmr.msra.gmra.mxu0 %vm161_vm10, %v3040_v0  ;;  %4541 = vmatmul.msk.f32.vlgmr.msra.gmra.mxu1 %vm161_vm10, %v3040_v0  ;;  %v6123_v57 = vadd.f32 %v3040_v0, %v6081_v35 }
 0xfb5   :  { %4542 = vmatmul.msk.f32.vlgmr.msra.gmra.mxu2 %vm161_vm10, %v3040_v0  ;;  %3351 = vmatpush.bf16.msra.mxu0 %v4664_v5  ;;  %v6202_v5 = vld [vmem:[%s6456_s2 + $0x128] sm:$0xff] }
 0xfb6   :  { %3437 = vmatpush.msra.mxu1 %v6174_v2  ;;  %3457 = vmatpush.msra.mxu2 %v6179_v26  ;;  %v6208_v0 = vld [vmem:[%s6456_s2 + $0x148] sm:$0xff] }
 0xfb7   :  { %3587 = vmatpush.msra.mxu3 %v6208_v0 }
 0xfb8   :  { %3438 = vmatpush.msra.mxu1 %v6188_v61  ;;  %3458 = vmatpush.msra.mxu2 %v6193_v63 }
 0xfb9   :  { %3352 = vmatpush.bf16.msra.mxu0 %v4663_v59 }
 0xfba   :  { %3439 = vmatpush.msra.mxu1 %v6202_v5  ;;  %3459 = vmatpush.msra.mxu2 %v6208_v0 }
 0xfbc   :  { %4562 = vmatmul.msk.bf16.vlgmr.msrb.gmra.mxu0 %vm161_vm10, %v5750_v56  ;;  %4571 = vmatmul.msk.bf16.vlgmr.msrb.gmra.mxu1 %vm161_vm10, %v5785_v19  ;;  %v4683_v19 = vld [vmem:[%s6456_s2 + $0x18c] ss:$0 sm:$0xff] }
 0xfbd   :  { %4580 = vmatmul.msk.bf16.vlgmr.msrb.gmra.mxu2 %vm161_vm10, %v5750_v56 }
 0xfcc   :  { %4598 = vmatmul.msk.bf16.vlgmr.msra.gmra.mxu0 %vm161_vm10, %v5750_v56 }
0x1031   :  { %v3062_v17 = vpop.f32.mrf.mxu0  ;;  %v3082_v16 = vpop.f32.mrf.mxu1 }
0x1032   :  { %v3106_v43 = vrot.slane %v3062_v17, 2  ;;  %v3129_v29 = vrot.slane %v3082_v16, 2  ;;  %v6213_v17 = vld [vmem:[%s6456_s2 + $0x120] sm:$0xff] }
0x1033   :  { %v6218_v16 = vld [vmem:[%s6456_s2 + $0x140] sm:$0xff]  ;;  %3440 = vmatpush.msra.mxu1 %v6213_v17 }
0x1034   :  { %v3108_v35 = vadd.f32 %v3106_v43, %v5857_v50  ;;  %v3131_v24 = vadd.f32 %v3129_v29, %v6036_v7  ;;  %v3202_v50 = vpop.f32.mrf.mxu3  ;;  %3460 = vmatpush.msra.mxu2 %v6218_v16  ;;  %3588 = vmatpush.msra.mxu3 %v6218_v16 }
0x1036   :  { %v4543_v14 = vmul.f32 -1.442695, %v3108_v35  ;;  %v4544_v48 = vmul.f32 -1.442695, %v3131_v24  ;;  %v6231_v24 = vld [vmem:[%s6456_s2 + $0x178] sm:$0xff]  ;;  %3565 = vmatpush.msrb.mxu2 %v6174_v2 }
0x1037   :  { %3477 = vmatpush.msrb.mxu1 %v6231_v24  ;;  %3605 = vmatpush.msrb.mxu0 %v6231_v24 }
0x1038   :  { %4917 = vpow2.f32 %v4543_v14  ;;  %v3102_v47 = vpop.f32.mrf.mxu2  ;;  %3566 = vmatpush.msrb.mxu2 %v6188_v61  ;;  %3733 = vmatpush.msrb.mxu3 %v6231_v24 }
0x1039   :  { %4919 = vpow2.f32 %v4544_v48  ;;  %v3226_v15 = vpop.f32.mrf.mxu0  ;;  %v3264_v21 = vpop.f32.mrf.mxu1  ;;  %v3103_v31 = vadd.f32 %v5010_v28, %v3102_v47  ;;  %v6246_v47 = vld [vmem:[%s6456_s2 + $0x168] sm:$0xff] }
0x103a   :  { %v3227_v56 = vadd.f32 %v3226_v15, %v3200_v44  ;;  %v6236_v44 = vld [vmem:[%s6456_s2 + $0x170] sm:$0xff]  ;;  %v6256_v15 = vld [vmem:[%s6456_s2 + $0x160] sm:$0xff]  ;;  %3567 = vmatpush.msrb.mxu2 %v6202_v5 }
0x103b   :  { %v3152_v49 = vrot.slane %v3103_v31, 2  ;;  %3478 = vmatpush.msrb.mxu1 %v6236_v44  ;;  %3606 = vmatpush.msrb.mxu0 %v6236_v44 }
0x103c   :  { %v6142_v55 = vadd.f32 %v4683_v19, %v3227_v56  ;;  %v3328_v3 = vpop.f32.mrf.mxu3  ;;  %3734 = vmatpush.msrb.mxu3 %v6236_v44  ;;  %3568 = vmatpush.msrb.mxu2 %v6213_v17 }
0x103d   :  { %3479 = vmatpush.msrb.mxu1 %v6246_v47  ;;  %3607 = vmatpush.msrb.mxu0 %v6246_v47 }
0x103e   :  { %v4918_v1 = vpop.eup %4917  ;;  %3735 = vmatpush.msrb.mxu3 %v6246_v47 }
0x103f   :  { %v4920_v22 = vpop.eup %4919  ;;  %v3112_v23 = vadd.f32 1.0, %v4918_v1  ;;  %3480 = vmatpush.msrb.mxu1 %v6256_v15  ;;  %3608 = vmatpush.msrb.mxu0 %v6256_v15 }
0x1040   :  { %v3290_v7 = vpop.f32.mrf.mxu2  ;;  %v6147_v8 = vadd.f32 1.0, %v4920_v22  ;;  %3736 = vmatpush.msrb.mxu3 %v6256_v15 }
0x1041   :  { %4921 = vrcp.f32 %v3112_v23  ;;  %v3228_v25 = vpop.f32.mrf.mxu0  ;;  %v3291_v40 = vadd.f32 %v3290_v7, %v3264_v21  ;;  %v3266_v37 = vpop.f32.mrf.mxu1  ;;  %v3124_v32 = vand.u32 2147483648, %v3112_v23  ;;  %v3122_v33 = vand.u32 2147483647, %v3112_v23  ;;  %3811 = vmatpush.msra.mxu0 %v6174_v2 }
0x1042   :  { %v3229_v62 = vadd.f32 %v3228_v25, %v3202_v50  ;;  %4923 = vrcp.f32 %v6147_v8  ;;  %vm3118_vm4 = vweird.f32 %v3112_v23  ;;  %vm3141_vm0 = vweird.f32 %v6147_v8 }
0x1043   :  { %v6149_v27 = vadd.f32 %v4684_v30, %v3291_v40  ;;  %v3125_v58 = vor.u32 1.1754944e-38, %v3124_v32  ;;  %vm3123_vm1 = vcmp.eq.f32.partialorder %v3122_v33, 8.507059e+37  ;;  %3812 = vmatpush.msra.mxu0 %v6188_v61 }
0x1044   :  { %v6152_v18 = vadd.f32 %v4683_v19, %v3229_v62  ;;  %v3330_v25 = vpop.f32.mrf.mxu3 }
0x1045   :  { %3813 = vmatpush.msra.mxu0 %v6202_v5 }
0x1046   :  { %v4599_v9 = vmul.f32 -1.442695, %v6152_v18 }
0x1047   :  { %v4922_v36 = vpop.eup %4921  ;;  %3814 = vmatpush.msra.mxu0 %v6213_v17 }
0x1048   :  { %v3114_v6 = vmul.f32 %v4922_v36, %v3112_v23  ;;  %v3292_v39 = vpop.f32.mrf.mxu2  ;;  %4925 = vpow2.f32 %v4599_v9  ;;  %v6160_v41 = vpop.eup %4923  ;;  %vm3119_vm13 = vweird.f32 %v4922_v36  ;;  %v3147_v23 = vand.u32 2147483648, %v6147_v8 }
0x1049   :  { %v3293_v10 = vadd.f32 %v3292_v39, %v3266_v37  ;;  %v3354_v4 = vpop.f32.mrf.mxu0  ;;  %v3137_v46 = vmul.f32 %v6160_v41, %v6147_v8  ;;  %vm3120_vm14 = vmor %vm3118_vm4, %vm3119_vm13  ;;  %vm3142_vm2 = vweird.f32 %v6160_v41 }
0x104a   :  { %v3115_v11 = vsub.f32 1.0, %v3114_v6  ;;  %v3355_v20 = vadd.f32 %v3354_v4, %v3328_v3  ;;  %vm6279_vm3 = vmor %vm3141_vm0, %vm3142_vm2 }
0x104b   :  { %v6165_v60 = vadd.f32 %v4684_v30, %v3293_v10  ;;  %v3138_v43 = vsub.f32 1.0, %v3137_v46  ;;  %v3145_v30 = vand.u32 2147483647, %v6147_v8  ;;  %v6292_v10 = vld [vmem:[%s6456_s2 + $0x18f] ss:$0 sm:$0xff]  ;;  %s5063_s2 = smov [#allocation6]  }
0x104c   :  { %v3116_v34 = vmul.f32 %v4922_v36, %v3115_v11  ;;  %v6168_v51 = vadd.f32 %v6158_v52, %v3355_v20  ;;  %v3148_v20 = vor.u32 1.1754944e-38, %v3147_v23  ;;  %s4327_s23 = sshll.u32 %s5063_s2, 4  ;;  %s4328_s23 = int_to_ptr.vmem [resolvable:$true] %s4327_s23 }
0x104d   :  { %v4600_v12 = vmul.f32 -1.442695, %v6165_v60  ;;  %vm3146_vm7 = vcmp.eq.f32.partialorder %v3145_v30, 8.507059e+37 }
0x104e   :  { %v3117_v53 = vadd.f32 %v4922_v36, %v3116_v34  ;;  %v4926_v54 = vpop.eup %4925 }
0x104f   :  { %4927 = vpow2.f32 %v4600_v12  ;;  %v6196_v38 = vadd.f32 1.0, %v4926_v54 }
0x1050   :  { %v3121_v45 = vsel %vm3120_vm14, %v4922_v36, %v3117_v53 }
0x1051   :  { %v3126_v59 = vsel %vm3123_vm1, %v3125_v58, %v3121_v45  ;;  %4929 = vrcp.f32 %v6196_v38  ;;  %v3356_v21 = vpop.f32.mrf.mxu0  ;;  %v3392_v7 = vand.u32 2147483648, %v6196_v38  ;;  %v3390_v36 = vand.u32 2147483647, %v6196_v38 }
0x1052   :  { %v3154_v29 = vmul.f32 %v3152_v49, %v3126_v59  ;;  %v3357_v37 = vadd.f32 %v3356_v21, %v3330_v25  ;;  %vm3386_vm5 = vweird.f32 %v6196_v38 }
0x1053   :  { %v3393_v11 = vor.u32 1.1754944e-38, %v3392_v7  ;;  %vm3391_vm8 = vcmp.eq.f32.partialorder %v3390_v36, 8.507059e+37 }
0x1054   :  { %v3155_v35 = vadd.f32 %v3154_v29, %v6044_v42  ;;  %v3139_v42 = vmul.f32 %v6160_v41, %v3138_v43  ;;  %v6298_v34 = vadd.f32 %v6158_v52, %v3357_v37 }
0x1055   :  { %v4928_v14 = vpop.eup %4927 }
0x1056   :  { %4931 = vtanh.f32 %v3155_v35  ;;  %v6241_v48 = vadd.f32 1.0, %v4928_v14  ;;  %v3140_v1 = vadd.f32 %v6160_v41, %v3139_v42 }
0x1057   :  { %v4930_v19 = vpop.eup %4929 }
0x1058   :  { %4933 = vrcp.f32 %v6241_v48  ;;  %v3382_v56 = vmul.f32 %v4930_v19, %v6196_v38  ;;  %vm3387_vm15 = vweird.f32 %v4930_v19  ;;  %v3144_v8 = vsel %vm6279_vm3, %v6160_v41, %v3140_v1 }
0x1059   :  { %vm3388_vm6 = vmor %vm3386_vm5, %vm3387_vm15  ;;  %v3149_v32 = vsel %vm3146_vm7, %v3148_v20, %v3144_v8  ;;  %v3411_v45 = vand.u32 2147483648, %v6241_v48  ;;  %vm3405_vm13 = vweird.f32 %v6241_v48  ;;  %v3409_v52 = vand.u32 2147483647, %v6241_v48 }
0x105a   :  { %v3383_v22 = vsub.f32 1.0, %v3382_v56 }
0x105b   :  { %v3412_v43 = vor.u32 1.1754944e-38, %v3411_v45  ;;  %vm3410_vm14 = vcmp.eq.f32.partialorder %v3409_v52, 8.507059e+37 }
0x105c   :  { %v4932_v50 = vpop.eup %4931  ;;  %v3384_v62 = vmul.f32 %v4930_v19, %v3383_v22 }
0x105d   :  { %v3158_v40 = vrot.slane %v4932_v50, 2 }
0x105e   :  { %v4934_v6 = vpop.eup %4933  ;;  %v3385_v4 = vadd.f32 %v4930_v19, %v3384_v62 }
0x105f   :  { %v3160_v39 = vsub.f32 %v6114_v13, %v3158_v40  ;;  %v3401_v3 = vmul.f32 %v4934_v6, %v6241_v48  ;;  %vm3406_vm11 = vweird.f32 %v4934_v6 }
0x1060   :  { %v3389_v41 = vsel %vm3388_vm6, %v4930_v19, %v3385_v4  ;;  %vm3407_vm4 = vmor %vm3405_vm13, %vm3406_vm11 }
0x1061   :  { %v3402_v28 = vsub.f32 1.0, %v3401_v3  ;;  %v3162_v13 = vrot.slane %v3160_v39, 6  ;;  %v3394_v31 = vsel %vm3391_vm8, %v3393_v11, %v3389_v41 }
0x1062   :  { %v3415_v12 = vmul.f32 %v6292_v10, %v3394_v31 }
0x1063   :  { %v3403_v33 = vmul.f32 %v4934_v6, %v3402_v28  ;;  %v3164_v46 = vmul.f32 %v3162_v13, %v3149_v32 }
0x1064   :  { %v3416_v53 = vadd.f32 %v3415_v12, %v6298_v34 }
0x1065   :  { %v3165_v54 = vadd.f32 %v4932_v50, %v3164_v46  ;;  %v3404_v58 = vadd.f32 %v4934_v6, %v3403_v33 }
0x1066   :  { %4935 = vtanh.f32 %v3416_v53 }
0x1067   :  { %v3167_v49 = vrot.slane %v3165_v54, 6  ;;  %4302 = vst.msk [vmem:[#allocation6 - $0x2] sm:$0xc0] %vm540_vm12, %v3165_v54  ;;  %v3408_v59 = vsel %vm3407_vm4, %v4934_v6, %v3404_v58 }
0x1068   :  { %v3413_v14 = vsel %vm3410_vm14, %v3412_v43, %v3408_v59 }
0x1069   :  { %v3169_v38 = vadd.f32 %v3167_v49, %v6123_v57 }
0x106b   :  { %v3170_v29 = vmul.f32 0.125, %v3169_v38 }
0x106c   :  { %v4936_v35 = vpop.eup %4935 }
0x106d   :  { %4305 = vst.msk [vmem:[#allocation4] sm:$0x3] %vm159_vm9, %v3170_v29  ;;  %v3418_v42 = vmul.f32 %v4936_v35, %v3413_v14 }
0x106f   :  { %v6309_v19 = vsub.f32 %v4936_v35, %v3418_v42 }
0x1071   :  { %v3422_v56 = vrot.slane %v6309_v19, 6 }
0x1073   :  { %4601 = vmatmul.msk.f32.vlgmr.msra.gmra.mxu1 %vm161_vm10, %v3422_v56  ;;  %4602 = vmatmul.msk.f32.vlgmr.msra.gmra.mxu2 %vm161_vm10, %v3422_v56 }
0x1074   :  { %3693 = vmatpush.msra.mxu1 %v6174_v2  ;;  %3713 = vmatpush.msra.mxu2 %v6179_v26 }
0x1076   :  { %3694 = vmatpush.msra.mxu1 %v6188_v61  ;;  %3714 = vmatpush.msra.mxu2 %v6193_v63 }
0x1078   :  { %3695 = vmatpush.msra.mxu1 %v6202_v5  ;;  %3715 = vmatpush.msra.mxu2 %v6208_v0 }
0x107a   :  { %3696 = vmatpush.msra.mxu1 %v6213_v17  ;;  %3716 = vmatpush.msra.mxu2 %v6218_v16 }
0x107b   :  { %4603 = vmatmul.msk.f32.vlgmr.msrb.gmra.mxu1 %vm161_vm10, %v3422_v56 }
0x107c   :  { %3831 = vmatpush.msrb.mxu1 %v6179_v26 }
0x107e   :  { %3832 = vmatpush.msrb.mxu1 %v6193_v63 }
0x1080   :  { %3833 = vmatpush.msrb.mxu1 %v6208_v0 }
0x1082   :  { %3834 = vmatpush.msrb.mxu1 %v6218_v16 }
0x10f0   :  { %v3442_v57 = vpop.f32.mrf.mxu1 }
0x10f1   :  { %v3486_v48 = vrot.slane %v3442_v57, 4 }
0x10f3   :  { %v3488_v1 = vadd.f32 %v3486_v48, %v6152_v18 }
0x10f5   :  { %v4604_v21 = vmul.f32 -1.442695, %v3488_v1 }
0x10f6   :  { %v3462_v22 = vpop.f32.mrf.mxu2 }
0x10f7   :  { %4937 = vpow2.f32 %v4604_v21  ;;  %v3509_v50 = vrot.slane %v3462_v22, 4 }
0x10f8   :  { %v3482_v6 = vpop.f32.mrf.mxu1 }
0x10f9   :  { %v3511_v23 = vadd.f32 %v3509_v50, %v6165_v60  ;;  %v3483_v39 = vadd.f32 %v6292_v10, %v3482_v6 }
0x10fb   :  { %v4605_v7 = vmul.f32 -1.442695, %v3511_v23  ;;  %v3532_v31 = vrot.slane %v3483_v39, 4 }
0x10fd   :  { %v4938_v30 = vpop.eup %4937  ;;  %4939 = vpow2.f32 %v4605_v7 }
0x10fe   :  { %v3492_v25 = vadd.f32 1.0, %v4938_v30 }
0x1100   :  { %4941 = vrcp.f32 %v3492_v25  ;;  %v3504_v8 = vand.u32 2147483648, %v3492_v25  ;;  %v3502_v4 = vand.u32 2147483647, %v3492_v25  ;;  %vm3498_vm1 = vweird.f32 %v3492_v25 }
0x1102   :  { %v3505_v41 = vor.u32 1.1754944e-38, %v3504_v8  ;;  %vm3503_vm0 = vcmp.eq.f32.partialorder %v3502_v4, 8.507059e+37 }
0x1103   :  { %v4940_v40 = vpop.eup %4939 }
0x1104   :  { %v3515_v62 = vadd.f32 1.0, %v4940_v40 }
0x1106   :  { %v4942_v36 = vpop.eup %4941  ;;  %4943 = vrcp.f32 %v3515_v62  ;;  %v3527_v45 = vand.u32 2147483648, %v3515_v62  ;;  %vm3521_vm3 = vweird.f32 %v3515_v62  ;;  %v3525_v49 = vand.u32 2147483647, %v3515_v62 }
0x1107   :  { %v3494_v9 = vmul.f32 %v4942_v36, %v3492_v25  ;;  %vm3499_vm12 = vweird.f32 %v4942_v36 }
0x1108   :  { %vm3500_vm2 = vmor %vm3498_vm1, %vm3499_vm12  ;;  %v3528_v43 = vor.u32 1.1754944e-38, %v3527_v45  ;;  %vm3526_vm6 = vcmp.eq.f32.partialorder %v3525_v49, 8.507059e+37 }
0x1109   :  { %v3495_v37 = vsub.f32 1.0, %v3494_v9 }
0x110b   :  { %v3496_v3 = vmul.f32 %v4942_v36, %v3495_v37 }
0x110c   :  { %v4944_v11 = vpop.eup %4943 }
0x110d   :  { %v3497_v20 = vadd.f32 %v4942_v36, %v3496_v3  ;;  %v3517_v28 = vmul.f32 %v4944_v11, %v3515_v62  ;;  %vm3522_vm15 = vweird.f32 %v4944_v11 }
0x110e   :  { %vm3523_vm5 = vmor %vm3521_vm3, %vm3522_vm15 }
0x110f   :  { %v3501_v13 = vsel %vm3500_vm2, %v4942_v36, %v3497_v20  ;;  %v3518_v12 = vsub.f32 1.0, %v3517_v28 }
0x1110   :  { %v3506_v32 = vsel %vm3503_vm0, %v3505_v41, %v3501_v13 }
0x1111   :  { %v3534_v33 = vmul.f32 %v3532_v31, %v3506_v32  ;;  %v3519_v53 = vmul.f32 %v4944_v11, %v3518_v12 }
0x1113   :  { %v3535_v46 = vadd.f32 %v3534_v33, %v6298_v34  ;;  %v3520_v54 = vadd.f32 %v4944_v11, %v3519_v53 }
0x1115   :  { %4945 = vtanh.f32 %v3535_v46  ;;  %v3524_v38 = vsel %vm3523_vm5, %v4944_v11, %v3520_v54 }
0x1116   :  { %v3529_v35 = vsel %vm3526_vm6, %v3528_v43, %v3524_v38 }
0x111b   :  { %v4946_v58 = vpop.eup %4945 }
0x111c   :  { %v3538_v52 = vrot.slane %v4946_v58, 6 }
0x111e   :  { %v3540_v59 = vsub.f32 %v6309_v19, %v3538_v52 }
0x1120   :  { %v3542_v29 = vrot.slane %v3540_v59, 2 }
0x1122   :  { %v3544_v14 = vmul.f32 %v3542_v29, %v3529_v35 }
0x1124   :  { %v6332_v42 = vadd.f32 %v4946_v58, %v3544_v14 }
0x1126   :  { %v3550_v56 = vrot.slane %v6332_v42, 4 }
0x1128   :  { %4606 = vmatmul.msk.f32.vlgmr.msrb.gmra.mxu2 %vm161_vm10, %v3550_v56  ;;  %4607 = vmatmul.msk.f32.vlgmr.msra.gmra.mxu3 %vm161_vm10, %v3550_v56 }
0x1129   :  { %4608 = vmatmul.msk.f32.vlgmr.msrb.gmra.mxu0 %vm161_vm10, %v3550_v56  ;;  %3851 = vmatpush.msrb.mxu2 %v6231_v24 }
0x112a   :  { %3937 = vmatpush.msra.mxu3 %v6174_v2  ;;  %3957 = vmatpush.msrb.mxu0 %v6179_v26 }
0x112b   :  { %3852 = vmatpush.msrb.mxu2 %v6236_v44 }
0x112c   :  { %3938 = vmatpush.msra.mxu3 %v6188_v61  ;;  %3958 = vmatpush.msrb.mxu0 %v6193_v63 }
0x112d   :  { %3853 = vmatpush.msrb.mxu2 %v6246_v47 }
0x112e   :  { %3939 = vmatpush.msra.mxu3 %v6202_v5  ;;  %3959 = vmatpush.msrb.mxu0 %v6208_v0 }
0x112f   :  { %3854 = vmatpush.msrb.mxu2 %v6256_v15 }
0x1130   :  { %3940 = vmatpush.msra.mxu3 %v6213_v17  ;;  %3960 = vmatpush.msrb.mxu0 %v6218_v16 }
0x11a6   :  { %v3610_v6 = vpop.f32.mrf.mxu0 }
0x11a7   :  { %v3611_v3 = vadd.f32 %v6292_v10, %v3610_v6 }
0x11a9   :  { %v3660_v13 = vrot.slane %v3611_v3, 6 }
0x11ab   :  { %v3570_v57 = vpop.f32.mrf.mxu2  ;;  %v3590_v48 = vpop.f32.mrf.mxu3 }
0x11ac   :  { %v3614_v1 = vrot.slane %v3570_v57, 6  ;;  %v3637_v21 = vrot.slane %v3590_v48, 6 }
0x11ae   :  { %v3616_v22 = vadd.f32 %v3614_v1, %v6152_v18  ;;  %v3639_v50 = vadd.f32 %v3637_v21, %v6165_v60 }
0x11b0   :  { %v4609_v23 = vmul.f32 -1.442695, %v3616_v22  ;;  %v4610_v7 = vmul.f32 -1.442695, %v3639_v50 }
0x11b2   :  { %4947 = vpow2.f32 %v4609_v23 }
0x11b3   :  { %4949 = vpow2.f32 %v4610_v7 }
0x11b8   :  { %v4948_v30 = vpop.eup %4947 }
0x11b9   :  { %v4950_v25 = vpop.eup %4949  ;;  %v3620_v40 = vadd.f32 1.0, %v4948_v30 }
0x11ba   :  { %v3643_v62 = vadd.f32 1.0, %v4950_v25 }
0x11bb   :  { %4951 = vrcp.f32 %v3620_v40  ;;  %v3632_v8 = vand.u32 2147483648, %v3620_v40  ;;  %v3630_v11 = vand.u32 2147483647, %v3620_v40  ;;  %vm3626_vm8 = vweird.f32 %v3620_v40 }
0x11bc   :  { %4953 = vrcp.f32 %v3643_v62  ;;  %v3655_v45 = vand.u32 2147483648, %v3643_v62  ;;  %vm3649_vm14 = vweird.f32 %v3643_v62  ;;  %v3653_v49 = vand.u32 2147483647, %v3643_v62 }
0x11bd   :  { %v3633_v28 = vor.u32 1.1754944e-38, %v3632_v8  ;;  %vm3631_vm13 = vcmp.eq.f32.partialorder %v3630_v11, 8.507059e+37 }
0x11be   :  { %v3656_v43 = vor.u32 1.1754944e-38, %v3655_v45  ;;  %vm3654_vm1 = vcmp.eq.f32.partialorder %v3653_v49, 8.507059e+37 }
0x11c1   :  { %v4952_v36 = vpop.eup %4951 }
0x11c2   :  { %v3622_v9 = vmul.f32 %v4952_v36, %v3620_v40  ;;  %v4954_v39 = vpop.eup %4953  ;;  %vm3627_vm7 = vweird.f32 %v4952_v36 }
0x11c3   :  { %vm3628_vm11 = vmor %vm3626_vm8, %vm3627_vm7  ;;  %v3645_v41 = vmul.f32 %v4954_v39, %v3643_v62  ;;  %vm3650_vm4 = vweird.f32 %v4954_v39 }
0x11c4   :  { %v3623_v37 = vsub.f32 1.0, %v3622_v9  ;;  %vm3651_vm12 = vmor %vm3649_vm14, %vm3650_vm4 }
0x11c5   :  { %v3646_v12 = vsub.f32 1.0, %v3645_v41 }
0x11c6   :  { %v3624_v4 = vmul.f32 %v4952_v36, %v3623_v37 }
0x11c7   :  { %v3647_v53 = vmul.f32 %v4954_v39, %v3646_v12 }
0x11c8   :  { %v3625_v20 = vadd.f32 %v4952_v36, %v3624_v4 }
0x11c9   :  { %v3648_v54 = vadd.f32 %v4954_v39, %v3647_v53 }
0x11ca   :  { %v3629_v31 = vsel %vm3628_vm11, %v4952_v36, %v3625_v20 }
0x11cb   :  { %v3634_v32 = vsel %vm3631_vm13, %v3633_v28, %v3629_v31  ;;  %v3652_v38 = vsel %vm3651_vm12, %v4954_v39, %v3648_v54 }
0x11cc   :  { %v3662_v33 = vmul.f32 %v3660_v13, %v3634_v32  ;;  %v3657_v35 = vsel %vm3654_vm1, %v3656_v43, %v3652_v38 }
0x11ce   :  { %v3663_v46 = vadd.f32 %v3662_v33, %v6298_v34 }
0x11d0   :  { %4955 = vtanh.f32 %v3663_v46 }
0x11d6   :  { %v4956_v58 = vpop.eup %4955 }
0x11d7   :  { %v3666_v52 = vrot.slane %v4956_v58, 6 }
0x11d9   :  { %v3668_v59 = vsub.f32 %v6332_v42, %v3666_v52 }
0x11db   :  { %v3670_v29 = vrot.slane %v3668_v59, 2 }
0x11dd   :  { %v3672_v14 = vmul.f32 %v3670_v29, %v3657_v35 }
0x11df   :  { %v6355_v56 = vadd.f32 %v4956_v58, %v3672_v14 }
0x11e1   :  { %v3678_v57 = vrot.slane %v6355_v56, 2 }
0x11e3   :  { %4611 = vmatmul.msk.f32.vlgmr.msra.gmra.mxu1 %vm161_vm10, %v3678_v57  ;;  %4612 = vmatmul.msk.f32.vlgmr.msra.gmra.mxu2 %vm161_vm10, %v3678_v57 }
0x11e4   :  { %4613 = vmatmul.msk.f32.vlgmr.msrb.gmra.mxu3 %vm161_vm10, %v3678_v57  ;;  %3977 = vmatpush.msra.mxu1 %v6231_v24 }
0x11e5   :  { %4065 = vmatpush.msra.mxu2 %v6174_v2  ;;  %4085 = vmatpush.msrb.mxu3 %v6179_v26 }
0x11e6   :  { %3978 = vmatpush.msra.mxu1 %v6236_v44 }
0x11e7   :  { %4066 = vmatpush.msra.mxu2 %v6188_v61  ;;  %4086 = vmatpush.msrb.mxu3 %v6193_v63 }
0x11e8   :  { %3979 = vmatpush.msra.mxu1 %v6246_v47 }
0x11e9   :  { %4067 = vmatpush.msra.mxu2 %v6202_v5  ;;  %4087 = vmatpush.msrb.mxu3 %v6208_v0 }
0x11ea   :  { %3980 = vmatpush.msra.mxu1 %v6256_v15 }
0x11eb   :  { %4068 = vmatpush.msra.mxu2 %v6213_v17  ;;  %4088 = vmatpush.msrb.mxu3 %v6218_v16 }
0x1260   :  { %v3698_v48 = vpop.f32.mrf.mxu1 }
0x1261   :  { %v3741_v1 = vadd.f32 %v3698_v48, %v6152_v18 }
0x1263   :  { %v4614_v21 = vmul.f32 -1.442695, %v3741_v1 }
0x1265   :  { %4957 = vpow2.f32 %v4614_v21 }
0x1266   :  { %v3718_v22 = vpop.f32.mrf.mxu2 }
0x1267   :  { %v3761_v50 = vadd.f32 %v3718_v22, %v6165_v60  ;;  %v3738_v39 = vpop.f32.mrf.mxu3 }
0x1268   :  { %v3739_v11 = vadd.f32 %v6292_v10, %v3738_v39 }
0x1269   :  { %v4615_v23 = vmul.f32 -1.442695, %v3761_v50 }
0x126b   :  { %v4958_v7 = vpop.eup %4957  ;;  %4959 = vpow2.f32 %v4615_v23 }
0x126c   :  { %v3745_v30 = vadd.f32 1.0, %v4958_v7 }
0x126e   :  { %4961 = vrcp.f32 %v3745_v30  ;;  %v3757_v6 = vand.u32 2147483648, %v3745_v30  ;;  %v3755_v18 = vand.u32 2147483647, %v3745_v30  ;;  %vm3751_vm0 = vweird.f32 %v3745_v30 }
0x1270   :  { %v3758_v4 = vor.u32 1.1754944e-38, %v3757_v6  ;;  %vm3756_vm3 = vcmp.eq.f32.partialorder %v3755_v18, 8.507059e+37 }
0x1271   :  { %v4960_v25 = vpop.eup %4959 }
0x1272   :  { %v3765_v40 = vadd.f32 1.0, %v4960_v25 }
0x1274   :  { %v4962_v62 = vpop.eup %4961  ;;  %4963 = vrcp.f32 %v3765_v40  ;;  %v3777_v46 = vand.u32 2147483648, %v3765_v40  ;;  %vm3771_vm6 = vweird.f32 %v3765_v40  ;;  %v3775_v53 = vand.u32 2147483647, %v3765_v40 }
0x1275   :  { %v3747_v36 = vmul.f32 %v4962_v62, %v3745_v30  ;;  %vm3752_vm2 = vweird.f32 %v4962_v62 }
0x1276   :  { %vm3753_vm15 = vmor %vm3751_vm0, %vm3752_vm2  ;;  %v3778_v49 = vor.u32 1.1754944e-38, %v3777_v46  ;;  %vm3776_vm8 = vcmp.eq.f32.partialorder %v3775_v53, 8.507059e+37 }
0x1277   :  { %v3748_v9 = vsub.f32 1.0, %v3747_v36 }
0x1279   :  { %v3749_v37 = vmul.f32 %v4962_v62, %v3748_v9 }
0x127a   :  { %v4964_v8 = vpop.eup %4963 }
0x127b   :  { %v3750_v3 = vadd.f32 %v4962_v62, %v3749_v37  ;;  %v3767_v60 = vmul.f32 %v4964_v8, %v3765_v40  ;;  %vm3772_vm5 = vweird.f32 %v4964_v8 }
0x127c   :  { %vm3773_vm7 = vmor %vm3771_vm6, %vm3772_vm5 }
0x127d   :  { %v3754_v20 = vsel %vm3753_vm15, %v4962_v62, %v3750_v3  ;;  %v3768_v13 = vsub.f32 1.0, %v3767_v60 }
0x127e   :  { %v3759_v28 = vsel %vm3756_vm3, %v3758_v4, %v3754_v20 }
0x127f   :  { %v3781_v41 = vmul.f32 %v3759_v28, %v3739_v11  ;;  %v3769_v32 = vmul.f32 %v4964_v8, %v3768_v13 }
0x1281   :  { %v3782_v31 = vadd.f32 %v3781_v41, %v6298_v34  ;;  %v3770_v33 = vadd.f32 %v4964_v8, %v3769_v32 }
0x1283   :  { %4965 = vtanh.f32 %v3782_v31  ;;  %v3774_v58 = vsel %vm3773_vm7, %v4964_v8, %v3770_v33 }
0x1284   :  { %v3779_v38 = vsel %vm3776_vm8, %v3778_v49, %v3774_v58 }
0x1289   :  { %v4966_v12 = vpop.eup %4965 }
0x128a   :  { %v3785_v54 = vrot.slane %v4966_v12, 6 }
0x128c   :  { %v3787_v45 = vsub.f32 %v6355_v56, %v3785_v54 }
0x128e   :  { %v3789_v52 = vrot.slane %v3787_v45, 2 }
0x1290   :  { %v3791_v59 = vmul.f32 %v3789_v52, %v3779_v38 }
0x1292   :  { %v6378_v43 = vadd.f32 %v4966_v12, %v3791_v59 }
0x1294   :  { %4616 = vmatmul.msk.f32.vlgmr.msra.gmra.mxu0 %vm161_vm10, %v6378_v43  ;;  %4617 = vmatmul.msk.f32.vlgmr.msrb.gmra.mxu1 %vm161_vm10, %v6378_v43 }
0x1295   :  { %4618 = vmatmul.msk.f32.vlgmr.msrb.gmra.mxu2 %vm161_vm10, %v6378_v43  ;;  %4105 = vmatpush.msra.mxu0 %v6231_v24 }
0x1296   :  { %4193 = vmatpush.msrb.mxu1 %v6174_v2  ;;  %4213 = vmatpush.msrb.mxu2 %v6179_v26 }
0x1297   :  { %4106 = vmatpush.msra.mxu0 %v6236_v44 }
0x1298   :  { %4194 = vmatpush.msrb.mxu1 %v6188_v61  ;;  %4214 = vmatpush.msrb.mxu2 %v6193_v63 }
0x1299   :  { %4107 = vmatpush.msra.mxu0 %v6246_v47 }
0x129a   :  { %4195 = vmatpush.msrb.mxu1 %v6202_v5  ;;  %4215 = vmatpush.msrb.mxu2 %v6208_v0 }
0x129b   :  { %4108 = vmatpush.msra.mxu0 %v6256_v15 }
0x129c   :  { %4196 = vmatpush.msrb.mxu1 %v6213_v17  ;;  %4216 = vmatpush.msrb.mxu2 %v6218_v16 }
0x1311   :  { %v3816_v2 = vpop.f32.mrf.mxu0  ;;  %v3836_v26 = vpop.f32.mrf.mxu1 }
0x1312   :  { %v3860_v34 = vrot.slane %v3816_v2, 2  ;;  %v3883_v29 = vrot.slane %v3836_v26, 2 }
0x1314   :  { %v3862_v61 = vadd.f32 %v3860_v34, %v6142_v55  ;;  %v3885_v63 = vadd.f32 %v3883_v29, %v6149_v27 }
0x1316   :  { %v4619_v35 = vmul.f32 -1.442695, %v3862_v61  ;;  %v4620_v14 = vmul.f32 -1.442695, %v3885_v63 }
0x1318   :  { %4967 = vpow2.f32 %v4619_v35  ;;  %v3856_v1 = vpop.f32.mrf.mxu2 }
0x1319   :  { %4969 = vpow2.f32 %v4620_v14  ;;  %v3857_v23 = vadd.f32 %v6292_v10, %v3856_v1 }
0x131b   :  { %v3906_v9 = vrot.slane %v3857_v23, 2 }
0x131e   :  { %v4968_v5 = vpop.eup %4967 }
0x131f   :  { %v4970_v0 = vpop.eup %4969  ;;  %v3866_v57 = vadd.f32 1.0, %v4968_v5 }
0x1320   :  { %v3889_v48 = vadd.f32 1.0, %v4970_v0 }
0x1321   :  { %4971 = vrcp.f32 %v3866_v57  ;;  %v3878_v22 = vand.u32 2147483648, %v3866_v57  ;;  %v3876_v30 = vand.u32 2147483647, %v3866_v57  ;;  %vm3872_vm13 = vweird.f32 %v3866_v57 }
0x1322   :  { %4973 = vrcp.f32 %v3889_v48  ;;  %v3901_v4 = vand.u32 2147483648, %v3889_v48  ;;  %vm3895_vm1 = vweird.f32 %v3889_v48  ;;  %v3899_v11 = vand.u32 2147483647, %v3889_v48 }
0x1323   :  { %v3879_v62 = vor.u32 1.1754944e-38, %v3878_v22  ;;  %vm3877_vm14 = vcmp.eq.f32.partialorder %v3876_v30, 8.507059e+37 }
0x1324   :  { %v3902_v13 = vor.u32 1.1754944e-38, %v3901_v4  ;;  %vm3900_vm0 = vcmp.eq.f32.partialorder %v3899_v11, 8.507059e+37 }
0x1327   :  { %v4972_v17 = vpop.eup %4971 }
0x1328   :  { %v3868_v16 = vmul.f32 %v4972_v17, %v3866_v57  ;;  %v4974_v50 = vpop.eup %4973  ;;  %vm3873_vm11 = vweird.f32 %v4972_v17 }
0x1329   :  { %v3891_v40 = vmul.f32 %v4974_v50, %v3889_v48  ;;  %vm3874_vm4 = vmor %vm3872_vm13, %vm3873_vm11  ;;  %vm3896_vm12 = vweird.f32 %v4974_v50 }
0x132a   :  { %v3869_v21 = vsub.f32 1.0, %v3868_v16  ;;  %vm3897_vm2 = vmor %vm3895_vm1, %vm3896_vm12 }
0x132b   :  { %v3892_v18 = vsub.f32 1.0, %v3891_v40 }
0x132c   :  { %v3870_v7 = vmul.f32 %v4972_v17, %v3869_v21 }
0x132d   :  { %v3893_v39 = vmul.f32 %v4974_v50, %v3892_v18 }
0x132e   :  { %v3871_v25 = vadd.f32 %v4972_v17, %v3870_v7 }
0x132f   :  { %v3894_v3 = vadd.f32 %v4974_v50, %v3893_v39 }
0x1330   :  { %v3875_v36 = vsel %vm3874_vm4, %v4972_v17, %v3871_v25 }
0x1331   :  { %v3880_v6 = vsel %vm3877_vm14, %v3879_v62, %v3875_v36  ;;  %v3898_v28 = vsel %vm3897_vm2, %v4974_v50, %v3894_v3 }
0x1332   :  { %v3908_v37 = vmul.f32 %v3906_v9, %v3880_v6  ;;  %v3903_v32 = vsel %vm3900_vm0, %v3902_v13, %v3898_v28 }
0x1334   :  { %v3909_v8 = vadd.f32 %v3908_v37, %v6168_v51 }
0x1336   :  { %4975 = vtanh.f32 %v3909_v8 }
0x133c   :  { %v4976_v60 = vpop.eup %4975 }
0x133d   :  { %v3912_v20 = vrot.slane %v4976_v60, 6 }
0x133f   :  { %v3914_v41 = vsub.f32 %v6378_v43, %v3912_v20 }
0x1341   :  { %v3916_v31 = vrot.slane %v3914_v41, 2 }
0x1343   :  { %v3918_v33 = vmul.f32 %v3916_v31, %v3903_v32 }
0x1345   :  { %v6403_v12 = vadd.f32 %v4976_v60, %v3918_v33 }
0x1347   :  { %v3922_v46 = vrot.slane %v6403_v12, 6 }
0x1349   :  { %4621 = vmatmul.msk.f32.vlgmr.msra.gmra.mxu3 %vm161_vm10, %v3922_v46  ;;  %4622 = vmatmul.msk.f32.vlgmr.msrb.gmra.mxu0 %vm161_vm10, %v3922_v46 }
0x134a   :  { %4623 = vmatmul.msk.f32.vlgmr.msra.gmra.mxu1 %vm161_vm10, %v3922_v46  ;;  %4233 = vmatpush.msra.mxu3 %v6231_v24 }
0x134c   :  { %4234 = vmatpush.msra.mxu3 %v6236_v44 }
0x134e   :  { %4235 = vmatpush.msra.mxu3 %v6246_v47 }
0x1350   :  { %4236 = vmatpush.msra.mxu3 %v6256_v15 }
0x13c6   :  { %v3962_v53 = vpop.f32.mrf.mxu0 }
0x13c7   :  { %v4009_v54 = vrot.slane %v3962_v53, 4  ;;  %v3982_v34 = vpop.f32.mrf.mxu1 }
0x13c8   :  { %v3983_v35 = vadd.f32 %v6292_v10, %v3982_v34 }
0x13c9   :  { %v4011_v58 = vadd.f32 %v4009_v54, %v6149_v27 }
0x13ca   :  { %v4032_v17 = vrot.slane %v3983_v35, 4 }
0x13cb   :  { %v4625_v38 = vmul.f32 -1.442695, %v4011_v58 }
0x13cc   :  { %v3942_v45 = vpop.f32.mrf.mxu3 }
0x13cd   :  { %v3986_v49 = vrot.slane %v3942_v45, 4 }
0x13cf   :  { %v3988_v52 = vadd.f32 %v3986_v49, %v6142_v55 }
0x13d1   :  { %v4624_v59 = vmul.f32 -1.442695, %v3988_v52 }
0x13d3   :  { %4977 = vpow2.f32 %v4624_v59 }
0x13d4   :  { %4979 = vpow2.f32 %v4625_v38 }
0x13d9   :  { %v4978_v2 = vpop.eup %4977 }
0x13da   :  { %v4980_v24 = vpop.eup %4979  ;;  %v3992_v26 = vadd.f32 1.0, %v4978_v2 }
0x13db   :  { %v4015_v44 = vadd.f32 1.0, %v4980_v24 }
0x13dc   :  { %4981 = vrcp.f32 %v3992_v26  ;;  %v4004_v61 = vand.u32 2147483648, %v3992_v26  ;;  %v4002_v5 = vand.u32 2147483647, %v3992_v26  ;;  %vm3998_vm3 = vweird.f32 %v3992_v26 }
0x13dd   :  { %4983 = vrcp.f32 %v4015_v44  ;;  %v4027_v25 = vand.u32 2147483648, %v4015_v44  ;;  %vm4021_vm8 = vweird.f32 %v4015_v44  ;;  %v4025_v40 = vand.u32 2147483647, %v4015_v44 }
0x13de   :  { %v4005_v48 = vor.u32 1.1754944e-38, %v4004_v61  ;;  %vm4003_vm6 = vcmp.eq.f32.partialorder %v4002_v5, 8.507059e+37 }
0x13df   :  { %v4028_v6 = vor.u32 1.1754944e-38, %v4027_v25  ;;  %vm4026_vm13 = vcmp.eq.f32.partialorder %v4025_v40, 8.507059e+37 }
0x13e2   :  { %v4982_v47 = vpop.eup %4981 }
0x13e3   :  { %v3994_v15 = vmul.f32 %v4982_v47, %v3992_v26  ;;  %v4984_v63 = vpop.eup %4983  ;;  %vm3999_vm15 = vweird.f32 %v4982_v47 }
0x13e4   :  { %v4017_v57 = vmul.f32 %v4984_v63, %v4015_v44  ;;  %vm4000_vm5 = vmor %vm3998_vm3, %vm3999_vm15  ;;  %vm4022_vm7 = vweird.f32 %v4984_v63 }
0x13e5   :  { %v3995_v29 = vsub.f32 1.0, %v3994_v15  ;;  %vm4023_vm11 = vmor %vm4021_vm8, %vm4022_vm7 }
0x13e6   :  { %v4018_v22 = vsub.f32 1.0, %v4017_v57 }
0x13e7   :  { %v3996_v14 = vmul.f32 %v4982_v47, %v3995_v29 }
0x13e8   :  { %v4019_v23 = vmul.f32 %v4984_v63, %v4018_v22 }
0x13e9   :  { %v3997_v0 = vadd.f32 %v4982_v47, %v3996_v14 }
0x13ea   :  { %v4020_v7 = vadd.f32 %v4984_v63, %v4019_v23 }
0x13eb   :  { %v4001_v16 = vsel %vm4000_vm5, %v4982_v47, %v3997_v0 }
0x13ec   :  { %v4006_v1 = vsel %vm4003_vm6, %v4005_v48, %v4001_v16  ;;  %v4024_v36 = vsel %vm4023_vm11, %v4984_v63, %v4020_v7 }
0x13ed   :  { %v4034_v21 = vmul.f32 %v4032_v17, %v4006_v1  ;;  %v4029_v18 = vsel %vm4026_vm13, %v4028_v6, %v4024_v36 }
0x13ef   :  { %v4035_v50 = vadd.f32 %v4034_v21, %v6168_v51 }
0x13f1   :  { %4985 = vtanh.f32 %v4035_v50 }
0x13f7   :  { %v4986_v30 = vpop.eup %4985 }
0x13f8   :  { %v4038_v62 = vrot.slane %v4986_v30, 6 }
0x13fa   :  { %v4040_v9 = vsub.f32 %v6403_v12, %v4038_v62 }
0x13fc   :  { %v4042_v37 = vrot.slane %v4040_v9, 2 }
0x13fe   :  { %v4044_v8 = vmul.f32 %v4042_v37, %v4029_v18 }
0x1400   :  { %v6418_v39 = vadd.f32 %v4986_v30, %v4044_v8 }
0x1402   :  { %v4050_v3 = vrot.slane %v6418_v39, 4 }
0x1404   :  { %4626 = vmatmul.msk.f32.vlgmr.msra.gmra.mxu2 %vm161_vm10, %v4050_v3  ;;  %4627 = vmatmul.msk.f32.vlgmr.msrb.gmra.mxu3 %vm161_vm10, %v4050_v3 }
0x1405   :  { %4628 = vmatmul.msk.f32.vlgmr.msra.gmra.mxu0 %vm161_vm10, %v4050_v3 }
0x1482   :  { %v4110_v45 = vpop.f32.mrf.mxu0 }
0x1483   :  { %v4111_v59 = vadd.f32 %v6292_v10, %v4110_v45 }
0x1485   :  { %v4160_v15 = vrot.slane %v4111_v59, 6 }
0x1487   :  { %v4070_v60 = vpop.f32.mrf.mxu2  ;;  %v4090_v4 = vpop.f32.mrf.mxu3 }
0x1488   :  { %v4114_v11 = vrot.slane %v4070_v60, 6  ;;  %v4137_v20 = vrot.slane %v4090_v4, 6 }
0x148a   :  { %v4116_v28 = vadd.f32 %v4114_v11, %v6142_v55  ;;  %v4139_v41 = vadd.f32 %v4137_v20, %v6149_v27 }
0x148c   :  { %v4629_v13 = vmul.f32 -1.442695, %v4116_v28  ;;  %v4630_v31 = vmul.f32 -1.442695, %v4139_v41 }
0x148e   :  { %4987 = vpow2.f32 %v4629_v13 }
0x148f   :  { %4989 = vpow2.f32 %v4630_v31 }
0x1494   :  { %v4988_v32 = vpop.eup %4987 }
0x1495   :  { %v4990_v33 = vpop.eup %4989  ;;  %v4120_v46 = vadd.f32 1.0, %v4988_v32 }
0x1496   :  { %v4143_v53 = vadd.f32 1.0, %v4990_v33 }
0x1497   :  { %4991 = vrcp.f32 %v4120_v46  ;;  %v4132_v52 = vand.u32 2147483648, %v4120_v46  ;;  %v4130_v24 = vand.u32 2147483647, %v4120_v46  ;;  %vm4126_vm14 = vweird.f32 %v4120_v46 }
0x1498   :  { %4993 = vrcp.f32 %v4143_v53  ;;  %v4155_v57 = vand.u32 2147483648, %v4143_v53  ;;  %vm4149_vm0 = vweird.f32 %v4143_v53  ;;  %v4153_v48 = vand.u32 2147483647, %v4143_v53 }
0x1499   :  { %v4133_v44 = vor.u32 1.1754944e-38, %v4132_v52  ;;  %vm4131_vm1 = vcmp.eq.f32.partialorder %v4130_v24, 8.507059e+37  ;;  %v3547_v52 = vrot.slane %v6332_v42, 6 }
0x149a   :  { %v4156_v21 = vor.u32 1.1754944e-38, %v4155_v57  ;;  %vm4154_vm3 = vcmp.eq.f32.partialorder %v4153_v48, 8.507059e+37 }
0x149b   :  { %v3549_v24 = vadd.f32 %v3547_v52, %v6309_v19 }
0x149d   :  { %v4992_v54 = vpop.eup %4991 }
0x149e   :  { %v4122_v58 = vmul.f32 %v4992_v54, %v4120_v46  ;;  %v4994_v38 = vpop.eup %4993  ;;  %vm4127_vm4 = vweird.f32 %v4992_v54 }
0x149f   :  { %vm4128_vm12 = vmor %vm4126_vm14, %vm4127_vm4  ;;  %v4145_v47 = vmul.f32 %v4994_v38, %v4143_v53  ;;  %vm4150_vm2 = vweird.f32 %v4994_v38  ;;  %vm4310_vm14 = vcmask 523526  }
0x14a0   :  { %v4123_v49 = vsub.f32 1.0, %v4122_v58  ;;  %vm4151_vm15 = vmor %vm4149_vm0, %vm4150_vm2 }
0x14a1   :  { %v4146_v63 = vsub.f32 1.0, %v4145_v47 }
0x14a2   :  { %v4124_v2 = vmul.f32 %v4992_v54, %v4123_v49 }
0x14a3   :  { %v4147_v14 = vmul.f32 %v4994_v38, %v4146_v63 }
0x14a4   :  { %v4125_v26 = vadd.f32 %v4992_v54, %v4124_v2 }
0x14a5   :  { %v4148_v5 = vadd.f32 %v4994_v38, %v4147_v14 }
0x14a6   :  { %v4129_v34 = vsel %vm4128_vm12, %v4992_v54, %v4125_v26 }
0x14a7   :  { %v4134_v29 = vsel %vm4131_vm1, %v4133_v44, %v4129_v34  ;;  %v4152_v16 = vsel %vm4151_vm15, %v4994_v38, %v4148_v5  ;;  %v3675_v38 = vrot.slane %v6355_v56, 4  ;;  %v3794_v44 = vrot.slane %v6378_v43, 2 }
0x14a8   :  { %v4162_v61 = vmul.f32 %v4160_v15, %v4134_v29  ;;  %v4157_v50 = vsel %vm4154_vm3, %v4156_v21, %v4152_v16  ;;  %v4047_v56 = vrot.slane %v6418_v39, 6 }
0x14a9   :  { %v3677_v15 = vadd.f32 %v3675_v38, %v3549_v24 }
0x14aa   :  { %v4163_v35 = vadd.f32 %v4162_v61, %v6168_v51 }
0x14ab   :  { %v3796_v42 = vadd.f32 %v3794_v44, %v3677_v15 }
0x14ac   :  { %4995 = vtanh.f32 %v4163_v35 }
0x14ad   :  { %v3920_v19 = vadd.f32 %v6403_v12, %v3796_v42 }
0x14af   :  { %v4049_v14 = vadd.f32 %v4047_v56, %v3920_v19 }
0x14b2   :  { %v4996_v0 = vpop.eup %4995 }
0x14b3   :  { %v4166_v17 = vrot.slane %v4996_v0, 6 }
0x14b5   :  { %v4168_v1 = vsub.f32 %v6418_v39, %v4166_v17 }
0x14b7   :  { %v4170_v22 = vrot.slane %v4168_v1, 2 }
0x14b9   :  { %v4172_v23 = vmul.f32 %v4170_v22, %v4157_v50 }
0x14bb   :  { %v6429_v7 = vadd.f32 %v4996_v0, %v4172_v23 }
0x14bd   :  { %v4178_v30 = vrot.slane %v6429_v7, 2  ;;  %v4175_v43 = vrot.slane %v6429_v7, 4 }
0x14bf   :  { %4631 = vmatmul.msk.f32.vlgmr.msrb.gmra.mxu1 %vm161_vm10, %v4178_v30  ;;  %4632 = vmatmul.msk.f32.vlgmr.msrb.gmra.mxu2 %vm161_vm10, %v4178_v30  ;;  %v4177_v0 = vadd.f32 %v4175_v43, %v4049_v14 }
0x14c0   :  { %4633 = vmatmul.msk.f32.vlgmr.msra.gmra.mxu3 %vm161_vm10, %v4178_v30 }
0x153c   :  { %v4198_v25 = vpop.f32.mrf.mxu1 }
0x153d   :  { %v4241_v40 = vadd.f32 %v4198_v25, %v6142_v55 }
0x153f   :  { %v4634_v62 = vmul.f32 -1.442695, %v4241_v40 }
0x1541   :  { %4997 = vpow2.f32 %v4634_v62 }
0x1542   :  { %v4218_v36 = vpop.f32.mrf.mxu2 }
0x1543   :  { %v4261_v9 = vadd.f32 %v4218_v36, %v6149_v27  ;;  %v4238_v13 = vpop.f32.mrf.mxu3 }
0x1544   :  { %v4239_v33 = vadd.f32 %v6292_v10, %v4238_v13 }
0x1545   :  { %v4635_v6 = vmul.f32 -1.442695, %v4261_v9 }
0x1547   :  { %v4998_v37 = vpop.eup %4997  ;;  %4999 = vpow2.f32 %v4635_v6 }
0x1548   :  { %v4245_v18 = vadd.f32 1.0, %v4998_v37 }
0x154a   :  { %5001 = vrcp.f32 %v4245_v18  ;;  %v4257_v20 = vand.u32 2147483648, %v4245_v18  ;;  %v4255_v55 = vand.u32 2147483647, %v4245_v18  ;;  %vm4251_vm5 = vweird.f32 %v4245_v18 }
0x154c   :  { %v4258_v32 = vor.u32 1.1754944e-38, %v4257_v20  ;;  %vm4256_vm7 = vcmp.eq.f32.partialorder %v4255_v55, 8.507059e+37 }
0x154d   :  { %v5000_v8 = vpop.eup %4999 }
0x154e   :  { %v4265_v3 = vadd.f32 1.0, %v5000_v8 }
0x1550   :  { %v5002_v60 = vpop.eup %5001  ;;  %5003 = vrcp.f32 %v4265_v3  ;;  %v4277_v26 = vand.u32 2147483648, %v4265_v3  ;;  %vm4271_vm11 = vweird.f32 %v4265_v3  ;;  %v4275_v47 = vand.u32 2147483647, %v4265_v3 }
0x1551   :  { %v4247_v4 = vmul.f32 %v5002_v60, %v4245_v18  ;;  %vm4252_vm10 = vweird.f32 %v5002_v60 }
0x1552   :  { %vm4253_vm6 = vmor %vm4251_vm5, %vm4252_vm10  ;;  %v4278_v29 = vor.u32 1.1754944e-38, %v4277_v26  ;;  %vm4276_vm4 = vcmp.eq.f32.partialorder %v4275_v47, 8.507059e+37 }
0x1553   :  { %v4248_v11 = vsub.f32 1.0, %v4247_v4 }
0x1555   :  { %v4249_v28 = vmul.f32 %v5002_v60, %v4248_v11 }
0x1556   :  { %v5004_v41 = vpop.eup %5003 }
0x1557   :  { %v4250_v31 = vadd.f32 %v5002_v60, %v4249_v28  ;;  %v4267_v27 = vmul.f32 %v5004_v41, %v4265_v3  ;;  %vm4272_vm8 = vweird.f32 %v5004_v41 }
0x1558   :  { %vm4273_vm13 = vmor %vm4271_vm11, %vm4272_vm8 }
0x1559   :  { %v4254_v46 = vsel %vm4253_vm6, %v5002_v60, %v4250_v31  ;;  %v4268_v58 = vsub.f32 1.0, %v4267_v27 }
0x155a   :  { %v4259_v53 = vsel %vm4256_vm7, %v4258_v32, %v4254_v46 }
0x155b   :  { %v4281_v54 = vmul.f32 %v4259_v53, %v4239_v33  ;;  %v4269_v49 = vmul.f32 %v5004_v41, %v4268_v58 }
0x155d   :  { %v4282_v45 = vadd.f32 %v4281_v54, %v6168_v51  ;;  %v4270_v59 = vadd.f32 %v5004_v41, %v4269_v49 }
0x155f   :  { %5005 = vtanh.f32 %v4282_v45  ;;  %v4274_v51 = vsel %vm4273_vm13, %v5004_v41, %v4270_v59 }
0x1560   :  { %v4279_v63 = vsel %vm4276_vm4, %v4278_v29, %v4274_v51 }
0x1565   :  { %v5006_v2 = vpop.eup %5005 }
0x1566   :  { %v4285_v10 = vrot.slane %v5006_v2, 6 }
0x1568   :  { %v4287_v34 = vsub.f32 %v6429_v7, %v4285_v10 }
0x156a   :  { %v4289_v61 = vrot.slane %v4287_v34, 2 }
0x156c   :  { %v4291_v35 = vmul.f32 %v4289_v61, %v4279_v63 }
0x156e   :  { %v4292_v5 = vadd.f32 %v5006_v2, %v4291_v35 }
0x1570   :  { %v4294_v39 = vrot.slane %v4292_v5, 2  ;;  %4304 = vst.msk [vmem:[#allocation6 + $0x6] sm:$0x3] %vm159_vm9, %v4292_v5 }
0x1571   :  { %4335 = dma.vmem_to_hbm [thread:$0]  %s4328_s23, 128, %s4330_s26, [#allocation7], %s5064_s27, %s5064_s27, %s5065_s28  }
0x1572   :  { %v4296_v57 = vadd.f32 %v4294_v39, %v4177_v0 }
0x1574   :  { %v4297_v48 = vmul.f32 0.125, %v4296_v57 }
0x1576   :  { %4307 = vrot.lane.b32.xlu0 %v4297_v48, %s5064_s27 }
0x15e8   :  { %v4308_v12 = vpop.permute.xlu0 %4307 }
0x15e9   :  { %4311 = vst.msk [vmem:[#allocation4 - $0x6] sm:$0xc0] %vm4310_vm14, %v4308_v12 }
0x15ea   :  { %4322 = dma.vmem_to_hbm [thread:$0]  %s4318_s29, 32, %s4320_s6, [#allocation5]  }
0x15eb   :  { %5059 = dma.done.wait [#allocation5], 32  }
0x15ec   :  { %5060 = vsyncadd [#allocation5], 4294967264 }
0x15ed   :  { %5061 = dma.done.wait [#allocation7], 128  }
0x15ee   :  { %5062 = vsyncadd [#allocation7], 4294967168 }
0x15ef   :  { %4344 = vsyncpa [#allocation5], 1 }
0x15f0   :  { %4345 = vsyncpa [#allocation7], 1 }

</bundles_post_ra>
